<compile_context>
chip_gen: v5e
topology: v5e:2x2
jax: 0.10.0
libtpu: 0.0.40
codegen_flags: <defaults>
</compile_context>

<pallas_src>
import jax
import jax.numpy as jnp
from jax.experimental import pallas as pl
from jax.experimental.pallas import tpu as pltpu

IN_DIM = 5138                 # logical feature width (matches PyTorch)
H1, H2, H3 = 32, 64, 128
TM_MAX = 256                  # max batch-tile rows per grid step
SUBLANE = 16                  # sublane multiple that works for bf16 and f32


def _round_up(a, b):
    return (a + b - 1) // b * b


def dae_kernel(x_ref,
               w1_ref, b1_ref,
               w2_ref, b2_ref,
               w3_ref, b3_ref,
               w4_ref, b4_ref,
               out_ref):
    bf16 = jnp.bfloat16
    # x arrives as f32 straight from HBM; cast to bf16 in-register for the MXU.
    x = x_ref[...].astype(bf16)
    # layer1: Linear(5138 -> 32) + tanh   (bf16 MXU, f32 accumulate)
    y = jnp.dot(x, w1_ref[...], preferred_element_type=jnp.float32)
    y = jnp.tanh(y + b1_ref[...])
    # layer2: Linear(32 -> 64) + ReLU
    y = jnp.dot(y.astype(bf16), w2_ref[...], preferred_element_type=jnp.float32)
    y = jnp.maximum(y + b2_ref[...], 0.0)
    # layer3: Linear(64 -> 128) + ReLU
    y = jnp.dot(y.astype(bf16), w3_ref[...], preferred_element_type=jnp.float32)
    y = jnp.maximum(y + b3_ref[...], 0.0)
    # layer4: Linear(128 -> 5138), no activation (matches PyTorch forward)
    y = jnp.dot(y.astype(bf16), w4_ref[...], preferred_element_type=jnp.float32)
    out_ref[...] = (y + b4_ref[...]).astype(out_ref.dtype)


def prepare_params(params):
    """One-time prep: cast weights to bf16 (biases stay f32 for the f32 adds).

    Hoisted out of the per-call path so small-batch inference pays no
    per-call weight cast/copy traffic.
    """
    w1, b1, w2, b2, w3, b3, w4, b4 = params
    bf16 = jnp.bfloat16
    return (w1.astype(bf16), b1,
            w2.astype(bf16), b2,
            w3.astype(bf16), b3,
            w4.astype(bf16), b4)


def _choose_tile(n, tm_max):
    """Batch tile: small padding waste, >=2 parallel steps for v7x when possible."""
    if n <= 8:
        return n                              # exact single block (full-dim legal)
    num_tiles = max(pl.cdiv(n, tm_max), 2)    # keep both v7x TensorCores busy
    tm = _round_up(pl.cdiv(n, num_tiles), SUBLANE)
    return min(tm, _round_up(n, SUBLANE))


def dae_forward(x, prepared_params, *, tm_max=TM_MAX, out_dtype=jnp.bfloat16):
    """x: [N, 5138] f32.  prepared_params: output of prepare_params()."""
    (w1, b1, w2, b2, w3, b3, w4, b4) = prepared_params
    n, d = x.shape
    assert d == IN_DIM and n >= 1

    tm = _choose_tile(n, tm_max)
    grid = (pl.cdiv(n, tm),)                  # ragged tail handled by masking

    def const_map(i):
        return (0, 0)

    in_specs = [
        pl.BlockSpec((tm, IN_DIM), lambda i: (i, 0)),   # x tile (f32, logical width)
        pl.BlockSpec((IN_DIM, H1), const_map),          # w1 (bf16, VMEM-resident)
        pl.BlockSpec((1, H1), const_map),               # b1
        pl.BlockSpec((H1, H2), const_map),              # w2
        pl.BlockSpec((1, H2), const_map),               # b2
        pl.BlockSpec((H2, H3), const_map),              # w3
        pl.BlockSpec((1, H3), const_map),               # b3
        pl.BlockSpec((H3, IN_DIM), const_map),          # w4
        pl.BlockSpec((1, IN_DIM), const_map),           # b4
    ]
    out_specs = pl.BlockSpec((tm, IN_DIM), lambda i: (i, 0))

    flops = 2 * n * (IN_DIM * H1 + H1 * H2 + H2 * H3 + H3 * IN_DIM)
    weight_bytes = 2 * (w1.size + w2.size + w3.size + w4.size) \
        + 4 * (b1.size + b2.size + b3.size + b4.size)
    out_bytes = jnp.dtype(out_dtype).itemsize
    bytes_accessed = n * IN_DIM * (4 + out_bytes) + weight_bytes

    return pl.pallas_call(
        dae_kernel,
        out_shape=jax.ShapeDtypeStruct((n, IN_DIM), out_dtype),
        grid=grid,
        in_specs=in_specs,
        out_specs=out_specs,
        compiler_params=pltpu.CompilerParams(
            dimension_semantics=("parallel",),
            vmem_limit_bytes=32 << 20,
        ),
        cost_estimate=pl.CostEstimate(
            flops=flops,
            transcendentals=n * H1,
            bytes_accessed=bytes_accessed,
        ),
    )(x, w1, b1, w2, b2, w3, b3, w4, b4)


def init_params(key):
    """Deterministic init mimicking PyTorch nn.Linear (uniform +-1/sqrt(fan_in))."""
    dims = [(IN_DIM, H1), (H1, H2), (H2, H3), (H3, IN_DIM)]
    params = []
    keys = jax.random.split(key, 2 * len(dims))
    for i, (fan_in, fan_out) in enumerate(dims):
        bound = 1.0 / jnp.sqrt(jnp.float32(fan_in))
        w = jax.random.uniform(keys[2 * i], (fan_in, fan_out),
                               minval=-bound, maxval=bound, dtype=jnp.float32)
        b = jax.random.uniform(keys[2 * i + 1], (1, fan_out),
                               minval=-bound, maxval=bound, dtype=jnp.float32)
        params += [w, b]
    return tuple(params)


def dae_reference(x, params):
    """Pure-JAX reference mirroring the kernel's bf16-input / f32-accum matmuls."""
    # TODO(synk): true f32 nn.Linear parity would need f32 MXU passes; the
    # bf16-in / f32-accum path here is the intended inference numerics.
    (w1, b1, w2, b2, w3, b3, w4, b4) = params
    bf16 = jnp.bfloat16

    def mm(a, w):
        return jnp.dot(a.astype(bf16), w.astype(bf16),
                       preferred_element_type=jnp.float32)

    y = jnp.tanh(mm(x, w1) + b1)
    y = jnp.maximum(mm(y, w2) + b2, 0.0)
    y = jnp.maximum(mm(y, w3) + b3, 0.0)
    return mm(y, w4) + b4


if __name__ == "__main__":
    key = jax.random.PRNGKey(0)
    k_x, k_p, k_x2 = jax.random.split(key, 3)

    params = init_params(k_p)
    prepared = prepare_params(params)

    # --- small-batch test (bf16 output, single exact block) -----------------
    N = 2
    x = jax.random.normal(k_x, (N, IN_DIM), dtype=jnp.float32)
    out = jax.block_until_ready(dae_forward(x, prepared))
    ref = dae_reference(x, params)
    assert out.shape == (N, IN_DIM), out.shape
    assert out.dtype == jnp.bfloat16, out.dtype
    assert jnp.allclose(out.astype(jnp.float32), ref, atol=2e-2, rtol=2e-2), \
        float(jnp.max(jnp.abs(out.astype(jnp.float32) - ref)))

    # --- ragged-batch test (f32 escape hatch, 2 parallel tiles, masked tail) -
    N2 = 20
    x2 = jax.random.normal(k_x2, (N2, IN_DIM), dtype=jnp.float32)
    out2 = jax.block_until_ready(dae_forward(x2, prepared, out_dtype=jnp.float32))
    ref2 = dae_reference(x2, params)
    assert out2.shape == (N2, IN_DIM), out2.shape
    assert jnp.allclose(out2, ref2, atol=5e-3, rtol=5e-3), \
        float(jnp.max(jnp.abs(out2 - ref2)))

    print("KERNEL_OK")
</pallas_src>

<mosaic_0001>
module attributes {stable_mosaic.version = 11 : i64} {
  func.func @dae_kernel(%arg0: i32, %arg1: memref<2x5138xf32, #tpu.memory_space<vmem>>, %arg2: memref<5138x32xbf16, #tpu.memory_space<vmem>>, %arg3: memref<1x32xf32, #tpu.memory_space<vmem>>, %arg4: memref<32x64xbf16, #tpu.memory_space<vmem>>, %arg5: memref<1x64xf32, #tpu.memory_space<vmem>>, %arg6: memref<64x128xbf16, #tpu.memory_space<vmem>>, %arg7: memref<1x128xf32, #tpu.memory_space<vmem>>, %arg8: memref<128x5138xbf16, #tpu.memory_space<vmem>>, %arg9: memref<1x5138xf32, #tpu.memory_space<vmem>>, %arg10: memref<2x5138xbf16, #tpu.memory_space<vmem>>) attributes {dimension_semantics = [#tpu.dimension_semantics<parallel>], iteration_bounds = array<i64: 1>, scalar_prefetch = 0 : i64, scratch_operands = 0 : i64, tpu.core_type = #tpu.core_type<tc>, window_params = [{transform_indices = @transform_0, window_bounds = array<i64: 2, 5138>}, {pipeline_mode = #tpu.pipeline_mode<synchronous>, transform_indices = @transform_1, window_bounds = array<i64: 5138, 32>}, {pipeline_mode = #tpu.pipeline_mode<synchronous>, transform_indices = @transform_2, window_bounds = array<i64: 1, 32>}, {pipeline_mode = #tpu.pipeline_mode<synchronous>, transform_indices = @transform_3, window_bounds = array<i64: 32, 64>}, {pipeline_mode = #tpu.pipeline_mode<synchronous>, transform_indices = @transform_4, window_bounds = array<i64: 1, 64>}, {pipeline_mode = #tpu.pipeline_mode<synchronous>, transform_indices = @transform_5, window_bounds = array<i64: 64, 128>}, {pipeline_mode = #tpu.pipeline_mode<synchronous>, transform_indices = @transform_6, window_bounds = array<i64: 1, 128>}, {pipeline_mode = #tpu.pipeline_mode<synchronous>, transform_indices = @transform_7, window_bounds = array<i64: 128, 5138>}, {pipeline_mode = #tpu.pipeline_mode<synchronous>, transform_indices = @transform_8, window_bounds = array<i64: 1, 5138>}, {transform_indices = @transform_9, window_bounds = array<i64: 2, 5138>}]} {
    %c0 = arith.constant 0 : index
    %c0_0 = arith.constant 0 : index
    %0 = vector.load %arg1[%c0, %c0_0] : memref<2x5138xf32, #tpu.memory_space<vmem>>, vector<2x5138xf32>
    %1 = arith.truncf %0 : vector<2x5138xf32> to vector<2x5138xbf16>
    %c0_1 = arith.constant 0 : index
    %c0_2 = arith.constant 0 : index
    %2 = vector.load %arg2[%c0_1, %c0_2] : memref<5138x32xbf16, #tpu.memory_space<vmem>>, vector<5138x32xbf16>
    %cst = arith.constant dense<0.000000e+00> : vector<2x32xf32>
    %3 = tpu.matmul %1, %2, %cst {dimension_numbers = #tpu.dot_dimension_numbers<[1], [0], [0], [1], [0, 0, 1, 1], [], []>} : vector<2x5138xbf16>, vector<5138x32xbf16>, vector<2x32xf32> -> vector<2x32xf32>
    %c0_3 = arith.constant 0 : index
    %c0_4 = arith.constant 0 : index
    %4 = vector.load %arg3[%c0_3, %c0_4] : memref<1x32xf32, #tpu.memory_space<vmem>>, vector<1x32xf32>
    %5 = vector.broadcast %4 : vector<1x32xf32> to vector<2x32xf32>
    %6 = arith.addf %3, %5 : vector<2x32xf32>
    %7 = math.tanh %6 : vector<2x32xf32>
    %8 = arith.truncf %7 : vector<2x32xf32> to vector<2x32xbf16>
    %c0_5 = arith.constant 0 : index
    %c0_6 = arith.constant 0 : index
    %9 = vector.load %arg4[%c0_5, %c0_6] : memref<32x64xbf16, #tpu.memory_space<vmem>>, vector<32x64xbf16>
    %cst_7 = arith.constant dense<0.000000e+00> : vector<2x64xf32>
    %10 = tpu.matmul %8, %9, %cst_7 {dimension_numbers = #tpu.dot_dimension_numbers<[1], [0], [0], [1], [0, 0, 1, 1], [], []>} : vector<2x32xbf16>, vector<32x64xbf16>, vector<2x64xf32> -> vector<2x64xf32>
    %c0_8 = arith.constant 0 : index
    %c0_9 = arith.constant 0 : index
    %11 = vector.load %arg5[%c0_8, %c0_9] : memref<1x64xf32, #tpu.memory_space<vmem>>, vector<1x64xf32>
    %12 = vector.broadcast %11 : vector<1x64xf32> to vector<2x64xf32>
    %13 = arith.addf %10, %12 : vector<2x64xf32>
    %cst_10 = arith.constant 0.000000e+00 : f32
    %14 = vector.broadcast %cst_10 : f32 to vector<2x64xf32>
    %15 = arith.maximumf %13, %14 : vector<2x64xf32>
    %16 = arith.truncf %15 : vector<2x64xf32> to vector<2x64xbf16>
    %c0_11 = arith.constant 0 : index
    %c0_12 = arith.constant 0 : index
    %17 = vector.load %arg6[%c0_11, %c0_12] : memref<64x128xbf16, #tpu.memory_space<vmem>>, vector<64x128xbf16>
    %cst_13 = arith.constant dense<0.000000e+00> : vector<2x128xf32>
    %18 = tpu.matmul %16, %17, %cst_13 {dimension_numbers = #tpu.dot_dimension_numbers<[1], [0], [0], [1], [0, 0, 1, 1], [], []>} : vector<2x64xbf16>, vector<64x128xbf16>, vector<2x128xf32> -> vector<2x128xf32>
    %c0_14 = arith.constant 0 : index
    %c0_15 = arith.constant 0 : index
    %19 = vector.load %arg7[%c0_14, %c0_15] : memref<1x128xf32, #tpu.memory_space<vmem>>, vector<1x128xf32>
    %20 = vector.broadcast %19 : vector<1x128xf32> to vector<2x128xf32>
    %21 = arith.addf %18, %20 : vector<2x128xf32>
    %cst_16 = arith.constant 0.000000e+00 : f32
    %22 = vector.broadcast %cst_16 : f32 to vector<2x128xf32>
    %23 = arith.maximumf %21, %22 : vector<2x128xf32>
    %24 = arith.truncf %23 : vector<2x128xf32> to vector<2x128xbf16>
    %c0_17 = arith.constant 0 : index
    %c0_18 = arith.constant 0 : index
    %25 = vector.load %arg8[%c0_17, %c0_18] : memref<128x5138xbf16, #tpu.memory_space<vmem>>, vector<128x5138xbf16>
    %cst_19 = arith.constant dense<0.000000e+00> : vector<2x5138xf32>
    %26 = tpu.matmul %24, %25, %cst_19 {dimension_numbers = #tpu.dot_dimension_numbers<[1], [0], [0], [1], [0, 0, 1, 1], [], []>} : vector<2x128xbf16>, vector<128x5138xbf16>, vector<2x5138xf32> -> vector<2x5138xf32>
    %c0_20 = arith.constant 0 : index
    %c0_21 = arith.constant 0 : index
    %27 = vector.load %arg9[%c0_20, %c0_21] : memref<1x5138xf32, #tpu.memory_space<vmem>>, vector<1x5138xf32>
    %28 = vector.broadcast %27 : vector<1x5138xf32> to vector<2x5138xf32>
    %29 = arith.addf %26, %28 : vector<2x5138xf32>
    %30 = arith.truncf %29 : vector<2x5138xf32> to vector<2x5138xbf16>
    %c0_22 = arith.constant 0 : index
    %c0_23 = arith.constant 0 : index
    %31 = vector.load %arg10[%c0_22, %c0_23] : memref<2x5138xbf16, #tpu.memory_space<vmem>>, vector<2x5138xbf16>
    tpu.vector_store %arg10[%c0_22, %c0_23], %30 {strides = array<i32>} : memref<2x5138xbf16, #tpu.memory_space<vmem>>, vector<2x5138xbf16>,
    return
  }
  func.func @transform_0(%arg0: i32) -> (i32, i32) {
    %c0_i32 = arith.constant 0 : i32
    %c0_i32_0 = arith.constant 0 : i32
    return %arg0, %c0_i32 : i32, i32
  }
  func.func @transform_1(%arg0: i32) -> (i32, i32) {
    %c0_i32 = arith.constant 0 : i32
    %c0_i32_0 = arith.constant 0 : i32
    %c0_i32_1 = arith.constant 0 : i32
    return %c0_i32, %c0_i32_0 : i32, i32
  }
  func.func @transform_2(%arg0: i32) -> (i32, i32) {
    %c0_i32 = arith.constant 0 : i32
    %c0_i32_0 = arith.constant 0 : i32
    %c0_i32_1 = arith.constant 0 : i32
    return %c0_i32, %c0_i32_0 : i32, i32
  }
  func.func @transform_3(%arg0: i32) -> (i32, i32) {
    %c0_i32 = arith.constant 0 : i32
    %c0_i32_0 = arith.constant 0 : i32
    %c0_i32_1 = arith.constant 0 : i32
    return %c0_i32, %c0_i32_0 : i32, i32
  }
  func.func @transform_4(%arg0: i32) -> (i32, i32) {
    %c0_i32 = arith.constant 0 : i32
    %c0_i32_0 = arith.constant 0 : i32
    %c0_i32_1 = arith.constant 0 : i32
    return %c0_i32, %c0_i32_0 : i32, i32
  }
  func.func @transform_5(%arg0: i32) -> (i32, i32) {
    %c0_i32 = arith.constant 0 : i32
    %c0_i32_0 = arith.constant 0 : i32
    %c0_i32_1 = arith.constant 0 : i32
    return %c0_i32, %c0_i32_0 : i32, i32
  }
  func.func @transform_6(%arg0: i32) -> (i32, i32) {
    %c0_i32 = arith.constant 0 : i32
    %c0_i32_0 = arith.constant 0 : i32
    %c0_i32_1 = arith.constant 0 : i32
    return %c0_i32, %c0_i32_0 : i32, i32
  }
  func.func @transform_7(%arg0: i32) -> (i32, i32) {
    %c0_i32 = arith.constant 0 : i32
    %c0_i32_0 = arith.constant 0 : i32
    %c0_i32_1 = arith.constant 0 : i32
    return %c0_i32, %c0_i32_0 : i32, i32
  }
  func.func @transform_8(%arg0: i32) -> (i32, i32) {
    %c0_i32 = arith.constant 0 : i32
    %c0_i32_0 = arith.constant 0 : i32
    %c0_i32_1 = arith.constant 0 : i32
    return %c0_i32, %c0_i32_0 : i32, i32
  }
  func.func @transform_9(%arg0: i32) -> (i32, i32) {
    %c0_i32 = arith.constant 0 : i32
    %c0_i32_0 = arith.constant 0 : i32
    return %arg0, %c0_i32 : i32, i32
  }
}

</mosaic_0001>

<bundles_post_ra>
// kernel: tpu_custom_call.1
= control target key start
LH: loop header
LB: loop body
LE: loop exit
PB: predicated region body
PF: predicated region fallthrough
CT: control target
= control target key end

     0   :  { %s12808_s0 = inlined_call_operand.vmem [shape: f32[2,5138], index: 0, kind: input, shape index: {}]   ;;  %s12809_s1 = inlined_call_operand.vmem [shape: bf16[5138,32], index: 1, kind: input, shape index: {}]   ;;  %s12810_s2 = inlined_call_operand.vmem [shape: f32[1,32], index: 2, kind: input, shape index: {}]   ;;  %s12811_s3 = inlined_call_operand.vmem [shape: bf16[32,64], index: 3, kind: input, shape index: {}]   ;;  %s12812_s4 = inlined_call_operand.vmem [shape: f32[1,64], index: 4, kind: input, shape index: {}]   ;;  %s12813_s5 = inlined_call_operand.vmem [shape: bf16[64,128], index: 5, kind: input, shape index: {}]   ;;  %s12814_s6 = inlined_call_operand.vmem [shape: f32[1,128], index: 6, kind: input, shape index: {}]   ;;  %s12815_s7 = inlined_call_operand.vmem [shape: bf16[128,5138], index: 7, kind: input, shape index: {}]   ;;  %s12816_s8 = inlined_call_operand.vmem [shape: f32[1,5138], index: 8, kind: input, shape index: {}]   ;;  %s12817_s9 = inlined_call_operand.hbm [shape: bf16[2,5138], index: 9, kind: output, shape index: {}]  }
   0x1   :  { %v8836_v0 = vld [vmem:[%s12809_s1 + $0x38] sm:$0xff]  ;;  %v8835_v4 = vld [vmem:[%s12809_s1 + $0x30] sm:$0xff]  ;;  %v8834_v8 = vld [vmem:[%s12809_s1 + $0x28] sm:$0xff] }
   0x2   :  { %v8852_v1 = vld [vmem:[%s12809_s1 + $0xb8] sm:$0xff]  ;;  %2775 = vmatpush.bf16.msra.mxu0 %v8836_v0  ;;  %v8851_v5 = vld [vmem:[%s12809_s1 + $0xb0] sm:$0xff]  ;;  %v8850_v9 = vld [vmem:[%s12809_s1 + $0xa8] sm:$0xff] }
   0x3   :  { %v8860_v2 = vld [vmem:[%s12809_s1 + $0xf8] sm:$0xff]  ;;  %2801 = vmatpush.bf16.msra.mxu2 %v8852_v1  ;;  %v8859_v6 = vld [vmem:[%s12809_s1 + $0xf0] sm:$0xff]  ;;  %v8858_v10 = vld [vmem:[%s12809_s1 + $0xe8] sm:$0xff] }
   0x4   :  { %v8844_v3 = vld [vmem:[%s12809_s1 + $0x78] sm:$0xff]  ;;  %2814 = vmatpush.bf16.msra.mxu3 %v8860_v2  ;;  %v8843_v7 = vld [vmem:[%s12809_s1 + $0x70] sm:$0xff]  ;;  %v8842_v11 = vld [vmem:[%s12809_s1 + $0x68] sm:$0xff] }
   0x5   :  { %2788 = vmatpush.bf16.msra.mxu1 %v8844_v3  ;;  %v8833_v12 = vld [vmem:[%s12809_s1 + $0x20] sm:$0xff]  ;;  %v8832_v16 = vld [vmem:[%s12809_s1 + $0x18] sm:$0xff]  ;;  %v8831_v20 = vld [vmem:[%s12809_s1 + $0x10] sm:$0xff] }
   0x6   :  { %2776 = vmatpush.bf16.msra.mxu0 %v8835_v4  ;;  %v8849_v13 = vld [vmem:[%s12809_s1 + $0xa0] sm:$0xff]  ;;  %v8848_v17 = vld [vmem:[%s12809_s1 + $0x98] sm:$0xff]  ;;  %v8847_v22 = vld [vmem:[%s12809_s1 + $0x90] sm:$0xff] }
   0x7   :  { %2802 = vmatpush.bf16.msra.mxu2 %v8851_v5  ;;  %v8857_v14 = vld [vmem:[%s12809_s1 + $0xe0] sm:$0xff]  ;;  %v8856_v18 = vld [vmem:[%s12809_s1 + $0xd8] sm:$0xff]  ;;  %v8855_v23 = vld [vmem:[%s12809_s1 + $0xd0] sm:$0xff] }
   0x8   :  { %2815 = vmatpush.bf16.msra.mxu3 %v8859_v6  ;;  %v8841_v15 = vld [vmem:[%s12809_s1 + $0x60] sm:$0xff]  ;;  %v8840_v19 = vld [vmem:[%s12809_s1 + $0x58] sm:$0xff]  ;;  %v8839_v24 = vld [vmem:[%s12809_s1 + $0x50] sm:$0xff] }
   0x9   :  { %2789 = vmatpush.bf16.msra.mxu1 %v8843_v7  ;;  %v34_v21 = vld [vmem:[%s12808_s0] sm:$0xff] }
   0xa   :  { %2777 = vmatpush.bf16.msra.mxu0 %v8834_v8  ;;  %56 = vst [vmem:[#allocation1] ss:$4 sm:$0xff] %v34_v21 }
   0xb   :  { %2803 = vmatpush.bf16.msra.mxu2 %v8850_v9 }
   0xc   :  { %2816 = vmatpush.bf16.msra.mxu3 %v8858_v10 }
   0xd   :  { %2790 = vmatpush.bf16.msra.mxu1 %v8842_v11 }
   0xe   :  { %2778 = vmatpush.bf16.msra.mxu0 %v8833_v12 }
   0xf   :  { %2804 = vmatpush.bf16.msra.mxu2 %v8849_v13 }
  0x10   :  { %2817 = vmatpush.bf16.msra.mxu3 %v8857_v14 }
  0x11   :  { %2791 = vmatpush.bf16.msra.mxu1 %v8841_v15 }
  0x12   :  { %2779 = vmatpush.bf16.msra.mxu0 %v8832_v16 }
  0x13   :  { %2805 = vmatpush.bf16.msra.mxu2 %v8848_v17 }
  0x14   :  { %2818 = vmatpush.bf16.msra.mxu3 %v8856_v18 }
  0x15   :  { %2792 = vmatpush.bf16.msra.mxu1 %v8840_v19 }
  0x16   :  { %14 = vsyncpa [#allocation3], 0  ;;  %2780 = vmatpush.bf16.msra.mxu0 %v8831_v20  ;;  %v8830_v25 = vld [vmem:[%s12809_s1 + $0x8] sm:$0xff]  ;;  %v8829_v29 = vld [vmem:[%s12809_s1] sm:$0xff]  ;;  %vm2771_vm0 = vcmask 1040384   ;;  %vm2767_vm1 = vcmask 146432  }
  0x17   :  { %2806 = vmatpush.bf16.msra.mxu2 %v8847_v22  ;;  %v8846_v26 = vld [vmem:[%s12809_s1 + $0x88] sm:$0xff]  ;;  %v8845_v30 = vld [vmem:[%s12809_s1 + $0x80] sm:$0xff]  ;;  %v36_v31 = vld [vmem:[%s12808_s0 + $0x10] sm:$0xff]  ;;  %vm3330_vm2 = vcmask 261120   ;;  %vm3385_vm3 = vcmask 523264   ;;  %vm6096_vm4 = vcmask 1042434  }
  0x18   :  { %2819 = vmatpush.bf16.msra.mxu3 %v8855_v23  ;;  %v8854_v27 = vld [vmem:[%s12809_s1 + $0xc8] sm:$0xff]  ;;  %v61_v32 = vld.sshfl [vmem:[#allocation1 + $0x10] sm:$0xff pattern:$0x73625140]  ;;  %v8853_v36 = vld [vmem:[%s12809_s1 + $0xc0] sm:$0xff]  ;;  %vm6100_vm5 = vcmask 1041408  }
  0x19   :  { %2793 = vmatpush.bf16.msra.mxu1 %v8839_v24  ;;  %v8838_v28 = vld [vmem:[%s12809_s1 + $0x48] sm:$0xff]  ;;  %v59_v33 = vld.sshfl [vmem:[#allocation1] sm:$0xff pattern:$0x73625140]  ;;  %v8868_v37 = vld [vmem:[%s12809_s1 + $0x138] sm:$0xff]  ;;  %v152_v41 = vpack.c.bf16 %v61_v32, %v61_v32  ;;  %vm6102_vm6 = vcmask 1044484  }
  0x1a   :  { %2781 = vmatpush.bf16.msra.mxu0 %v8830_v25  ;;  %v62_v34 = vld.sshfl [vmem:[#allocation1 + $0x18] sm:$0xff pattern:$0x73625140]  ;;  %v60_v35 = vld.sshfl [vmem:[#allocation1 + $0x8] sm:$0xff pattern:$0x73625140]  ;;  %v150_v44 = vpack.c.bf16 %v59_v33, %v59_v33 }
  0x1b   :  { %2807 = vmatpush.bf16.msra.mxu2 %v8846_v26  ;;  %67 = vst [vmem:[#allocation1] ss:$4 sm:$0xff] %v36_v31  ;;  %v8884_v38 = vld [vmem:[%s12809_s1 + $0x1b8] sm:$0xff]  ;;  %v8837_v40 = vld [vmem:[%s12809_s1 + $0x40] sm:$0xff]  ;;  %v35_v42 = vld [vmem:[%s12808_s0 + $0x8] sm:$0xff]  ;;  %v153_v46 = vpack.c.bf16 %v62_v34, %v62_v34  ;;  %v151_v49 = vpack.c.bf16 %v60_v35, %v60_v35  ;;  %vm6106_vm7 = vcmask 1046534  }
  0x1c   :  { %2820 = vmatpush.bf16.msra.mxu3 %v8854_v27  ;;  %v8892_v39 = vld [vmem:[%s12809_s1 + $0x1f8] sm:$0xff]  ;;  %58 = vst [vmem:[#allocation1 + $0x20] ss:$4 sm:$0xff] %v35_v42  ;;  %v8867_v45 = vld [vmem:[%s12809_s1 + $0x130] sm:$0xff]  ;;  %v8866_v51 = vld [vmem:[%s12809_s1 + $0x128] sm:$0xff]  ;;  %vm6110_vm8 = vcmask 1045508  }
  0x1d   :  { %2794 = vmatpush.bf16.msra.mxu1 %v8838_v28  ;;  %v8876_v43 = vld [vmem:[%s12809_s1 + $0x178] sm:$0xff]  ;;  %v8883_v47 = vld [vmem:[%s12809_s1 + $0x1b0] sm:$0xff]  ;;  %v8882_v52 = vld [vmem:[%s12809_s1 + $0x1a8] sm:$0xff]  ;;  %vm6112_vm9 = vcmask 1043456   ;;  %s6197_s18 = sshll.u32 %s12817_s9, 4  ;;  %vm6188_vm10 = vcmask 139264   ;;  %s6198_s18 = int_to_ptr.hbm [resolvable:$true] %s6197_s18 }
  0x1e   :  { %2782 = vmatpush.bf16.msra.mxu0 %v8829_v29  ;;  %v8891_v48 = vld [vmem:[%s12809_s1 + $0x1f0] sm:$0xff]  ;;  %v8890_v53 = vld [vmem:[%s12809_s1 + $0x1e8] sm:$0xff]  ;;  %v8865_v56 = vld [vmem:[%s12809_s1 + $0x120] sm:$0xff] }
  0x1f   :  { %2808 = vmatpush.bf16.msra.mxu2 %v8845_v30  ;;  %v8875_v50 = vld [vmem:[%s12809_s1 + $0x170] sm:$0xff]  ;;  %v8874_v54 = vld [vmem:[%s12809_s1 + $0x168] sm:$0xff]  ;;  %v37_v58 = vld [vmem:[%s12808_s0 + $0x18] sm:$0xff] }
  0x20   :  { %2821 = vmatpush.bf16.msra.mxu3 %v8853_v36  ;;  %v8881_v61 = vld [vmem:[%s12809_s1 + $0x1a0] sm:$0xff]  ;;  %v8864_v0 = vld [vmem:[%s12809_s1 + $0x118] sm:$0xff]  ;;  %v8863_v4 = vld [vmem:[%s12809_s1 + $0x110] sm:$0xff] }
  0x21   :  { %2795 = vmatpush.bf16.msra.mxu1 %v8837_v40  ;;  %2783 = vmatmul.bf16.vlgmr.msra.gmra.mxu0 %v150_v44  ;;  %v8889_v62 = vld [vmem:[%s12809_s1 + $0x1e0] sm:$0xff]  ;;  %v8880_v1 = vld [vmem:[%s12809_s1 + $0x198] sm:$0xff]  ;;  %v8879_v5 = vld [vmem:[%s12809_s1 + $0x190] sm:$0xff] }
  0x22   :  { %2827 = vmatpush.bf16.msrb.mxu0 %v8868_v37  ;;  %2809 = vmatmul.bf16.vlgmr.msra.gmra.mxu2 %v152_v41  ;;  %v8873_v63 = vld [vmem:[%s12809_s1 + $0x160] sm:$0xff]  ;;  %v8888_v2 = vld [vmem:[%s12809_s1 + $0x1d8] sm:$0xff]  ;;  %v8887_v6 = vld [vmem:[%s12809_s1 + $0x1d0] sm:$0xff] }
  0x23   :  { %2853 = vmatpush.bf16.msrb.mxu2 %v8884_v38  ;;  %2822 = vmatmul.bf16.vlgmr.msra.gmra.mxu3 %v153_v46  ;;  %v9709_v55 = vld.sshfl [vmem:[#allocation1 + $0x30] sm:$0xff pattern:$0x73625140]  ;;  %v9714_v57 = vld.sshfl [vmem:[#allocation1 + $0x20] sm:$0xff pattern:$0x73625140] }
  0x24   :  { %2866 = vmatpush.bf16.msrb.mxu3 %v8892_v39  ;;  %2796 = vmatmul.bf16.vlgmr.msra.gmra.mxu1 %v151_v49  ;;  %v9719_v59 = vld.sshfl [vmem:[#allocation1 + $0x38] sm:$0xff pattern:$0x73625140]  ;;  %v9721_v60 = vld.sshfl [vmem:[#allocation1 + $0x28] sm:$0xff pattern:$0x73625140]  ;;  %v156_v20 = vpack.c.bf16 %v9709_v55, %v9709_v55  ;;  %v154_v22 = vpack.c.bf16 %v9714_v57, %v9714_v57 }
  0x25   :  { %2840 = vmatpush.bf16.msrb.mxu1 %v8876_v43  ;;  %68 = vst [vmem:[#allocation1 + $0x20] ss:$4 sm:$0xff] %v37_v58  ;;  %v8872_v3 = vld [vmem:[%s12809_s1 + $0x158] sm:$0xff]  ;;  %v8871_v7 = vld [vmem:[%s12809_s1 + $0x150] sm:$0xff]  ;;  %v8862_v8 = vld [vmem:[%s12809_s1 + $0x108] sm:$0xff]  ;;  %v157_v23 = vpack.c.bf16 %v9719_v59, %v9719_v59  ;;  %v155_v27 = vpack.c.bf16 %v9721_v60, %v9721_v60 }
  0x26   :  { %2828 = vmatpush.bf16.msrb.mxu0 %v8867_v45  ;;  %v8878_v9 = vld [vmem:[%s12809_s1 + $0x188] sm:$0xff]  ;;  %v8861_v12 = vld [vmem:[%s12809_s1 + $0x100] sm:$0xff]  ;;  %v8900_v15 = vld [vmem:[%s12809_s1 + $0x238] sm:$0xff] }
  0x27   :  { %2854 = vmatpush.bf16.msrb.mxu2 %v8883_v47  ;;  %v8886_v10 = vld [vmem:[%s12809_s1 + $0x1c8] sm:$0xff]  ;;  %v8877_v13 = vld [vmem:[%s12809_s1 + $0x180] sm:$0xff]  ;;  %v8916_v16 = vld [vmem:[%s12809_s1 + $0x2b8] sm:$0xff] }
  0x28   :  { %2867 = vmatpush.bf16.msrb.mxu3 %v8891_v48  ;;  %v8870_v11 = vld [vmem:[%s12809_s1 + $0x148] sm:$0xff]  ;;  %v8885_v14 = vld [vmem:[%s12809_s1 + $0x1c0] sm:$0xff]  ;;  %v8924_v17 = vld [vmem:[%s12809_s1 + $0x2f8] sm:$0xff] }
  0x29   :  { %2841 = vmatpush.bf16.msrb.mxu1 %v8875_v50  ;;  %v8869_v18 = vld [vmem:[%s12809_s1 + $0x140] sm:$0xff]  ;;  %v8908_v19 = vld [vmem:[%s12809_s1 + $0x278] sm:$0xff]  ;;  %v8899_v21 = vld [vmem:[%s12809_s1 + $0x230] sm:$0xff] }
  0x2a   :  { %2829 = vmatpush.bf16.msrb.mxu0 %v8866_v51  ;;  %v8915_v24 = vld [vmem:[%s12809_s1 + $0x2b0] sm:$0xff]  ;;  %v9807_v26 = vld.sshfl [vmem:[#allocation1] sm:$0xff pattern:$0x73625140]  ;;  %v8898_v33 = vld [vmem:[%s12809_s1 + $0x228] sm:$0xff] }
  0x2b   :  { %2855 = vmatpush.bf16.msrb.mxu2 %v8882_v52  ;;  %v8923_v25 = vld [vmem:[%s12809_s1 + $0x2f0] sm:$0xff]  ;;  %v9813_v29 = vld.sshfl [vmem:[#allocation1 + $0x8] sm:$0xff pattern:$0x73625140]  ;;  %v38_v31 = vld [vmem:[%s12808_s0 + $0x20] sm:$0xff]  ;;  %v158_v60 = vpack.c.bf16 %v9807_v26, %v9807_v26 }
  0x2c   :  { %2868 = vmatpush.bf16.msrb.mxu3 %v8890_v53  ;;  %v9811_v28 = vld.sshfl [vmem:[#allocation1 + $0x10] sm:$0xff pattern:$0x73625140]  ;;  %v9821_v32 = vld.sshfl [vmem:[#allocation1 + $0x18] sm:$0xff pattern:$0x73625140] }
  0x2d   :  { %2842 = vmatpush.bf16.msrb.mxu1 %v8874_v54  ;;  %v8907_v30 = vld [vmem:[%s12809_s1 + $0x270] sm:$0xff]  ;;  %77 = vst [vmem:[#allocation1] ss:$4 sm:$0xff] %v38_v31  ;;  %v8914_v34 = vld [vmem:[%s12809_s1 + $0x2a8] sm:$0xff]  ;;  %v8897_v37 = vld [vmem:[%s12809_s1 + $0x220] sm:$0xff] }
  0x2e   :  { %2830 = vmatpush.bf16.msrb.mxu0 %v8865_v56  ;;  %v8922_v35 = vld [vmem:[%s12809_s1 + $0x2e8] sm:$0xff]  ;;  %v8913_v38 = vld [vmem:[%s12809_s1 + $0x2a0] sm:$0xff]  ;;  %v8896_v41 = vld [vmem:[%s12809_s1 + $0x218] sm:$0xff] }
  0x2f   :  { %2856 = vmatpush.bf16.msrb.mxu2 %v8881_v61  ;;  %v8906_v36 = vld [vmem:[%s12809_s1 + $0x268] sm:$0xff]  ;;  %v8921_v39 = vld [vmem:[%s12809_s1 + $0x2e0] sm:$0xff]  ;;  %v8912_v42 = vld [vmem:[%s12809_s1 + $0x298] sm:$0xff]  ;;  %v160_v61 = vpack.c.bf16 %v9811_v28, %v9811_v28 }
  0x30   :  { %2869 = vmatpush.bf16.msrb.mxu3 %v8889_v62  ;;  %v8905_v40 = vld [vmem:[%s12809_s1 + $0x260] sm:$0xff]  ;;  %v8920_v43 = vld [vmem:[%s12809_s1 + $0x2d8] sm:$0xff]  ;;  %v8895_v45 = vld [vmem:[%s12809_s1 + $0x210] sm:$0xff] }
  0x31   :  { %2843 = vmatpush.bf16.msrb.mxu1 %v8873_v63  ;;  %v8904_v44 = vld [vmem:[%s12809_s1 + $0x258] sm:$0xff]  ;;  %v8911_v46 = vld [vmem:[%s12809_s1 + $0x290] sm:$0xff]  ;;  %v8894_v49 = vld [vmem:[%s12809_s1 + $0x208] sm:$0xff]  ;;  %v161_v63 = vpack.c.bf16 %v9821_v32, %v9821_v32 }
  0x32   :  { %2831 = vmatpush.bf16.msrb.mxu0 %v8864_v0  ;;  %v8919_v47 = vld [vmem:[%s12809_s1 + $0x2d0] sm:$0xff]  ;;  %v8910_v50 = vld [vmem:[%s12809_s1 + $0x288] sm:$0xff]  ;;  %v8893_v53 = vld [vmem:[%s12809_s1 + $0x200] sm:$0xff] }
  0x33   :  { %2857 = vmatpush.bf16.msrb.mxu2 %v8880_v1  ;;  %v8903_v48 = vld [vmem:[%s12809_s1 + $0x250] sm:$0xff]  ;;  %v8918_v51 = vld [vmem:[%s12809_s1 + $0x2c8] sm:$0xff]  ;;  %v8909_v54 = vld [vmem:[%s12809_s1 + $0x280] sm:$0xff] }
  0x34   :  { %2870 = vmatpush.bf16.msrb.mxu3 %v8888_v2  ;;  %v8902_v52 = vld [vmem:[%s12809_s1 + $0x248] sm:$0xff]  ;;  %v8917_v55 = vld [vmem:[%s12809_s1 + $0x2c0] sm:$0xff]  ;;  %v8932_v56 = vld [vmem:[%s12809_s1 + $0x338] sm:$0xff] }
  0x35   :  { %2844 = vmatpush.bf16.msrb.mxu1 %v8872_v3  ;;  %v8948_v57 = vld [vmem:[%s12809_s1 + $0x3b8] sm:$0xff]  ;;  %v8901_v59 = vld [vmem:[%s12809_s1 + $0x240] sm:$0xff]  ;;  %v8931_v0 = vld [vmem:[%s12809_s1 + $0x330] sm:$0xff]  ;;  %v159_v3 = vpack.c.bf16 %v9813_v29, %v9813_v29 }
  0x36   :  { %2832 = vmatpush.bf16.msrb.mxu0 %v8863_v4  ;;  %v8956_v58 = vld [vmem:[%s12809_s1 + $0x3f8] sm:$0xff]  ;;  %v8947_v1 = vld [vmem:[%s12809_s1 + $0x3b0] sm:$0xff]  ;;  %v9919_v2 = vld.sshfl [vmem:[#allocation1 + $0x20] sm:$0xff pattern:$0x73625140] }
  0x37   :  { %2858 = vmatpush.bf16.msrb.mxu2 %v8879_v5  ;;  %v8940_v62 = vld [vmem:[%s12809_s1 + $0x378] sm:$0xff]  ;;  %v9923_v4 = vld.sshfl [vmem:[#allocation1 + $0x30] sm:$0xff pattern:$0x73625140]  ;;  %v8926_v26 = vld [vmem:[%s12809_s1 + $0x308] sm:$0xff] }
  0x38   :  { %2871 = vmatpush.bf16.msrb.mxu3 %v8887_v6  ;;  %v9925_v5 = vld.sshfl [vmem:[#allocation1 + $0x28] sm:$0xff pattern:$0x73625140]  ;;  %v8955_v6 = vld [vmem:[%s12809_s1 + $0x3f0] sm:$0xff]  ;;  %v8941_v31 = vld [vmem:[%s12809_s1 + $0x380] sm:$0xff] }
  0x39   :  { %2845 = vmatpush.bf16.msrb.mxu1 %v8871_v7  ;;  %v39_v7 = vld [vmem:[%s12808_s0 + $0x28] sm:$0xff]  ;;  %v8964_v32 = vld [vmem:[%s12809_s1 + $0x438] sm:$0xff] }
  0x3a   :  { %2833 = vmatpush.bf16.msrb.mxu0 %v8862_v8  ;;  %v9933_v8 = vld.sshfl [vmem:[#allocation1 + $0x38] sm:$0xff pattern:$0x73625140]  ;;  %v8950_v28 = vld [vmem:[%s12809_s1 + $0x3c8] sm:$0xff] }
  0x3b   :  { %2859 = vmatpush.bf16.msrb.mxu2 %v8878_v9  ;;  %v8939_v9 = vld [vmem:[%s12809_s1 + $0x370] sm:$0xff]  ;;  %78 = vst [vmem:[#allocation1 + $0x20] ss:$4 sm:$0xff] %v39_v7  ;;  %v8934_v29 = vld [vmem:[%s12809_s1 + $0x348] sm:$0xff]  ;;  %v8996_v7 = vld [vmem:[%s12809_s1 + $0x538] sm:$0xff] }
  0x3c   :  { %2872 = vmatpush.bf16.msrb.mxu3 %v8886_v10  ;;  %v8930_v10 = vld [vmem:[%s12809_s1 + $0x328] sm:$0xff] }
  0x3d   :  { %2846 = vmatpush.bf16.msrb.mxu1 %v8870_v11  ;;  %v8946_v11 = vld [vmem:[%s12809_s1 + $0x3a8] sm:$0xff] }
  0x3e   :  { %2834 = vmatpush.bf16.msrb.mxu0 %v8861_v12  ;;  %v8954_v12 = vld [vmem:[%s12809_s1 + $0x3e8] sm:$0xff] }
  0x3f   :  { %2860 = vmatpush.bf16.msrb.mxu2 %v8877_v13  ;;  %v8938_v13 = vld [vmem:[%s12809_s1 + $0x368] sm:$0xff] }
  0x40   :  { %2873 = vmatpush.bf16.msrb.mxu3 %v8885_v14  ;;  %v8929_v14 = vld [vmem:[%s12809_s1 + $0x320] sm:$0xff] }
  0x41   :  { %2847 = vmatpush.bf16.msrb.mxu1 %v8869_v18  ;;  %2835 = vmatmul.bf16.vlgmr.msrb.gmra.mxu0 %v154_v22  ;;  %v8928_v18 = vld [vmem:[%s12809_s1 + $0x318] sm:$0xff]  ;;  %v8927_v22 = vld [vmem:[%s12809_s1 + $0x310] sm:$0xff] }
  0x42   :  { %2879 = vmatpush.bf16.msra.mxu0 %v8900_v15  ;;  %2861 = vmatmul.bf16.vlgmr.msrb.gmra.mxu2 %v156_v20  ;;  %v8945_v15 = vld [vmem:[%s12809_s1 + $0x3a0] sm:$0xff]  ;;  %v8952_v20 = vld [vmem:[%s12809_s1 + $0x3d8] sm:$0xff] }
  0x43   :  { %2905 = vmatpush.bf16.msra.mxu2 %v8916_v16  ;;  %2874 = vmatmul.bf16.vlgmr.msrb.gmra.mxu3 %v157_v23  ;;  %v8953_v16 = vld [vmem:[%s12809_s1 + $0x3e0] sm:$0xff]  ;;  %v8943_v23 = vld [vmem:[%s12809_s1 + $0x390] sm:$0xff] }
  0x44   :  { %2918 = vmatpush.bf16.msra.mxu3 %v8924_v17  ;;  %2848 = vmatmul.bf16.vlgmr.msrb.gmra.mxu1 %v155_v27  ;;  %v8937_v17 = vld [vmem:[%s12809_s1 + $0x360] sm:$0xff]  ;;  %v8942_v27 = vld [vmem:[%s12809_s1 + $0x388] sm:$0xff] }
  0x45   :  { %2892 = vmatpush.bf16.msra.mxu1 %v8908_v19  ;;  %v8944_v19 = vld [vmem:[%s12809_s1 + $0x398] sm:$0xff] }
  0x46   :  { %2880 = vmatpush.bf16.msra.mxu0 %v8899_v21  ;;  %v8936_v21 = vld [vmem:[%s12809_s1 + $0x358] sm:$0xff] }
  0x47   :  { %2906 = vmatpush.bf16.msra.mxu2 %v8915_v24  ;;  %v8951_v24 = vld [vmem:[%s12809_s1 + $0x3d0] sm:$0xff] }
  0x48   :  { %2919 = vmatpush.bf16.msra.mxu3 %v8923_v25  ;;  %v8935_v25 = vld [vmem:[%s12809_s1 + $0x350] sm:$0xff] }
  0x49   :  { %2893 = vmatpush.bf16.msra.mxu1 %v8907_v30  ;;  %v8925_v30 = vld [vmem:[%s12809_s1 + $0x300] sm:$0xff] }
  0x4a   :  { %2881 = vmatpush.bf16.msra.mxu0 %v8898_v33  ;;  %v8949_v33 = vld [vmem:[%s12809_s1 + $0x3c0] sm:$0xff] }
  0x4b   :  { %2907 = vmatpush.bf16.msra.mxu2 %v8914_v34  ;;  %v8980_v34 = vld [vmem:[%s12809_s1 + $0x4b8] sm:$0xff] }
  0x4c   :  { %2920 = vmatpush.bf16.msra.mxu3 %v8922_v35  ;;  %v8988_v35 = vld [vmem:[%s12809_s1 + $0x4f8] sm:$0xff] }
  0x4d   :  { %2894 = vmatpush.bf16.msra.mxu1 %v8906_v36  ;;  %v8933_v36 = vld [vmem:[%s12809_s1 + $0x340] sm:$0xff] }
  0x4e   :  { %2882 = vmatpush.bf16.msra.mxu0 %v8897_v37  ;;  %v162_v37 = vpack.c.bf16 %v9919_v2, %v9919_v2  ;;  %v8957_v2 = vld [vmem:[%s12809_s1 + $0x400] sm:$0xff] }
  0x4f   :  { %2908 = vmatpush.bf16.msra.mxu2 %v8913_v38  ;;  %v164_v38 = vpack.c.bf16 %v9923_v4, %v9923_v4  ;;  %v8981_v4 = vld [vmem:[%s12809_s1 + $0x4c0] sm:$0xff] }
  0x50   :  { %2921 = vmatpush.bf16.msra.mxu3 %v8921_v39  ;;  %v8972_v39 = vld [vmem:[%s12809_s1 + $0x478] sm:$0xff] }
  0x51   :  { %2895 = vmatpush.bf16.msra.mxu1 %v8905_v40  ;;  %v165_v40 = vpack.c.bf16 %v9933_v8, %v9933_v8  ;;  %v9012_v8 = vld [vmem:[%s12809_s1 + $0x5b8] sm:$0xff] }
  0x52   :  { %2883 = vmatpush.bf16.msra.mxu0 %v8896_v41  ;;  %v163_v41 = vpack.c.bf16 %v9925_v5, %v9925_v5  ;;  %v79_v5 = vld.sshfl [vmem:[#allocation1] sm:$0xff pattern:$0x73625140] }
  0x53   :  { %2909 = vmatpush.bf16.msra.mxu2 %v8912_v42  ;;  %v8963_v42 = vld [vmem:[%s12809_s1 + $0x430] sm:$0xff] }
  0x54   :  { %2922 = vmatpush.bf16.msra.mxu3 %v8920_v43  ;;  %v8979_v43 = vld [vmem:[%s12809_s1 + $0x4b0] sm:$0xff] }
  0x55   :  { %2896 = vmatpush.bf16.msra.mxu1 %v8904_v44  ;;  %v8987_v44 = vld [vmem:[%s12809_s1 + $0x4f0] sm:$0xff] }
  0x56   :  { %2884 = vmatpush.bf16.msra.mxu0 %v8895_v45  ;;  %v8971_v45 = vld [vmem:[%s12809_s1 + $0x470] sm:$0xff] }
  0x57   :  { %2910 = vmatpush.bf16.msra.mxu2 %v8911_v46  ;;  %v8962_v46 = vld [vmem:[%s12809_s1 + $0x428] sm:$0xff] }
  0x58   :  { %2923 = vmatpush.bf16.msra.mxu3 %v8919_v47  ;;  %v8978_v47 = vld [vmem:[%s12809_s1 + $0x4a8] sm:$0xff] }
  0x59   :  { %2897 = vmatpush.bf16.msra.mxu1 %v8903_v48  ;;  %v8986_v48 = vld [vmem:[%s12809_s1 + $0x4e8] sm:$0xff] }
  0x5a   :  { %2885 = vmatpush.bf16.msra.mxu0 %v8894_v49  ;;  %v8970_v49 = vld [vmem:[%s12809_s1 + $0x468] sm:$0xff] }
  0x5b   :  { %2911 = vmatpush.bf16.msra.mxu2 %v8910_v50  ;;  %v8961_v50 = vld [vmem:[%s12809_s1 + $0x420] sm:$0xff] }
  0x5c   :  { %2924 = vmatpush.bf16.msra.mxu3 %v8918_v51  ;;  %v8977_v51 = vld [vmem:[%s12809_s1 + $0x4a0] sm:$0xff] }
  0x5d   :  { %2898 = vmatpush.bf16.msra.mxu1 %v8902_v52  ;;  %v8985_v52 = vld [vmem:[%s12809_s1 + $0x4e0] sm:$0xff] }
  0x5e   :  { %2886 = vmatpush.bf16.msra.mxu0 %v8893_v53  ;;  %v8969_v53 = vld [vmem:[%s12809_s1 + $0x460] sm:$0xff] }
  0x5f   :  { %2912 = vmatpush.bf16.msra.mxu2 %v8909_v54  ;;  %v8960_v54 = vld [vmem:[%s12809_s1 + $0x418] sm:$0xff] }
  0x60   :  { %2925 = vmatpush.bf16.msra.mxu3 %v8917_v55  ;;  %v8976_v55 = vld [vmem:[%s12809_s1 + $0x498] sm:$0xff] }
  0x61   :  { %2899 = vmatpush.bf16.msra.mxu1 %v8901_v59  ;;  %2887 = vmatmul.bf16.vlgmr.msra.gmra.mxu0 %v158_v60  ;;  %v8975_v59 = vld [vmem:[%s12809_s1 + $0x490] sm:$0xff] }
  0x62   :  { %2931 = vmatpush.bf16.msrb.mxu0 %v8932_v56  ;;  %2913 = vmatmul.bf16.vlgmr.msra.gmra.mxu2 %v160_v61  ;;  %v8984_v56 = vld [vmem:[%s12809_s1 + $0x4d8] sm:$0xff]  ;;  %v8983_v60 = vld [vmem:[%s12809_s1 + $0x4d0] sm:$0xff] }
  0x63   :  { %2957 = vmatpush.bf16.msrb.mxu2 %v8948_v57  ;;  %2926 = vmatmul.bf16.vlgmr.msra.gmra.mxu3 %v161_v63  ;;  %v8968_v57 = vld [vmem:[%s12809_s1 + $0x458] sm:$0xff]  ;;  %v8967_v61 = vld [vmem:[%s12809_s1 + $0x450] sm:$0xff]  ;;  %v8974_v63 = vld [vmem:[%s12809_s1 + $0x488] sm:$0xff] }
  0x64   :  { %2970 = vmatpush.bf16.msrb.mxu3 %v8956_v58  ;;  %2900 = vmatmul.bf16.vlgmr.msra.gmra.mxu1 %v159_v3  ;;  %v8959_v58 = vld [vmem:[%s12809_s1 + $0x410] sm:$0xff]  ;;  %v8973_v3 = vld [vmem:[%s12809_s1 + $0x480] sm:$0xff] }
  0x65   :  { %2944 = vmatpush.bf16.msrb.mxu1 %v8940_v62  ;;  %v8958_v62 = vld [vmem:[%s12809_s1 + $0x408] sm:$0xff] }
  0x66   :  { %2932 = vmatpush.bf16.msrb.mxu0 %v8931_v0  ;;  %v8982_v0 = vld [vmem:[%s12809_s1 + $0x4c8] sm:$0xff] }
  0x67   :  { %2958 = vmatpush.bf16.msrb.mxu2 %v8947_v1  ;;  %v8966_v1 = vld [vmem:[%s12809_s1 + $0x448] sm:$0xff] }
  0x68   :  { %2971 = vmatpush.bf16.msrb.mxu3 %v8955_v6  ;;  %v81_v6 = vld.sshfl [vmem:[#allocation1 + $0x10] sm:$0xff pattern:$0x73625140] }
  0x69   :  { %2945 = vmatpush.bf16.msrb.mxu1 %v8939_v9  ;;  %v82_v9 = vld.sshfl [vmem:[#allocation1 + $0x18] sm:$0xff pattern:$0x73625140] }
  0x6a   :  { %2933 = vmatpush.bf16.msrb.mxu0 %v8930_v10  ;;  %v9020_v10 = vld [vmem:[%s12809_s1 + $0x5f8] sm:$0xff] }
  0x6b   :  { %2959 = vmatpush.bf16.msrb.mxu2 %v8946_v11  ;;  %v8965_v11 = vld [vmem:[%s12809_s1 + $0x440] sm:$0xff] }
  0x6c   :  { %2972 = vmatpush.bf16.msrb.mxu3 %v8954_v12  ;;  %v80_v12 = vld.sshfl [vmem:[#allocation1 + $0x8] sm:$0xff pattern:$0x73625140] }
  0x6d   :  { %2946 = vmatpush.bf16.msrb.mxu1 %v8938_v13  ;;  %v166_v13 = vpack.c.bf16 %v79_v5, %v79_v5  ;;  %v9036_v5 = vld [vmem:[%s12809_s1 + $0x678] sm:$0xff] }
  0x6e   :  { %2934 = vmatpush.bf16.msrb.mxu0 %v8929_v14  ;;  %v168_v14 = vpack.c.bf16 %v81_v6, %v81_v6 }
  0x6f   :  { %2960 = vmatpush.bf16.msrb.mxu2 %v8945_v15  ;;  %v9004_v15 = vld [vmem:[%s12809_s1 + $0x578] sm:$0xff] }
  0x70   :  { %2973 = vmatpush.bf16.msrb.mxu3 %v8953_v16  ;;  %v169_v16 = vpack.c.bf16 %v82_v9, %v82_v9  ;;  %v9043_v9 = vld [vmem:[%s12809_s1 + $0x6b0] sm:$0xff] }
  0x71   :  { %2947 = vmatpush.bf16.msrb.mxu1 %v8937_v17  ;;  %v167_v17 = vpack.c.bf16 %v80_v12, %v80_v12  ;;  %v9026_v12 = vld [vmem:[%s12809_s1 + $0x628] sm:$0xff] }
  0x72   :  { %2935 = vmatpush.bf16.msrb.mxu0 %v8928_v18  ;;  %v8995_v18 = vld [vmem:[%s12809_s1 + $0x530] sm:$0xff] }
  0x73   :  { %2961 = vmatpush.bf16.msrb.mxu2 %v8944_v19  ;;  %v9011_v19 = vld [vmem:[%s12809_s1 + $0x5b0] sm:$0xff] }
  0x74   :  { %2974 = vmatpush.bf16.msrb.mxu3 %v8952_v20  ;;  %v9019_v20 = vld [vmem:[%s12809_s1 + $0x5f0] sm:$0xff] }
  0x75   :  { %2948 = vmatpush.bf16.msrb.mxu1 %v8936_v21  ;;  %v9003_v21 = vld [vmem:[%s12809_s1 + $0x570] sm:$0xff] }
  0x76   :  { %2936 = vmatpush.bf16.msrb.mxu0 %v8927_v22  ;;  %v8994_v22 = vld [vmem:[%s12809_s1 + $0x528] sm:$0xff] }
  0x77   :  { %2962 = vmatpush.bf16.msrb.mxu2 %v8943_v23  ;;  %v9010_v23 = vld [vmem:[%s12809_s1 + $0x5a8] sm:$0xff] }
  0x78   :  { %2975 = vmatpush.bf16.msrb.mxu3 %v8951_v24  ;;  %v9018_v24 = vld [vmem:[%s12809_s1 + $0x5e8] sm:$0xff] }
  0x79   :  { %2949 = vmatpush.bf16.msrb.mxu1 %v8935_v25  ;;  %v9485_v25 = vld [vmem:[%s12810_s2] ss:$0 sm:$0xff]  ;;  %s9517_s2 = smov [#allocation2]  }
  0x7a   :  { %2937 = vmatpush.bf16.msrb.mxu0 %v8926_v26  ;;  %v9002_v26 = vld [vmem:[%s12809_s1 + $0x568] sm:$0xff]  ;;  %s6195_s16 = sshll.u32 %s9517_s2, 4  ;;  %s6196_s16 = int_to_ptr.vmem [resolvable:$true] %s6195_s16 }
  0x7b   :  { %2963 = vmatpush.bf16.msrb.mxu2 %v8942_v27  ;;  %v8993_v27 = vld [vmem:[%s12809_s1 + $0x520] sm:$0xff] }
  0x7c   :  { %2976 = vmatpush.bf16.msrb.mxu3 %v8950_v28  ;;  %v9009_v28 = vld [vmem:[%s12809_s1 + $0x5a0] sm:$0xff] }
  0x7d   :  { %2950 = vmatpush.bf16.msrb.mxu1 %v8934_v29  ;;  %v9017_v29 = vld [vmem:[%s12809_s1 + $0x5e0] sm:$0xff] }
  0x7e   :  { %2938 = vmatpush.bf16.msrb.mxu0 %v8925_v30 }
  0x7f   :  { %2964 = vmatpush.bf16.msrb.mxu2 %v8941_v31 }
  0x80   :  { %2977 = vmatpush.bf16.msrb.mxu3 %v8949_v33  ;;  %v8992_v33 = vld [vmem:[%s12809_s1 + $0x518] sm:$0xff] }
  0x81   :  { %2951 = vmatpush.bf16.msrb.mxu1 %v8933_v36  ;;  %2939 = vmatmul.bf16.vlgmr.msrb.gmra.mxu0 %v162_v37  ;;  %v9016_v36 = vld [vmem:[%s12809_s1 + $0x5d8] sm:$0xff] }
  0x82   :  { %2983 = vmatpush.bf16.msra.mxu0 %v8964_v32  ;;  %2965 = vmatmul.bf16.vlgmr.msrb.gmra.mxu2 %v164_v38  ;;  %v9001_v32 = vld [vmem:[%s12809_s1 + $0x560] sm:$0xff] }
  0x83   :  { %3009 = vmatpush.bf16.msra.mxu2 %v8980_v34  ;;  %2978 = vmatmul.bf16.vlgmr.msrb.gmra.mxu3 %v165_v40 }
  0x84   :  { %3022 = vmatpush.bf16.msra.mxu3 %v8988_v35  ;;  %2952 = vmatmul.bf16.vlgmr.msrb.gmra.mxu1 %v163_v41  ;;  %v9008_v35 = vld [vmem:[%s12809_s1 + $0x598] sm:$0xff]  ;;  %v8991_v41 = vld [vmem:[%s12809_s1 + $0x510] sm:$0xff] }
  0x85   :  { %2996 = vmatpush.bf16.msra.mxu1 %v8972_v39  ;;  %v9000_v39 = vld [vmem:[%s12809_s1 + $0x558] sm:$0xff] }
  0x86   :  { %2984 = vmatpush.bf16.msra.mxu0 %v8963_v42 }
  0x87   :  { %3010 = vmatpush.bf16.msra.mxu2 %v8979_v43  ;;  %v9007_v43 = vld [vmem:[%s12809_s1 + $0x590] sm:$0xff] }
  0x88   :  { %3023 = vmatpush.bf16.msra.mxu3 %v8987_v44  ;;  %v9015_v44 = vld [vmem:[%s12809_s1 + $0x5d0] sm:$0xff] }
  0x89   :  { %2997 = vmatpush.bf16.msra.mxu1 %v8971_v45 }
  0x8a   :  { %2985 = vmatpush.bf16.msra.mxu0 %v8962_v46 }
  0x8b   :  { %3011 = vmatpush.bf16.msra.mxu2 %v8978_v47  ;;  %v8999_v47 = vld [vmem:[%s12809_s1 + $0x550] sm:$0xff] }
  0x8c   :  { %3024 = vmatpush.bf16.msra.mxu3 %v8986_v48  ;;  %v8990_v48 = vld [vmem:[%s12809_s1 + $0x508] sm:$0xff] }
  0x8d   :  { %2998 = vmatpush.bf16.msra.mxu1 %v8970_v49 }
  0x8e   :  { %2986 = vmatpush.bf16.msra.mxu0 %v8961_v50  ;;  %v40_v50 = vld [vmem:[%s12808_s0 + $0x30] sm:$0xff] }
  0x8f   :  { %3012 = vmatpush.bf16.msra.mxu2 %v8977_v51  ;;  %v9006_v51 = vld [vmem:[%s12809_s1 + $0x588] sm:$0xff]  ;;  %87 = vst [vmem:[#allocation1] ss:$4 sm:$0xff] %v40_v50  ;;  %v9060_v50 = vld [vmem:[%s12809_s1 + $0x738] sm:$0xff] }
  0x90   :  { %3025 = vmatpush.bf16.msra.mxu3 %v8985_v52  ;;  %v9014_v52 = vld [vmem:[%s12809_s1 + $0x5c8] sm:$0xff] }
  0x91   :  { %2999 = vmatpush.bf16.msra.mxu1 %v8969_v53 }
  0x92   :  { %2987 = vmatpush.bf16.msra.mxu0 %v8960_v54  ;;  %v8998_v54 = vld [vmem:[%s12809_s1 + $0x548] sm:$0xff] }
  0x93   :  { %3013 = vmatpush.bf16.msra.mxu2 %v8976_v55  ;;  %v8989_v55 = vld [vmem:[%s12809_s1 + $0x500] sm:$0xff] }
  0x94   :  { %3026 = vmatpush.bf16.msra.mxu3 %v8984_v56  ;;  %v9005_v56 = vld [vmem:[%s12809_s1 + $0x580] sm:$0xff] }
  0x95   :  { %3000 = vmatpush.bf16.msra.mxu1 %v8968_v57  ;;  %v9013_v57 = vld [vmem:[%s12809_s1 + $0x5c0] sm:$0xff] }
  0x96   :  { %2988 = vmatpush.bf16.msra.mxu0 %v8959_v58 }
  0x97   :  { %3014 = vmatpush.bf16.msra.mxu2 %v8975_v59  ;;  %v83_v59 = vld.sshfl [vmem:[#allocation1 + $0x20] sm:$0xff pattern:$0x73625140] }
  0x98   :  { %3027 = vmatpush.bf16.msra.mxu3 %v8983_v60  ;;  %v85_v60 = vld.sshfl [vmem:[#allocation1 + $0x30] sm:$0xff pattern:$0x73625140] }
  0x99   :  { %3001 = vmatpush.bf16.msra.mxu1 %v8967_v61  ;;  %v9028_v61 = vld [vmem:[%s12809_s1 + $0x638] sm:$0xff] }
  0x9a   :  { %2989 = vmatpush.bf16.msra.mxu0 %v8958_v62  ;;  %v9044_v62 = vld [vmem:[%s12809_s1 + $0x6b8] sm:$0xff] }
  0x9b   :  { %3015 = vmatpush.bf16.msra.mxu2 %v8974_v63  ;;  %v86_v63 = vld.sshfl [vmem:[#allocation1 + $0x38] sm:$0xff pattern:$0x73625140] }
  0x9c   :  { %3028 = vmatpush.bf16.msra.mxu3 %v8982_v0  ;;  %v9052_v0 = vld [vmem:[%s12809_s1 + $0x6f8] sm:$0xff]  ;;  %v173_v6 = vpack.c.bf16 %v86_v63, %v86_v63  ;;  %v9083_v63 = vld [vmem:[%s12809_s1 + $0x7f0] sm:$0xff] }
  0x9d   :  { %3002 = vmatpush.bf16.msra.mxu1 %v8966_v1  ;;  %v8997_v1 = vld [vmem:[%s12809_s1 + $0x540] sm:$0xff] }
  0x9e   :  { %2990 = vmatpush.bf16.msra.mxu0 %v8957_v2  ;;  %v2784_v30 = vpop.f32.mrf.mxu0  ;;  %v84_v2 = vld.sshfl [vmem:[#allocation1 + $0x28] sm:$0xff pattern:$0x73625140] }
  0x9f   :  { %3016 = vmatpush.bf16.msra.mxu2 %v8973_v3  ;;  %v2785_v31 = vadd.f32 %v9485_v25, %v2784_v30  ;;  %v170_v3 = vpack.c.bf16 %v83_v59, %v83_v59  ;;  %v9040_v25 = vld [vmem:[%s12809_s1 + $0x698] sm:$0xff] }
  0xa0   :  { %3029 = vmatpush.bf16.msra.mxu3 %v8981_v4  ;;  %v172_v4 = vpack.c.bf16 %v85_v60, %v85_v60 }
  0xa1   :  { %3003 = vmatpush.bf16.msra.mxu1 %v8965_v11  ;;  %2991 = vmatmul.bf16.vlgmr.msra.gmra.mxu0 %v166_v13  ;;  %v2797_v34 = vpop.f32.mrf.mxu1  ;;  %v9035_v11 = vld [vmem:[%s12809_s1 + $0x670] sm:$0xff]  ;;  %v9042_v13 = vld [vmem:[%s12809_s1 + $0x6a8] sm:$0xff] }
  0xa2   :  { %3035 = vmatpush.bf16.msrb.mxu0 %v8996_v7  ;;  %3017 = vmatmul.bf16.vlgmr.msra.gmra.mxu2 %v168_v14  ;;  %v2798_v37 = vadd.f32 %v2797_v34, %v2785_v31  ;;  %v171_v7 = vpack.c.bf16 %v84_v2, %v84_v2  ;;  %v9050_v14 = vld [vmem:[%s12809_s1 + $0x6e8] sm:$0xff]  ;;  %v9023_v31 = vld [vmem:[%s12809_s1 + $0x610] sm:$0xff] }
  0xa3   :  { %3061 = vmatpush.bf16.msrb.mxu2 %v9012_v8  ;;  %3030 = vmatmul.bf16.vlgmr.msra.gmra.mxu3 %v169_v16  ;;  %v9027_v8 = vld [vmem:[%s12809_s1 + $0x630] sm:$0xff]  ;;  %v9025_v16 = vld [vmem:[%s12809_s1 + $0x620] sm:$0xff]  ;;  %v9074_v2 = vld [vmem:[%s12809_s1 + $0x7a8] sm:$0xff] }
  0xa4   :  { %3074 = vmatpush.bf16.msrb.mxu3 %v9020_v10  ;;  %3004 = vmatmul.bf16.vlgmr.msra.gmra.mxu1 %v167_v17  ;;  %v9051_v10 = vld [vmem:[%s12809_s1 + $0x6f0] sm:$0xff]  ;;  %v9041_v17 = vld [vmem:[%s12809_s1 + $0x6a0] sm:$0xff] }
  0xa5   :  { %3048 = vmatpush.bf16.msrb.mxu1 %v9004_v15  ;;  %v2810_v38 = vpop.f32.mrf.mxu2  ;;  %v9034_v15 = vld [vmem:[%s12809_s1 + $0x668] sm:$0xff] }
  0xa6   :  { %3036 = vmatpush.bf16.msrb.mxu0 %v8995_v18  ;;  %v2811_v40 = vadd.f32 %v2810_v38, %v2798_v37  ;;  %v2823_v42 = vpop.f32.mrf.mxu3  ;;  %v2786_v46 = vpop.f32.mrf.mxu0  ;;  %v9049_v18 = vld [vmem:[%s12809_s1 + $0x6e0] sm:$0xff]  ;;  %v9022_v38 = vld [vmem:[%s12809_s1 + $0x608] sm:$0xff] }
  0xa7   :  { %3062 = vmatpush.bf16.msrb.mxu2 %v9011_v19  ;;  %v9037_v46 = vld [vmem:[%s12809_s1 + $0x680] sm:$0xff] }
  0xa8   :  { %3075 = vmatpush.bf16.msrb.mxu3 %v9019_v20  ;;  %v10186_v45 = vadd.f32 %v2823_v42, %v2811_v40  ;;  %v9038_v40 = vld [vmem:[%s12809_s1 + $0x688] sm:$0xff] }
  0xa9   :  { %3049 = vmatpush.bf16.msrb.mxu1 %v9003_v21  ;;  %v2799_v49 = vpop.f32.mrf.mxu1  ;;  %v9033_v21 = vld [vmem:[%s12809_s1 + $0x660] sm:$0xff] }
  0xaa   :  { %3037 = vmatpush.bf16.msrb.mxu0 %v8994_v22  ;;  %v91_v49 = vld.sshfl [vmem:[#allocation1 + $0x10] sm:$0xff pattern:$0x73625140] }
  0xab   :  { %3063 = vmatpush.bf16.msrb.mxu2 %v9010_v23  ;;  %v9024_v23 = vld [vmem:[%s12809_s1 + $0x618] sm:$0xff] }
  0xac   :  { %3076 = vmatpush.bf16.msrb.mxu3 %v9018_v24 }
  0xad   :  { %3050 = vmatpush.bf16.msrb.mxu1 %v9002_v26  ;;  %v2812_v53 = vpop.f32.mrf.mxu2  ;;  %v9048_v26 = vld [vmem:[%s12809_s1 + $0x6d8] sm:$0xff] }
  0xae   :  { %3038 = vmatpush.bf16.msrb.mxu0 %v8993_v27  ;;  %v2825_v58 = vpop.f32.mrf.mxu3  ;;  %v9084_v53 = vld [vmem:[%s12809_s1 + $0x7f8] sm:$0xff] }
  0xaf   :  { %3064 = vmatpush.bf16.msrb.mxu2 %v9009_v28  ;;  %v9032_v28 = vld [vmem:[%s12809_s1 + $0x658] sm:$0xff] }
  0xb0   :  { %3077 = vmatpush.bf16.msrb.mxu3 %v9017_v29  ;;  %v9068_v58 = vld [vmem:[%s12809_s1 + $0x778] sm:$0xff] }
  0xb1   :  { %3051 = vmatpush.bf16.msrb.mxu1 %v9001_v32  ;;  %v9039_v32 = vld [vmem:[%s12809_s1 + $0x690] sm:$0xff] }
  0xb2   :  { %3039 = vmatpush.bf16.msrb.mxu0 %v8992_v33  ;;  %v9047_v33 = vld [vmem:[%s12809_s1 + $0x6d0] sm:$0xff] }
  0xb3   :  { %3065 = vmatpush.bf16.msrb.mxu2 %v9008_v35 }
  0xb4   :  { %3078 = vmatpush.bf16.msrb.mxu3 %v9016_v36  ;;  %v9031_v36 = vld [vmem:[%s12809_s1 + $0x650] sm:$0xff] }
  0xb5   :  { %3052 = vmatpush.bf16.msrb.mxu1 %v9000_v39  ;;  %v41_v39 = vld [vmem:[%s12808_s0 + $0x38] sm:$0xff] }
  0xb6   :  { %3040 = vmatpush.bf16.msrb.mxu0 %v8991_v41  ;;  %v9046_v41 = vld [vmem:[%s12809_s1 + $0x6c8] sm:$0xff]  ;;  %88 = vst [vmem:[#allocation1 + $0x20] ss:$4 sm:$0xff] %v41_v39  ;;  %v9092_v39 = vld [vmem:[%s12809_s1 + $0x838] sm:$0xff] }
  0xb7   :  { %3066 = vmatpush.bf16.msrb.mxu2 %v9007_v43  ;;  %v9030_v43 = vld [vmem:[%s12809_s1 + $0x648] sm:$0xff] }
  0xb8   :  { %3079 = vmatpush.bf16.msrb.mxu3 %v9015_v44 }
  0xb9   :  { %3053 = vmatpush.bf16.msrb.mxu1 %v8999_v47  ;;  %v9045_v47 = vld [vmem:[%s12809_s1 + $0x6c0] sm:$0xff] }
  0xba   :  { %3041 = vmatpush.bf16.msrb.mxu0 %v8990_v48  ;;  %v89_v48 = vld.sshfl [vmem:[#allocation1] sm:$0xff pattern:$0x73625140] }
  0xbb   :  { %3067 = vmatpush.bf16.msrb.mxu2 %v9006_v51  ;;  %v9076_v51 = vld [vmem:[%s12809_s1 + $0x7b8] sm:$0xff] }
  0xbc   :  { %3080 = vmatpush.bf16.msrb.mxu3 %v9014_v52  ;;  %v92_v52 = vld.sshfl [vmem:[#allocation1 + $0x18] sm:$0xff pattern:$0x73625140] }
  0xbd   :  { %3054 = vmatpush.bf16.msrb.mxu1 %v8998_v54  ;;  %v9029_v54 = vld [vmem:[%s12809_s1 + $0x640] sm:$0xff]  ;;  %v177_v59 = vpack.c.bf16 %v92_v52, %v92_v52  ;;  %v9115_v52 = vld [vmem:[%s12809_s1 + $0x8f0] sm:$0xff] }
  0xbe   :  { %3042 = vmatpush.bf16.msrb.mxu0 %v8989_v55  ;;  %v2836_v19 = vpop.f32.mrf.mxu0  ;;  %v90_v55 = vld.sshfl [vmem:[#allocation1 + $0x8] sm:$0xff pattern:$0x73625140] }
  0xbf   :  { %3068 = vmatpush.bf16.msrb.mxu2 %v9005_v56  ;;  %v2837_v20 = vadd.f32 %v2836_v19, %v10186_v45  ;;  %v9021_v45 = vld [vmem:[%s12809_s1 + $0x600] sm:$0xff]  ;;  %v174_v56 = vpack.c.bf16 %v89_v48, %v89_v48  ;;  %v175_v60 = vpack.c.bf16 %v90_v55, %v90_v55  ;;  %v9106_v55 = vld [vmem:[%s12809_s1 + $0x8a8] sm:$0xff] }
  0xc0   :  { %3081 = vmatpush.bf16.msrb.mxu3 %v9013_v57  ;;  %v176_v57 = vpack.c.bf16 %v91_v49, %v91_v49 }
  0xc1   :  { %3055 = vmatpush.bf16.msrb.mxu1 %v8997_v1  ;;  %3043 = vmatmul.bf16.vlgmr.msrb.gmra.mxu0 %v170_v3  ;;  %v2849_v22 = vpop.f32.mrf.mxu1  ;;  %v9058_v1 = vld [vmem:[%s12809_s1 + $0x728] sm:$0xff] }
  0xc2   :  { %3087 = vmatpush.bf16.msra.mxu0 %v9028_v61  ;;  %3069 = vmatmul.bf16.vlgmr.msrb.gmra.mxu2 %v172_v4  ;;  %v2850_v24 = vadd.f32 %v2849_v22, %v2837_v20  ;;  %v9059_v61 = vld [vmem:[%s12809_s1 + $0x730] sm:$0xff]  ;;  %v9082_v3 = vld [vmem:[%s12809_s1 + $0x7e8] sm:$0xff] }
  0xc3   :  { %3113 = vmatpush.bf16.msra.mxu2 %v9044_v62  ;;  %3082 = vmatmul.bf16.vlgmr.msrb.gmra.mxu3 %v173_v6  ;;  %v9075_v62 = vld [vmem:[%s12809_s1 + $0x7b0] sm:$0xff]  ;;  %v9066_v4 = vld [vmem:[%s12809_s1 + $0x768] sm:$0xff] }
  0xc4   :  { %3126 = vmatpush.bf16.msra.mxu3 %v9052_v0  ;;  %3056 = vmatmul.bf16.vlgmr.msrb.gmra.mxu1 %v171_v7  ;;  %v9067_v0 = vld [vmem:[%s12809_s1 + $0x770] sm:$0xff]  ;;  %v9057_v7 = vld [vmem:[%s12809_s1 + $0x720] sm:$0xff] }
  0xc5   :  { %3100 = vmatpush.bf16.msra.mxu1 %v9036_v5  ;;  %v2862_v27 = vpop.f32.mrf.mxu2 }
  0xc6   :  { %3088 = vmatpush.bf16.msra.mxu0 %v9027_v8  ;;  %v2863_v29 = vadd.f32 %v2862_v27, %v2850_v24  ;;  %v2875_v30 = vpop.f32.mrf.mxu3  ;;  %v2838_v35 = vpop.f32.mrf.mxu0  ;;  %v9073_v8 = vld [vmem:[%s12809_s1 + $0x7a0] sm:$0xff]  ;;  %v9079_v24 = vld [vmem:[%s12809_s1 + $0x7d0] sm:$0xff]  ;;  %v9054_v27 = vld [vmem:[%s12809_s1 + $0x708] sm:$0xff] }
  0xc7   :  { %3114 = vmatpush.bf16.msra.mxu2 %v9043_v9  ;;  %v9081_v9 = vld [vmem:[%s12809_s1 + $0x7e0] sm:$0xff] }
  0xc8   :  { %3127 = vmatpush.bf16.msra.mxu3 %v9051_v10  ;;  %v10288_v34 = vadd.f32 %v2875_v30, %v2863_v29  ;;  %v9070_v29 = vld [vmem:[%s12809_s1 + $0x788] sm:$0xff]  ;;  %v9069_v35 = vld [vmem:[%s12809_s1 + $0x780] sm:$0xff] }
  0xc9   :  { %3101 = vmatpush.bf16.msra.mxu1 %v9035_v11  ;;  %v2851_v37 = vpop.f32.mrf.mxu1  ;;  %v9078_v30 = vld [vmem:[%s12809_s1 + $0x7c8] sm:$0xff] }
  0xca   :  { %3089 = vmatpush.bf16.msra.mxu0 %v9026_v12  ;;  %v9065_v12 = vld [vmem:[%s12809_s1 + $0x760] sm:$0xff] }
  0xcb   :  { %3115 = vmatpush.bf16.msra.mxu2 %v9042_v13  ;;  %v9056_v13 = vld [vmem:[%s12809_s1 + $0x718] sm:$0xff]  ;;  %v93_v37 = vld.sshfl [vmem:[#allocation1 + $0x20] sm:$0xff pattern:$0x73625140] }
  0xcc   :  { %3128 = vmatpush.bf16.msra.mxu3 %v9050_v14  ;;  %v9072_v14 = vld [vmem:[%s12809_s1 + $0x798] sm:$0xff] }
  0xcd   :  { %3102 = vmatpush.bf16.msra.mxu1 %v9034_v15  ;;  %v2864_v42 = vpop.f32.mrf.mxu2  ;;  %v9080_v15 = vld [vmem:[%s12809_s1 + $0x7d8] sm:$0xff] }
  0xce   :  { %3090 = vmatpush.bf16.msra.mxu0 %v9025_v16  ;;  %v2877_v44 = vpop.f32.mrf.mxu3  ;;  %v9116_v42 = vld [vmem:[%s12809_s1 + $0x8f8] sm:$0xff] }
  0xcf   :  { %3116 = vmatpush.bf16.msra.mxu2 %v9041_v17  ;;  %v94_v44 = vld.sshfl [vmem:[#allocation1 + $0x28] sm:$0xff pattern:$0x73625140] }
  0xd0   :  { %3129 = vmatpush.bf16.msra.mxu3 %v9049_v18  ;;  %v9064_v18 = vld [vmem:[%s12809_s1 + $0x758] sm:$0xff]  ;;  %v179_v49 = vpack.c.bf16 %v94_v44, %v94_v44  ;;  %v9138_v44 = vld [vmem:[%s12809_s1 + $0x9a8] sm:$0xff] }
  0xd1   :  { %3103 = vmatpush.bf16.msra.mxu1 %v9033_v21  ;;  %v9055_v21 = vld [vmem:[%s12809_s1 + $0x710] sm:$0xff] }
  0xd2   :  { %3091 = vmatpush.bf16.msra.mxu0 %v9024_v23  ;;  %v9071_v23 = vld [vmem:[%s12809_s1 + $0x790] sm:$0xff] }
  0xd3   :  { %3117 = vmatpush.bf16.msra.mxu2 %v9040_v25 }
  0xd4   :  { %3130 = vmatpush.bf16.msra.mxu3 %v9048_v26  ;;  %v9063_v26 = vld [vmem:[%s12809_s1 + $0x750] sm:$0xff] }
  0xd5   :  { %3104 = vmatpush.bf16.msra.mxu1 %v9032_v28  ;;  %v42_v28 = vld [vmem:[%s12808_s0 + $0x40] sm:$0xff] }
  0xd6   :  { %3092 = vmatpush.bf16.msra.mxu0 %v9023_v31  ;;  %97 = vst [vmem:[#allocation1] ss:$4 sm:$0xff] %v42_v28  ;;  %v9124_v28 = vld [vmem:[%s12809_s1 + $0x938] sm:$0xff] }
  0xd7   :  { %3118 = vmatpush.bf16.msra.mxu2 %v9039_v32  ;;  %v9062_v32 = vld [vmem:[%s12809_s1 + $0x748] sm:$0xff] }
  0xd8   :  { %3131 = vmatpush.bf16.msra.mxu3 %v9047_v33 }
  0xd9   :  { %3105 = vmatpush.bf16.msra.mxu1 %v9031_v36  ;;  %v9077_v36 = vld [vmem:[%s12809_s1 + $0x7c0] sm:$0xff] }
  0xda   :  { %3093 = vmatpush.bf16.msra.mxu0 %v9022_v38  ;;  %v95_v38 = vld.sshfl [vmem:[#allocation1 + $0x30] sm:$0xff pattern:$0x73625140] }
  0xdb   :  { %3119 = vmatpush.bf16.msra.mxu2 %v9038_v40  ;;  %v9108_v40 = vld [vmem:[%s12809_s1 + $0x8b8] sm:$0xff] }
  0xdc   :  { %3132 = vmatpush.bf16.msra.mxu3 %v9046_v41  ;;  %v96_v41 = vld.sshfl [vmem:[#allocation1 + $0x38] sm:$0xff pattern:$0x73625140] }
  0xdd   :  { %3106 = vmatpush.bf16.msra.mxu1 %v9030_v43  ;;  %v9061_v43 = vld [vmem:[%s12809_s1 + $0x740] sm:$0xff]  ;;  %v181_v48 = vpack.c.bf16 %v96_v41, %v96_v41  ;;  %v9147_v41 = vld [vmem:[%s12809_s1 + $0x9f0] sm:$0xff] }
  0xde   :  { %3094 = vmatpush.bf16.msra.mxu0 %v9021_v45  ;;  %v2888_v5 = vpop.f32.mrf.mxu0  ;;  %v178_v45 = vpack.c.bf16 %v93_v37, %v93_v37 }
  0xdf   :  { %3120 = vmatpush.bf16.msra.mxu2 %v9037_v46  ;;  %v2889_v6 = vadd.f32 %v2888_v5, %v10288_v34  ;;  %v9053_v34 = vld [vmem:[%s12809_s1 + $0x700] sm:$0xff]  ;;  %v180_v46 = vpack.c.bf16 %v95_v38, %v95_v38 }
  0xe0   :  { %3133 = vmatpush.bf16.msra.mxu3 %v9045_v47  ;;  %v9100_v47 = vld [vmem:[%s12809_s1 + $0x878] sm:$0xff] }
  0xe1   :  { %3107 = vmatpush.bf16.msra.mxu1 %v9029_v54  ;;  %3095 = vmatmul.bf16.vlgmr.msra.gmra.mxu0 %v174_v56  ;;  %v2901_v10 = vpop.f32.mrf.mxu1  ;;  %v9090_v54 = vld [vmem:[%s12809_s1 + $0x828] sm:$0xff] }
  0xe2   :  { %3139 = vmatpush.bf16.msrb.mxu0 %v9060_v50  ;;  %3121 = vmatmul.bf16.vlgmr.msra.gmra.mxu2 %v176_v57  ;;  %v2902_v11 = vadd.f32 %v2901_v10, %v2889_v6  ;;  %v9091_v50 = vld [vmem:[%s12809_s1 + $0x830] sm:$0xff]  ;;  %v9114_v56 = vld [vmem:[%s12809_s1 + $0x8e8] sm:$0xff] }
  0xe3   :  { %3165 = vmatpush.bf16.msrb.mxu2 %v9076_v51  ;;  %3134 = vmatmul.bf16.vlgmr.msra.gmra.mxu3 %v177_v59  ;;  %v9107_v51 = vld [vmem:[%s12809_s1 + $0x8b0] sm:$0xff]  ;;  %v9098_v57 = vld [vmem:[%s12809_s1 + $0x868] sm:$0xff] }
  0xe4   :  { %3178 = vmatpush.bf16.msrb.mxu3 %v9084_v53  ;;  %3108 = vmatmul.bf16.vlgmr.msra.gmra.mxu1 %v175_v60  ;;  %v9099_v53 = vld [vmem:[%s12809_s1 + $0x870] sm:$0xff]  ;;  %v9089_v60 = vld [vmem:[%s12809_s1 + $0x820] sm:$0xff] }
  0xe5   :  { %3152 = vmatpush.bf16.msrb.mxu1 %v9068_v58  ;;  %v2914_v16 = vpop.f32.mrf.mxu2 }
  0xe6   :  { %3140 = vmatpush.bf16.msrb.mxu0 %v9059_v61  ;;  %v2915_v17 = vadd.f32 %v2914_v16, %v2902_v11  ;;  %v2927_v19 = vpop.f32.mrf.mxu3  ;;  %v2890_v20 = vpop.f32.mrf.mxu0  ;;  %v9105_v61 = vld [vmem:[%s12809_s1 + $0x8a0] sm:$0xff]  ;;  %v9087_v11 = vld [vmem:[%s12809_s1 + $0x810] sm:$0xff]  ;;  %v43_v16 = vld [vmem:[%s12808_s0 + $0x48] sm:$0xff] }
  0xe7   :  { %3166 = vmatpush.bf16.msrb.mxu2 %v9075_v62  ;;  %v9113_v62 = vld [vmem:[%s12809_s1 + $0x8e0] sm:$0xff]  ;;  %98 = vst [vmem:[#allocation1 + $0x20] ss:$4 sm:$0xff] %v43_v16 }
  0xe8   :  { %3179 = vmatpush.bf16.msrb.mxu3 %v9083_v63  ;;  %v10384_v22 = vadd.f32 %v2927_v19, %v2915_v17  ;;  %v9086_v17 = vld [vmem:[%s12809_s1 + $0x808] sm:$0xff]  ;;  %v9133_v16 = vld [vmem:[%s12809_s1 + $0x980] sm:$0xff] }
  0xe9   :  { %3153 = vmatpush.bf16.msrb.mxu1 %v9067_v0  ;;  %v2903_v25 = vpop.f32.mrf.mxu1  ;;  %v9110_v19 = vld [vmem:[%s12809_s1 + $0x8c8] sm:$0xff] }
  0xea   :  { %3141 = vmatpush.bf16.msrb.mxu0 %v9058_v1  ;;  %v9097_v1 = vld [vmem:[%s12809_s1 + $0x860] sm:$0xff] }
  0xeb   :  { %3167 = vmatpush.bf16.msrb.mxu2 %v9074_v2  ;;  %v9088_v2 = vld [vmem:[%s12809_s1 + $0x818] sm:$0xff]  ;;  %v9109_v25 = vld [vmem:[%s12809_s1 + $0x8c0] sm:$0xff] }
  0xec   :  { %3180 = vmatpush.bf16.msrb.mxu3 %v9082_v3  ;;  %v9104_v3 = vld [vmem:[%s12809_s1 + $0x898] sm:$0xff] }
  0xed   :  { %3154 = vmatpush.bf16.msrb.mxu1 %v9066_v4  ;;  %v2916_v31 = vpop.f32.mrf.mxu2  ;;  %v9112_v4 = vld [vmem:[%s12809_s1 + $0x8d8] sm:$0xff] }
  0xee   :  { %3142 = vmatpush.bf16.msrb.mxu0 %v9057_v7  ;;  %v2929_v33 = vpop.f32.mrf.mxu3  ;;  %v9148_v31 = vld [vmem:[%s12809_s1 + $0x9f8] sm:$0xff] }
  0xef   :  { %3168 = vmatpush.bf16.msrb.mxu2 %v9073_v8  ;;  %v9096_v8 = vld [vmem:[%s12809_s1 + $0x858] sm:$0xff]  ;;  %v100_v33 = vld.sshfl [vmem:[#allocation1 + $0x8] sm:$0xff pattern:$0x73625140] }
  0xf0   :  { %3181 = vmatpush.bf16.msrb.mxu3 %v9081_v9  ;;  %v183_v38 = vpack.c.bf16 %v100_v33, %v100_v33 }
  0xf1   :  { %3155 = vmatpush.bf16.msrb.mxu1 %v9065_v12  ;;  %v9103_v12 = vld [vmem:[%s12809_s1 + $0x890] sm:$0xff] }
  0xf2   :  { %3143 = vmatpush.bf16.msrb.mxu0 %v9056_v13  ;;  %v9111_v13 = vld [vmem:[%s12809_s1 + $0x8d0] sm:$0xff] }
  0xf3   :  { %3169 = vmatpush.bf16.msrb.mxu2 %v9072_v14 }
  0xf4   :  { %3182 = vmatpush.bf16.msrb.mxu3 %v9080_v15  ;;  %v9095_v15 = vld [vmem:[%s12809_s1 + $0x850] sm:$0xff] }
  0xf5   :  { %3156 = vmatpush.bf16.msrb.mxu1 %v9064_v18  ;;  %v9102_v18 = vld [vmem:[%s12809_s1 + $0x888] sm:$0xff] }
  0xf6   :  { %3144 = vmatpush.bf16.msrb.mxu0 %v9055_v21 }
  0xf7   :  { %3170 = vmatpush.bf16.msrb.mxu2 %v9071_v23  ;;  %v9085_v23 = vld [vmem:[%s12809_s1 + $0x800] sm:$0xff] }
  0xf8   :  { %3183 = vmatpush.bf16.msrb.mxu3 %v9079_v24  ;;  %v9101_v24 = vld [vmem:[%s12809_s1 + $0x880] sm:$0xff] }
  0xf9   :  { %3157 = vmatpush.bf16.msrb.mxu1 %v9063_v26  ;;  %v99_v26 = vld.sshfl [vmem:[#allocation1] sm:$0xff pattern:$0x73625140] }
  0xfa   :  { %3145 = vmatpush.bf16.msrb.mxu0 %v9054_v27  ;;  %v101_v27 = vld.sshfl [vmem:[#allocation1 + $0x10] sm:$0xff pattern:$0x73625140] }
  0xfb   :  { %3171 = vmatpush.bf16.msrb.mxu2 %v9070_v29  ;;  %v9140_v29 = vld [vmem:[%s12809_s1 + $0x9b8] sm:$0xff] }
  0xfc   :  { %3184 = vmatpush.bf16.msrb.mxu3 %v9078_v30  ;;  %v102_v30 = vld.sshfl [vmem:[#allocation1 + $0x18] sm:$0xff pattern:$0x73625140] }
  0xfd   :  { %3158 = vmatpush.bf16.msrb.mxu1 %v9062_v32  ;;  %v9093_v32 = vld [vmem:[%s12809_s1 + $0x840] sm:$0xff]  ;;  %v185_v37 = vpack.c.bf16 %v102_v30, %v102_v30 }
  0xfe   :  { %3146 = vmatpush.bf16.msrb.mxu0 %v9053_v34  ;;  %v2940_v58 = vpop.f32.mrf.mxu0  ;;  %v182_v34 = vpack.c.bf16 %v99_v26, %v99_v26 }
  0xff   :  { %3172 = vmatpush.bf16.msrb.mxu2 %v9069_v35  ;;  %v2941_v59 = vadd.f32 %v2940_v58, %v10384_v22  ;;  %v9094_v22 = vld [vmem:[%s12809_s1 + $0x848] sm:$0xff]  ;;  %v184_v35 = vpack.c.bf16 %v101_v27, %v101_v27  ;;  %v9144_v58 = vld [vmem:[%s12809_s1 + $0x9d8] sm:$0xff] }
 0x100   :  { %3185 = vmatpush.bf16.msrb.mxu3 %v9077_v36  ;;  %v9132_v36 = vld [vmem:[%s12809_s1 + $0x978] sm:$0xff] }
 0x101   :  { %3159 = vmatpush.bf16.msrb.mxu1 %v9061_v43  ;;  %3147 = vmatmul.bf16.vlgmr.msrb.gmra.mxu0 %v178_v45  ;;  %v2953_v63 = vpop.f32.mrf.mxu1  ;;  %v9122_v43 = vld [vmem:[%s12809_s1 + $0x928] sm:$0xff] }
 0x102   :  { %3191 = vmatpush.bf16.msra.mxu0 %v9092_v39  ;;  %3173 = vmatmul.bf16.vlgmr.msrb.gmra.mxu2 %v180_v46  ;;  %v2954_v0 = vadd.f32 %v2953_v63, %v2941_v59  ;;  %v9123_v39 = vld [vmem:[%s12809_s1 + $0x930] sm:$0xff]  ;;  %v9146_v45 = vld [vmem:[%s12809_s1 + $0x9e8] sm:$0xff] }
 0x103   :  { %3217 = vmatpush.bf16.msra.mxu2 %v9108_v40  ;;  %3186 = vmatmul.bf16.vlgmr.msrb.gmra.mxu3 %v181_v48  ;;  %v9139_v40 = vld [vmem:[%s12809_s1 + $0x9b0] sm:$0xff] }
 0x104   :  { %3230 = vmatpush.bf16.msra.mxu3 %v9116_v42  ;;  %3160 = vmatmul.bf16.vlgmr.msrb.gmra.mxu1 %v179_v49  ;;  %v9131_v42 = vld [vmem:[%s12809_s1 + $0x970] sm:$0xff] }
 0x105   :  { %3204 = vmatpush.bf16.msra.mxu1 %v9100_v47  ;;  %v2966_v5 = vpop.f32.mrf.mxu2  ;;  %v44_v46 = vld [vmem:[%s12808_s0 + $0x50] sm:$0x3]  ;;  %v9130_v47 = vld [vmem:[%s12809_s1 + $0x968] sm:$0xff] }
 0x106   :  { %3192 = vmatpush.bf16.msra.mxu0 %v9091_v50  ;;  %v2967_v6 = vadd.f32 %v2966_v5, %v2954_v0  ;;  %v2979_v7 = vpop.f32.mrf.mxu3  ;;  %v2942_v9 = vpop.f32.mrf.mxu0  ;;  %107 = vst [vmem:[#allocation1] ss:$4 sm:$0xff] %v44_v46  ;;  %v9121_v50 = vld [vmem:[%s12809_s1 + $0x920] sm:$0xff] }
 0x107   :  { %3218 = vmatpush.bf16.msra.mxu2 %v9107_v51  ;;  %v9137_v51 = vld [vmem:[%s12809_s1 + $0x9a0] sm:$0xff]  ;;  %v9134_v9 = vld [vmem:[%s12809_s1 + $0x988] sm:$0xff] }
 0x108   :  { %3231 = vmatpush.bf16.msra.mxu3 %v9115_v52  ;;  %v10483_v10 = vadd.f32 %v2979_v7, %v2967_v6  ;;  %v9145_v52 = vld [vmem:[%s12809_s1 + $0x9e0] sm:$0xff]  ;;  %v9127_v6 = vld [vmem:[%s12809_s1 + $0x950] sm:$0xff] }
 0x109   :  { %3205 = vmatpush.bf16.msra.mxu1 %v9099_v53  ;;  %v2955_v14 = vpop.f32.mrf.mxu1 }
 0x10a   :  { %3193 = vmatpush.bf16.msra.mxu0 %v9090_v54  ;;  %v9117_v14 = vld [vmem:[%s12809_s1 + $0x900] sm:$0xff] }
 0x10b   :  { %3219 = vmatpush.bf16.msra.mxu2 %v9106_v55  ;;  %v9129_v55 = vld [vmem:[%s12809_s1 + $0x960] sm:$0xff] }
 0x10c   :  { %3232 = vmatpush.bf16.msra.mxu3 %v9114_v56  ;;  %v9120_v56 = vld [vmem:[%s12809_s1 + $0x918] sm:$0xff] }
 0x10d   :  { %3206 = vmatpush.bf16.msra.mxu1 %v9098_v57  ;;  %v2968_v20 = vpop.f32.mrf.mxu2  ;;  %v9136_v57 = vld [vmem:[%s12809_s1 + $0x998] sm:$0xff]  ;;  %v108_v33 = vld.sshfl [vmem:[#allocation1] sm:$0xff pattern:$0x73625140] }
 0x10e   :  { %3194 = vmatpush.bf16.msra.mxu0 %v9089_v60  ;;  %v2981_v21 = vpop.f32.mrf.mxu3  ;;  %v106_v20 = vld.sshfl [vmem:[#allocation1 + $0x38] sm:$0xff pattern:$0x73625140] }
 0x10f   :  { %3220 = vmatpush.bf16.msra.mxu2 %v9105_v61  ;;  %v9125_v21 = vld [vmem:[%s12809_s1 + $0x940] sm:$0xff]  ;;  %v189_v26 = vpack.c.bf16 %v106_v20, %v106_v20 }
 0x110   :  { %3233 = vmatpush.bf16.msra.mxu3 %v9113_v62  ;;  %v9128_v62 = vld [vmem:[%s12809_s1 + $0x958] sm:$0xff] }
 0x111   :  { %3207 = vmatpush.bf16.msra.mxu1 %v9097_v1  ;;  %v9119_v1 = vld [vmem:[%s12809_s1 + $0x910] sm:$0xff] }
 0x112   :  { %3195 = vmatpush.bf16.msra.mxu0 %v9088_v2  ;;  %v833_v2 = vld [vmem:[%s12809_s1 + $0xa08] sm:$0x1] }
 0x113   :  { %3221 = vmatpush.bf16.msra.mxu2 %v9104_v3  ;;  %v9135_v3 = vld [vmem:[%s12809_s1 + $0x990] sm:$0xff]  ;;  %v2123_v7 = vunpack.c.l.b16 %v833_v2 }
 0x114   :  { %3234 = vmatpush.bf16.msra.mxu3 %v9112_v4  ;;  %v9143_v4 = vld [vmem:[%s12809_s1 + $0x9d0] sm:$0xff] }
 0x115   :  { %3208 = vmatpush.bf16.msra.mxu1 %v9096_v8  ;;  %v9118_v8 = vld [vmem:[%s12809_s1 + $0x908] sm:$0xff] }
 0x116   :  { %3196 = vmatpush.bf16.msra.mxu0 %v9087_v11 }
 0x117   :  { %3222 = vmatpush.bf16.msra.mxu2 %v9103_v12 }
 0x118   :  { %3235 = vmatpush.bf16.msra.mxu3 %v9111_v13  ;;  %v9126_v13 = vld [vmem:[%s12809_s1 + $0x948] sm:$0xff] }
 0x119   :  { %3209 = vmatpush.bf16.msra.mxu1 %v9095_v15  ;;  %v2445_v15 = vpack.c.b16 %v2123_v7, %v2123_v7 }
 0x11a   :  { %3197 = vmatpush.bf16.msra.mxu0 %v9086_v17  ;;  %v9141_v17 = vld [vmem:[%s12809_s1 + $0x9c0] sm:$0xff] }
 0x11b   :  { %3223 = vmatpush.bf16.msra.mxu2 %v9102_v18  ;;  %v103_v18 = vld.sshfl [vmem:[#allocation1 + $0x20] sm:$0xff pattern:$0x73625140] }
 0x11c   :  { %3236 = vmatpush.bf16.msra.mxu3 %v9110_v19  ;;  %v105_v19 = vld.sshfl [vmem:[#allocation1 + $0x30] sm:$0xff pattern:$0x73625140] }
 0x11d   :  { %3210 = vmatpush.bf16.msra.mxu1 %v9094_v22  ;;  %v186_v22 = vpack.c.bf16 %v103_v18, %v103_v18 }
 0x11e   :  { %3198 = vmatpush.bf16.msra.mxu0 %v9085_v23  ;;  %v2992_v48 = vpop.f32.mrf.mxu0  ;;  %v104_v23 = vld.sshfl [vmem:[#allocation1 + $0x28] sm:$0xff pattern:$0x73625140] }
 0x11f   :  { %3224 = vmatpush.bf16.msra.mxu2 %v9101_v24  ;;  %v2993_v49 = vadd.f32 %v2992_v48, %v10483_v10  ;;  %v9142_v10 = vld [vmem:[%s12809_s1 + $0x9c8] sm:$0xff]  ;;  %v2773_v24 = vsel %vm2771_vm0, %v2445_v15, 0  ;;  %v187_v27 = vpack.c.bf16 %v104_v23, %v104_v23 }
 0x120   :  { %3237 = vmatpush.bf16.msra.mxu3 %v9109_v25  ;;  %v188_v25 = vpack.c.bf16 %v105_v19, %v105_v19 }
 0x121   :  { %3211 = vmatpush.bf16.msra.mxu1 %v9093_v32  ;;  %3199 = vmatmul.bf16.vlgmr.msra.gmra.mxu0 %v182_v34  ;;  %v3005_v53 = vpop.f32.mrf.mxu1 }
 0x122   :  { %3243 = vmatpush.bf16.msrb.mxu0 %v9124_v28  ;;  %3225 = vmatmul.bf16.vlgmr.msra.gmra.mxu2 %v184_v35  ;;  %v3006_v54 = vadd.f32 %v3005_v53, %v2993_v49  ;;  %v9149_v28 = vld [vmem:[%s12809_s1 + $0xa00] sm:$0xff]  ;;  %v190_v35 = vpack.c.bf16 %v108_v33, %v108_v33 }
 0x123   :  { %3269 = vmatpush.bf16.msrb.mxu2 %v9140_v29  ;;  %3238 = vmatmul.bf16.vlgmr.msra.gmra.mxu3 %v185_v37 }
 0x124   :  { %3282 = vmatpush.bf16.msrb.mxu3 %v9148_v31  ;;  %3212 = vmatmul.bf16.vlgmr.msra.gmra.mxu1 %v183_v38 }
 0x125   :  { %3256 = vmatpush.bf16.msrb.mxu1 %v9132_v36  ;;  %v3018_v59 = vpop.f32.mrf.mxu2 }
 0x126   :  { %3244 = vmatpush.bf16.msrb.mxu0 %v9123_v39  ;;  %v3019_v60 = vadd.f32 %v3018_v59, %v3006_v54  ;;  %v3031_v61 = vpop.f32.mrf.mxu3  ;;  %v2994_v63 = vpop.f32.mrf.mxu0 }
 0x127   :  { %3270 = vmatpush.bf16.msrb.mxu2 %v9139_v40 }
 0x128   :  { %3283 = vmatpush.bf16.msrb.mxu3 %v9147_v41  ;;  %v3032_v0 = vadd.f32 %v3031_v61, %v3019_v60 }
 0x129   :  { %3257 = vmatpush.bf16.msrb.mxu1 %v9131_v42  ;;  %v3007_v5 = vpop.f32.mrf.mxu1 }
 0x12a   :  { %3245 = vmatpush.bf16.msrb.mxu0 %v9122_v43 }
 0x12b   :  { %3271 = vmatpush.bf16.msrb.mxu2 %v9138_v44 }
 0x12c   :  { %3284 = vmatpush.bf16.msrb.mxu3 %v9146_v45 }
 0x12d   :  { %3258 = vmatpush.bf16.msrb.mxu1 %v9130_v47  ;;  %v3020_v11 = vpop.f32.mrf.mxu2 }
 0x12e   :  { %3246 = vmatpush.bf16.msrb.mxu0 %v9121_v50  ;;  %v3033_v12 = vpop.f32.mrf.mxu3 }
 0x12f   :  { %3272 = vmatpush.bf16.msrb.mxu2 %v9137_v51  ;;  %v9150_v12 = vld [vmem:[%s12811_s3] sm:$0xff] }
 0x130   :  { %3285 = vmatpush.bf16.msrb.mxu3 %v9145_v52 }
 0x131   :  { %3259 = vmatpush.bf16.msrb.mxu1 %v9129_v55 }
 0x132   :  { %3247 = vmatpush.bf16.msrb.mxu0 %v9120_v56 }
 0x133   :  { %3273 = vmatpush.bf16.msrb.mxu2 %v9136_v57 }
 0x134   :  { %3286 = vmatpush.bf16.msrb.mxu3 %v9144_v58 }
 0x135   :  { %3260 = vmatpush.bf16.msrb.mxu1 %v9128_v62 }
 0x136   :  { %3248 = vmatpush.bf16.msrb.mxu0 %v9119_v1 }
 0x137   :  { %3274 = vmatpush.bf16.msrb.mxu2 %v9135_v3 }
 0x138   :  { %3287 = vmatpush.bf16.msrb.mxu3 %v9143_v4 }
 0x139   :  { %3261 = vmatpush.bf16.msrb.mxu1 %v9127_v6 }
 0x13a   :  { %3249 = vmatpush.bf16.msrb.mxu0 %v9118_v8 }
 0x13b   :  { %3275 = vmatpush.bf16.msrb.mxu2 %v9134_v9 }
 0x13c   :  { %3288 = vmatpush.bf16.msrb.mxu3 %v9142_v10  ;;  %v9151_v10 = vld [vmem:[%s12811_s3 + $0x8] sm:$0xff] }
 0x13d   :  { %3262 = vmatpush.bf16.msrb.mxu1 %v9126_v13 }
 0x13e   :  { %3250 = vmatpush.bf16.msrb.mxu0 %v9117_v14  ;;  %v3044_v29 = vpop.f32.mrf.mxu0  ;;  %v9155_v14 = vld [vmem:[%s12813_s5 + $0x18] sm:$0xff] }
 0x13f   :  { %3276 = vmatpush.bf16.msrb.mxu2 %v9133_v16  ;;  %v3045_v30 = vadd.f32 %v3044_v29, %v3032_v0  ;;  %v9154_v16 = vld [vmem:[%s12813_s5 + $0x10] sm:$0xff] }
 0x140   :  { %3289 = vmatpush.bf16.msrb.mxu3 %v9141_v17 }
 0x141   :  { %3263 = vmatpush.bf16.msrb.mxu1 %v9125_v21  ;;  %3251 = vmatmul.bf16.vlgmr.msrb.gmra.mxu0 %v186_v22  ;;  %v3057_v31 = vpop.f32.mrf.mxu1 }
 0x142   :  { %3301 = vmatpush.bf16.msra.mxu0 %v2773_v24  ;;  %3277 = vmatmul.bf16.vlgmr.msrb.gmra.mxu2 %v188_v25  ;;  %v3058_v32 = vadd.f32 %v3057_v31, %v3045_v30 }
 0x143   :  { %3290 = vmatmul.bf16.vlgmr.msrb.gmra.mxu3 %v189_v26  ;;  %3393 = vmatpush.bf16.msra.mxu2 %v9155_v14  ;;  %v8183_v14 = vld [vmem:[%s12815_s7 + $0x528] sm:$0xf] }
 0x144   :  { %3264 = vmatmul.bf16.vlgmr.msrb.gmra.mxu1 %v187_v27 }
 0x145   :  { %v3070_v34 = vpop.f32.mrf.mxu2  ;;  %3340 = vmatpush.bf16.msra.mxu1 %v9151_v10  ;;  %v9340_v10 = vld [vmem:[%s12815_s7 + $0x5c0] sm:$0xf0] }
 0x146   :  { %3302 = vmatpush.bf16.msra.mxu0 %v9149_v28  ;;  %v3071_v36 = vadd.f32 %v3070_v34, %v3058_v32  ;;  %v3083_v37 = vpop.f32.mrf.mxu3  ;;  %v3046_v38 = vpop.f32.mrf.mxu0 }
 0x147   :  { %3394 = vmatpush.bf16.msra.mxu2 %v9154_v16  ;;  %v8667_v38 = vld [vmem:[%s12815_s7 + $0x8f8] sm:$0xf]  ;;  %v9321_v16 = vld [vmem:[%s12815_s7 + $0x52c] sm:$0xf] }
 0x148   :  { %v3084_v39 = vadd.f32 %v3083_v37, %v3071_v36  ;;  %v9153_v36 = vld [vmem:[%s12813_s5 + $0x8] sm:$0xff]  ;;  %v9152_v37 = vld [vmem:[%s12813_s5] sm:$0xff] }
 0x149   :  { %v3059_v40 = vpop.f32.mrf.mxu1  ;;  %3341 = vmatpush.bf16.msra.mxu1 %v9150_v12 }
 0x14a   :  { %v9443_v40 = vld [vmem:[%s12815_s7 + $0x8fc] sm:$0xf] }
 0x14b   :  { %3395 = vmatpush.bf16.msra.mxu2 %v9153_v36 }
 0x14d   :  { %v3072_v41 = vpop.f32.mrf.mxu2 }
 0x14e   :  { %v3085_v42 = vpop.f32.mrf.mxu3 }
 0x14f   :  { %3396 = vmatpush.bf16.msra.mxu2 %v9152_v37  ;;  %v8669_v42 = vld [vmem:[%s12815_s7 + $0x99c] sm:$0xf0]  ;;  %v7849_v37 = vld [vmem:[%s12815_s7 + $0x334] sm:$0xf0] }
 0x151   :  { %7490 = vmatmul.msk.bf16.vlgmr.msra.gmra.mxu0 %vm2767_vm1, %v190_v35 }
 0x15e   :  { %v3096_v43 = vpop.f32.mrf.mxu0 }
 0x15f   :  { %v3097_v44 = vadd.f32 %v3096_v43, %v3084_v39  ;;  %v9463_v39 = vld [vmem:[%s12815_s7 + $0x998] sm:$0xf0]  ;;  %v8675_v43 = vld [vmem:[%s12815_s7 + $0x900] sm:$0xf] }
 0x160   :  { %v8668_v41 = vor.u32 %v9463_v39, %v8667_v38  ;;  %v7855_v38 = vld [vmem:[%s12815_s7 + $0x298] sm:$0xf]  ;;  %v9259_v39 = vld [vmem:[%s12815_s7 + $0x338] sm:$0xf0] }
 0x161   :  { %v3109_v45 = vpop.f32.mrf.mxu1 }
 0x162   :  { %v3110_v46 = vadd.f32 %v3109_v45, %v3097_v44  ;;  %v9464_v44 = vld [vmem:[%s12815_s7 + $0x9a0] sm:$0xf0]  ;;  %v8672_v45 = vor.u32 %v9443_v40, %v8669_v42  ;;  %5482 = vmatpush.bf16.msra.mxu3 %v8668_v41  ;;  %v9239_v40 = vld [vmem:[%s12815_s7 + $0x29c] sm:$0xf]  ;;  %v7857_v41 = vld [vmem:[%s12815_s7 + $0x33c] sm:$0xf0] }
 0x163   :  { %v9486_v42 = vld [vmem:[%s12812_s4] ss:$0 sm:$0xff] }
 0x164   :  { %5495 = vmatpush.bf16.msrb.mxu0 %v8672_v45  ;;  %v7856_v45 = vor.u32 %v9259_v39, %v7855_v38  ;;  %v8357_v39 = vld [vmem:[%s12815_s7 + $0x71c] sm:$0xf0] }
 0x165   :  { %v3122_v47 = vpop.f32.mrf.mxu2 }
 0x166   :  { %v3123_v48 = vadd.f32 %v3122_v47, %v3110_v46  ;;  %v3135_v49 = vpop.f32.mrf.mxu3  ;;  %v3098_v50 = vpop.f32.mrf.mxu0  ;;  %v8676_v46 = vor.u32 %v9464_v44, %v8675_v43  ;;  %v9444_v47 = vld [vmem:[%s12815_s7 + $0x904] sm:$0xf] }
 0x168   :  { %v3136_v51 = vadd.f32 %v3135_v49, %v3123_v48  ;;  %v8677_v48 = vld [vmem:[%s12815_s7 + $0x9a4] sm:$0xf0]  ;;  %v8503_v49 = vld [vmem:[%s12815_s7 + $0x7b0] sm:$0xf]  ;;  %5508 = vmatpush.bf16.msrb.mxu1 %v8676_v46 }
 0x169   :  { %v3111_v52 = vpop.f32.mrf.mxu1  ;;  %v8680_v50 = vor.u32 %v9444_v47, %v8677_v48  ;;  %v7683_v46 = vld [vmem:[%s12815_s7 + $0x148] sm:$0xf]  ;;  %v9217_v47 = vld [vmem:[%s12815_s7 + $0x1e8] sm:$0xf0] }
 0x16a   :  { %v9402_v52 = vld [vmem:[%s12815_s7 + $0x7b4] sm:$0xf]  ;;  %v9197_v48 = vld [vmem:[%s12815_s7 + $0x14c] sm:$0xf] }
 0x16b   :  { %5521 = vmatpush.bf16.msrb.mxu2 %v8680_v50  ;;  %v7685_v50 = vld [vmem:[%s12815_s7 + $0x1ec] sm:$0xf0] }
 0x16d   :  { %v3124_v53 = vpop.f32.mrf.mxu2 }
 0x16e   :  { %v3137_v54 = vpop.f32.mrf.mxu3  ;;  %v8505_v53 = vld [vmem:[%s12815_s7 + $0x854] sm:$0xf0] }
 0x17e   :  { %v3148_v55 = vpop.f32.mrf.mxu0 }
 0x17f   :  { %v3149_v4 = vadd.f32 %v3148_v55, %v3136_v51  ;;  %v9422_v51 = vld [vmem:[%s12815_s7 + $0x850] sm:$0xf0]  ;;  %v8508_v55 = vor.u32 %v9402_v52, %v8505_v53 }
 0x180   :  { %v8504_v54 = vor.u32 %v9422_v51, %v8503_v49  ;;  %v7860_v49 = vor.u32 %v9239_v40, %v7857_v41  ;;  %v7691_v51 = vld [vmem:[%s12815_s7 + $0x150] sm:$0xf]  ;;  %v9218_v52 = vld [vmem:[%s12815_s7 + $0x1f0] sm:$0xf0]  ;;  %v8363_v40 = vld [vmem:[%s12815_s7 + $0x680] sm:$0xf] }
 0x181   :  { %v3161_v56 = vpop.f32.mrf.mxu1  ;;  %5496 = vmatpush.bf16.msrb.mxu0 %v8508_v55  ;;  %v9198_v53 = vld [vmem:[%s12815_s7 + $0x154] sm:$0xf]  ;;  %v7684_v55 = vor.u32 %v9217_v47, %v7683_v46  ;;  %v9384_v41 = vld [vmem:[%s12815_s7 + $0x720] sm:$0xf0]  ;;  %v8191_v47 = vld [vmem:[%s12815_s7 + $0x530] sm:$0xf] }
 0x182   :  { %v3162_v6 = vadd.f32 %v3161_v56, %v3149_v4  ;;  %v8511_v56 = vld [vmem:[%s12815_s7 + $0x7b8] sm:$0xf]  ;;  %5483 = vmatpush.bf16.msra.mxu3 %v8504_v54  ;;  %v9382_v4 = vld [vmem:[%s12815_s7 + $0x710] sm:$0xf0]  ;;  %v8364_v46 = vor.u32 %v9384_v41, %v8363_v40  ;;  %v9159_v41 = vld [vmem:[%s12815_s7 + $0x1c] sm:$0xf] }
 0x183   :  { %v7693_v54 = vld [vmem:[%s12815_s7 + $0x1f4] sm:$0xf0] }
 0x185   :  { %v3174_v57 = vpop.f32.mrf.mxu2 }
 0x186   :  { %v3187_v58 = vpop.f32.mrf.mxu3  ;;  %v3150_v59 = vpop.f32.mrf.mxu0  ;;  %v3175_v9 = vadd.f32 %v3174_v57, %v3162_v6  ;;  %v9423_v57 = vld [vmem:[%s12815_s7 + $0x858] sm:$0xf0]  ;;  %v8349_v6 = vld [vmem:[%s12815_s7 + $0x714] sm:$0xf0] }
 0x187   :  { %v8512_v59 = vor.u32 %v9423_v57, %v8511_v56  ;;  %v7519_v56 = vld [vmem:[%s12815_s7] sm:$0xf]  ;;  %v9176_v57 = vld [vmem:[%s12815_s7 + $0xa0] sm:$0xf0] }
 0x188   :  { %v3188_v11 = vadd.f32 %v3187_v58, %v3175_v9  ;;  %v9403_v58 = vld [vmem:[%s12815_s7 + $0x7bc] sm:$0xf]  ;;  %v8175_v9 = vld [vmem:[%s12815_s7 + $0x520] sm:$0xf] }
 0x189   :  { %v3163_v60 = vpop.f32.mrf.mxu1  ;;  %5509 = vmatpush.bf16.msrb.mxu1 %v8512_v59 }
 0x18a   :  { %v8513_v60 = vld [vmem:[%s12815_s7 + $0x85c] sm:$0xf0] }
 0x18d   :  { %v3176_v61 = vpop.f32.mrf.mxu2 }
 0x18e   :  { %v3189_v62 = vpop.f32.mrf.mxu3  ;;  %v8339_v61 = vld [vmem:[%s12815_s7 + $0x668] sm:$0xf] }
 0x18f   :  { %v9381_v62 = vld [vmem:[%s12815_s7 + $0x708] sm:$0xf0] }
 0x19e   :  { %v3200_v63 = vpop.f32.mrf.mxu0 }
 0x19f   :  { %v3201_v13 = vadd.f32 %v3200_v63, %v3188_v11  ;;  %v8516_v63 = vor.u32 %v9403_v58, %v8513_v60  ;;  %v9320_v11 = vld [vmem:[%s12815_s7 + $0x524] sm:$0xf]  ;;  %v7688_v60 = vor.u32 %v9197_v48, %v7685_v50  ;;  %v9342_v48 = vld [vmem:[%s12815_s7 + $0x5d0] sm:$0xf0] }
 0x1a0   :  { %v9156_v58 = vld [vmem:[%s12815_s7 + $0x4] sm:$0xf] }
 0x1a1   :  { %v3213_v0 = vpop.f32.mrf.mxu1  ;;  %5522 = vmatpush.bf16.msrb.mxu2 %v8516_v63  ;;  %v7527_v63 = vld [vmem:[%s12815_s7 + $0x8] sm:$0xf] }
 0x1a2   :  { %v3214_v15 = vadd.f32 %v3213_v0, %v3201_v13  ;;  %v9361_v0 = vld [vmem:[%s12815_s7 + $0x66c] sm:$0xf]  ;;  %v8177_v13 = vld [vmem:[%s12815_s7 + $0x5c4] sm:$0xf0] }
 0x1a5   :  { %v3226_v1 = vpop.f32.mrf.mxu2 }
 0x1a6   :  { %v3239_v2 = vpop.f32.mrf.mxu3  ;;  %v3202_v3 = vpop.f32.mrf.mxu0  ;;  %v3227_v17 = vadd.f32 %v3226_v1, %v3214_v15  ;;  %v8341_v1 = vld [vmem:[%s12815_s7 + $0x70c] sm:$0xf0]  ;;  %v9341_v15 = vld [vmem:[%s12815_s7 + $0x5c8] sm:$0xf0] }
 0x1a7   :  { %v8340_v3 = vor.u32 %v9381_v62, %v8339_v61  ;;  %v7692_v61 = vor.u32 %v9218_v52, %v7691_v51  ;;  %v7521_v62 = vld [vmem:[%s12815_s7 + $0xa4] sm:$0xf0]  ;;  %v8193_v51 = vld [vmem:[%s12815_s7 + $0x5d4] sm:$0xf0] }
 0x1a8   :  { %v3240_v19 = vadd.f32 %v3239_v2, %v3227_v17  ;;  %v8347_v2 = vld [vmem:[%s12815_s7 + $0x670] sm:$0xf]  ;;  %v8199_v52 = vld [vmem:[%s12815_s7 + $0x538] sm:$0xf] }
 0x1a9   :  { %v3215_v5 = vpop.f32.mrf.mxu1  ;;  %v8185_v17 = vld [vmem:[%s12815_s7 + $0x5cc] sm:$0xf0]  ;;  %5484 = vmatpush.bf16.msra.mxu3 %v8340_v3  ;;  %v9157_v3 = vld [vmem:[%s12815_s7 + $0xc] sm:$0xf] }
 0x1aa   :  { %v9362_v5 = vld [vmem:[%s12815_s7 + $0x674] sm:$0xf] }
 0x1ab   :  { %v8352_v12 = vor.u32 %v9362_v5, %v8349_v6  ;;  %v8683_v5 = vld [vmem:[%s12815_s7 + $0x908] sm:$0xf]  ;;  %v9465_v6 = vld [vmem:[%s12815_s7 + $0x9a8] sm:$0xf0] }
 0x1ad   :  { %v3228_v7 = vpop.f32.mrf.mxu2  ;;  %5523 = vmatpush.bf16.msrb.mxu2 %v8352_v12  ;;  %v9466_v12 = vld [vmem:[%s12815_s7 + $0x9b0] sm:$0xf0] }
 0x1ae   :  { %v3241_v8 = vpop.f32.mrf.mxu3  ;;  %v8344_v7 = vor.u32 %v9361_v0, %v8341_v1  ;;  %v9177_v0 = vld [vmem:[%s12815_s7 + $0xa8] sm:$0xf0] }
 0x1af   :  { %v8348_v8 = vor.u32 %v9382_v4, %v8347_v2  ;;  %v7696_v2 = vor.u32 %v9198_v53, %v7693_v54  ;;  %v7529_v4 = vld [vmem:[%s12815_s7 + $0xac] sm:$0xf0]  ;;  %v9343_v53 = vld [vmem:[%s12815_s7 + $0x5d8] sm:$0xf0] }
 0x1b0   :  { %5497 = vmatpush.bf16.msrb.mxu0 %v8344_v7  ;;  %v9445_v7 = vld [vmem:[%s12815_s7 + $0x90c] sm:$0xf]  ;;  %v9323_v54 = vld [vmem:[%s12815_s7 + $0x53c] sm:$0xf] }
 0x1b1   :  { %5510 = vmatpush.bf16.msrb.mxu1 %v8348_v8  ;;  %v8685_v8 = vld [vmem:[%s12815_s7 + $0x9ac] sm:$0xf0] }
 0x1be   :  { %v3252_v18 = vpop.f32.mrf.mxu0 }
 0x1bf   :  { %v3253_v21 = vadd.f32 %v3252_v18, %v3240_v19  ;;  %v8176_v18 = vor.u32 %v9340_v10, %v8175_v9  ;;  %v8180_v19 = vor.u32 %v9320_v11, %v8177_v13  ;;  %v7520_v10 = vor.u32 %v9176_v57, %v7519_v56  ;;  %v8691_v11 = vld [vmem:[%s12815_s7 + $0x910] sm:$0xf] }
 0x1c0   :  { %v7524_v13 = vor.u32 %v9156_v58, %v7521_v62  ;;  %v8192_v56 = vor.u32 %v9342_v48, %v8191_v47  ;;  %v8200_v58 = vor.u32 %v9343_v53, %v8199_v52  ;;  %v8699_v47 = vld [vmem:[%s12815_s7 + $0x918] sm:$0xf]  ;;  %v9467_v48 = vld [vmem:[%s12815_s7 + $0x9b8] sm:$0xf0]  ;;  %v9468_v52 = vld [vmem:[%s12815_s7 + $0x9c0] sm:$0xf0] }
 0x1c1   :  { %v3265_v20 = vpop.f32.mrf.mxu1  ;;  %5485 = vmatpush.bf16.msra.mxu3 %v8176_v18  ;;  %5498 = vmatpush.bf16.msrb.mxu0 %v8180_v19  ;;  %v7532_v18 = vor.u32 %v9157_v3, %v7529_v4  ;;  %v8684_v19 = vor.u32 %v9465_v6, %v8683_v5  ;;  %v8037_v3 = vld [vmem:[%s12815_s7 + $0x494] sm:$0xf0] }
 0x1c2   :  { %v3266_v25 = vadd.f32 %v3265_v20, %v3253_v21  ;;  %v8184_v20 = vor.u32 %v9341_v15, %v8183_v14  ;;  %v8011_v21 = vld [vmem:[%s12815_s7 + $0x3d8] sm:$0xf]  ;;  %v7528_v14 = vor.u32 %v9177_v0, %v7527_v63  ;;  %v9446_v15 = vld [vmem:[%s12815_s7 + $0x914] sm:$0xf]  ;;  %v8029_v63 = vld [vmem:[%s12815_s7 + $0x48c] sm:$0xf0] }
 0x1c3   :  { %v8035_v0 = vld [vmem:[%s12815_s7 + $0x3f0] sm:$0xf] }
 0x1c4   :  { %5511 = vmatpush.bf16.msrb.mxu1 %v8184_v20  ;;  %v8688_v20 = vor.u32 %v9445_v7, %v8685_v8  ;;  %v7863_v7 = vld [vmem:[%s12815_s7 + $0x2a0] sm:$0xf]  ;;  %v9260_v8 = vld [vmem:[%s12815_s7 + $0x340] sm:$0xf0] }
 0x1c5   :  { %v3278_v22 = vpop.f32.mrf.mxu2 }
 0x1c6   :  { %v3291_v23 = vpop.f32.mrf.mxu3  ;;  %v3254_v24 = vpop.f32.mrf.mxu0  ;;  %v3279_v26 = vadd.f32 %v3278_v22, %v3266_v25  ;;  %v9299_v22 = vld [vmem:[%s12815_s7 + $0x478] sm:$0xf0]  ;;  %v8013_v25 = vld [vmem:[%s12815_s7 + $0x47c] sm:$0xf0] }
 0x1c7   :  { %v8188_v24 = vor.u32 %v9321_v16, %v8185_v17  ;;  %v8693_v16 = vld [vmem:[%s12815_s7 + $0x9b4] sm:$0xf0] }
 0x1c8   :  { %v3292_v28 = vadd.f32 %v3291_v23, %v3279_v26  ;;  %v9279_v23 = vld [vmem:[%s12815_s7 + $0x3dc] sm:$0xf]  ;;  %v8019_v26 = vld [vmem:[%s12815_s7 + $0x3e0] sm:$0xf] }
 0x1c9   :  { %v3267_v27 = vpop.f32.mrf.mxu1  ;;  %5524 = vmatpush.bf16.msrb.mxu2 %v8188_v24  ;;  %v9404_v24 = vld [vmem:[%s12815_s7 + $0x7c4] sm:$0xf] }
 0x1ca   :  { %v9300_v27 = vld [vmem:[%s12815_s7 + $0x480] sm:$0xf0] }
 0x1cd   :  { %v3280_v29 = vpop.f32.mrf.mxu2 }
 0x1ce   :  { %v3293_v30 = vpop.f32.mrf.mxu3  ;;  %v3304_v31 = vpop.f32.mrf.mxu0  ;;  %v8021_v29 = vld [vmem:[%s12815_s7 + $0x484] sm:$0xf0] }
 0x1cf   :  { %v3305_v32 = vadd.f32 %v3304_v31, %v3292_v28  ;;  %v9280_v28 = vld [vmem:[%s12815_s7 + $0x3e4] sm:$0xf]  ;;  %v8012_v30 = vor.u32 %v9299_v22, %v8011_v21  ;;  %v8016_v31 = vor.u32 %v9279_v23, %v8013_v25  ;;  %v8692_v21 = vor.u32 %v9466_v12, %v8691_v11  ;;  %v8519_v22 = vld [vmem:[%s12815_s7 + $0x7c0] sm:$0xf]  ;;  %v7865_v11 = vld [vmem:[%s12815_s7 + $0x344] sm:$0xf0] }
 0x1d0   :  { %v8024_v36 = vor.u32 %v9280_v28, %v8021_v29  ;;  %v9424_v23 = vld [vmem:[%s12815_s7 + $0x860] sm:$0xf0]  ;;  %v8696_v25 = vor.u32 %v9446_v15, %v8693_v16  ;;  %v9425_v28 = vld [vmem:[%s12815_s7 + $0x868] sm:$0xf0]  ;;  %v7871_v12 = vld [vmem:[%s12815_s7 + $0x2a8] sm:$0xf]  ;;  %v7864_v16 = vor.u32 %v9260_v8, %v7863_v7 }
 0x1d1   :  { %9489 = vtanh.f32 %v3305_v32  ;;  %v8020_v32 = vor.u32 %v9300_v27, %v8019_v26  ;;  %5486 = vmatpush.bf16.msra.mxu3 %v8012_v30  ;;  %5499 = vmatpush.bf16.msrb.mxu0 %v8016_v31  ;;  %v8521_v26 = vld [vmem:[%s12815_s7 + $0x864] sm:$0xf0]  ;;  %v9405_v30 = vld [vmem:[%s12815_s7 + $0x7cc] sm:$0xf]  ;;  %v8529_v31 = vld [vmem:[%s12815_s7 + $0x86c] sm:$0xf0] }
 0x1d2   :  { %5525 = vmatpush.bf16.msrb.mxu2 %v8024_v36  ;;  %v8527_v27 = vld [vmem:[%s12815_s7 + $0x7c8] sm:$0xf]  ;;  %v9383_v36 = vld [vmem:[%s12815_s7 + $0x718] sm:$0xf0]  ;;  %v8532_v38 = vor.u32 %v9405_v30, %v8529_v31  ;;  %v7873_v15 = vld [vmem:[%s12815_s7 + $0x34c] sm:$0xf0] }
 0x1d3   :  { %5512 = vmatpush.bf16.msrb.mxu1 %v8020_v32  ;;  %v8520_v32 = vor.u32 %v9424_v23, %v8519_v22  ;;  %v9199_v22 = vld [vmem:[%s12815_s7 + $0x15c] sm:$0xf]  ;;  %v7709_v30 = vld [vmem:[%s12815_s7 + $0x204] sm:$0xf0] }
 0x1d4   :  { %v8371_v8 = vld [vmem:[%s12815_s7 + $0x688] sm:$0xf] }
 0x1d6   :  { %v3306_v33 = vpop.f32.mrf.mxu0  ;;  %5526 = vmatpush.bf16.msrb.mxu2 %v7860_v49  ;;  %v9322_v49 = vld [vmem:[%s12815_s7 + $0x534] sm:$0xf] }
 0x1d7   :  { %v9490_v34 = vpop.eup %9489  ;;  %v7847_v33 = vld [vmem:[%s12815_s7 + $0x290] sm:$0xf]  ;;  %5513 = vmatpush.bf16.msrb.mxu1 %v7856_v45  ;;  %v8196_v57 = vor.u32 %v9322_v49, %v8193_v51  ;;  %v9447_v49 = vld [vmem:[%s12815_s7 + $0x91c] sm:$0xf]  ;;  %v8707_v51 = vld [vmem:[%s12815_s7 + $0x920] sm:$0xf] }
 0x1d8   :  { %v3309_v35 = vpack.c.bf16 %v9490_v34, %v9490_v34  ;;  %v9258_v34 = vld [vmem:[%s12815_s7 + $0x330] sm:$0xf0] }
 0x1d9   :  { %v7848_v43 = vor.u32 %v9258_v34, %v7847_v33  ;;  %v8524_v33 = vor.u32 %v9404_v24, %v8521_v26  ;;  %v8528_v34 = vor.u32 %v9425_v28, %v8527_v27  ;;  %v7701_v24 = vld [vmem:[%s12815_s7 + $0x1fc] sm:$0xf0]  ;;  %v9220_v26 = vld [vmem:[%s12815_s7 + $0x200] sm:$0xf0] }
 0x1da   :  { %7499 = vmatmul.msk.bf16.vlgmr.msra.gmra.mxu1 %vm3330_vm2, %v3309_v35  ;;  %v9238_v35 = vld [vmem:[%s12815_s7 + $0x294] sm:$0xf]  ;;  %5527 = vmatpush.bf16.msrb.mxu2 %v7696_v2  ;;  %v7704_v27 = vor.u32 %v9199_v22, %v7701_v24  ;;  %v9324_v24 = vld [vmem:[%s12815_s7 + $0x544] sm:$0xf] }
 0x1db   :  { %v7852_v44 = vor.u32 %v9238_v35, %v7849_v37  ;;  %5487 = vmatpush.bf16.msra.mxu3 %v7848_v43  ;;  %5514 = vmatpush.bf16.msrb.mxu1 %v7692_v61  ;;  %v8355_v35 = vld [vmem:[%s12815_s7 + $0x678] sm:$0xf]  ;;  %v9363_v37 = vld [vmem:[%s12815_s7 + $0x67c] sm:$0xf]  ;;  %v8365_v43 = vld [vmem:[%s12815_s7 + $0x724] sm:$0xf0] }
 0x1dc   :  { %v8360_v45 = vor.u32 %v9363_v37, %v8357_v39  ;;  %v9281_v61 = vld [vmem:[%s12815_s7 + $0x3ec] sm:$0xf]  ;;  %v9282_v2 = vld [vmem:[%s12815_s7 + $0x3f4] sm:$0xf]  ;;  %v7543_v37 = vld [vmem:[%s12815_s7 + $0x18] sm:$0xf] }
 0x1dd   :  { %5500 = vmatpush.bf16.msrb.mxu0 %v7852_v44  ;;  %v8356_v44 = vor.u32 %v9383_v36, %v8355_v35  ;;  %v8032_v5 = vor.u32 %v9281_v61, %v8029_v63  ;;  %v7537_v36 = vld [vmem:[%s12815_s7 + $0xb4] sm:$0xf0]  ;;  %v8708_v61 = vor.u32 %v9468_v52, %v8707_v51  ;;  %v9406_v63 = vld [vmem:[%s12815_s7 + $0x7d4] sm:$0xf]  ;;  %v9263_v51 = vld [vmem:[%s12815_s7 + $0x358] sm:$0xf0] }
 0x1de   :  { %5528 = vmatpush.bf16.msrb.mxu2 %v7532_v18  ;;  %v9243_v52 = vld [vmem:[%s12815_s7 + $0x2bc] sm:$0xf] }
 0x1df   :  { %5488 = vmatpush.bf16.msra.mxu3 %v7684_v55  ;;  %5515 = vmatpush.bf16.msrb.mxu1 %v7528_v14  ;;  %v8201_v55 = vld [vmem:[%s12815_s7 + $0x5dc] sm:$0xf0]  ;;  %v9241_v14 = vld [vmem:[%s12815_s7 + $0x2ac] sm:$0xf] }
 0x1e0   :  { %v8204_v62 = vor.u32 %v9323_v54, %v8201_v55  ;;  %v9448_v54 = vld [vmem:[%s12815_s7 + $0x924] sm:$0xf]  ;;  %v8709_v55 = vld [vmem:[%s12815_s7 + $0x9c4] sm:$0xf0] }
 0x1e1   :  { %5501 = vmatpush.bf16.msrb.mxu0 %v7688_v60  ;;  %v9301_v60 = vld [vmem:[%s12815_s7 + $0x488] sm:$0xf0] }
 0x1e3   :  { %5489 = vmatpush.bf16.msra.mxu3 %v7520_v10  ;;  %5560 = vmatpush.bf16.msra.mxu1 %v8692_v21  ;;  %v8040_v10 = vor.u32 %v9282_v2, %v8037_v3  ;;  %v9219_v21 = vld [vmem:[%s12815_s7 + $0x1f8] sm:$0xf0] }
 0x1e4   :  { %v9427_v2 = vld [vmem:[%s12815_s7 + $0x878] sm:$0xf0] }
 0x1e5   :  { %5502 = vmatpush.bf16.msrb.mxu0 %v7524_v13  ;;  %v9261_v13 = vld [vmem:[%s12815_s7 + $0x348] sm:$0xf0]  ;;  %v9407_v3 = vld [vmem:[%s12815_s7 + $0x7dc] sm:$0xf] }
 0x1e6   :  { %v7872_v18 = vor.u32 %v9261_v13, %v7871_v12  ;;  %v9365_v12 = vld [vmem:[%s12815_s7 + $0x68c] sm:$0xf]  ;;  %v8373_v13 = vld [vmem:[%s12815_s7 + $0x72c] sm:$0xf0] }
 0x1e7   :  { %5534 = vmatpush.bf16.msrb.mxu3 %v8684_v19  ;;  %5561 = vmatpush.bf16.msra.mxu1 %v8528_v34  ;;  %v7876_v19 = vor.u32 %v9241_v14, %v7873_v15  ;;  %v9158_v34 = vld [vmem:[%s12815_s7 + $0x14] sm:$0xf]  ;;  %v8379_v14 = vld [vmem:[%s12815_s7 + $0x690] sm:$0xf] }
 0x1e8   :  { %v7540_v39 = vor.u32 %v9158_v34, %v7537_v36  ;;  %v9386_v15 = vld [vmem:[%s12815_s7 + $0x730] sm:$0xf0]  ;;  %v9283_v36 = vld [vmem:[%s12815_s7 + $0x3fc] sm:$0xf] }
 0x1e9   :  { %5547 = vmatpush.bf16.msra.mxu0 %v8688_v20  ;;  %v7699_v20 = vld [vmem:[%s12815_s7 + $0x158] sm:$0xf]  ;;  %v8380_v22 = vor.u32 %v9386_v15, %v8379_v14  ;;  %v7561_v14 = vld [vmem:[%s12815_s7 + $0xcc] sm:$0xf0]  ;;  %v8715_v15 = vld [vmem:[%s12815_s7 + $0x928] sm:$0xf] }
 0x1ea   :  { %v7700_v23 = vor.u32 %v9219_v21, %v7699_v20  ;;  %v8207_v20 = vld [vmem:[%s12815_s7 + $0x540] sm:$0xf]  ;;  %v9344_v21 = vld [vmem:[%s12815_s7 + $0x5e0] sm:$0xf0] }
 0x1eb   :  { %5535 = vmatpush.bf16.msrb.mxu3 %v8520_v32  ;;  %5562 = vmatpush.bf16.msra.mxu1 %v8364_v46  ;;  %v7535_v32 = vld [vmem:[%s12815_s7 + $0x10] sm:$0xf] }
 0x1ed   :  { %5548 = vmatpush.bf16.msra.mxu0 %v8524_v33  ;;  %v9178_v33 = vld [vmem:[%s12815_s7 + $0xb0] sm:$0xf0] }
 0x1ee   :  { %v7536_v35 = vor.u32 %v9178_v33, %v7535_v32  ;;  %v8043_v32 = vld [vmem:[%s12815_s7 + $0x3f8] sm:$0xf]  ;;  %v9303_v33 = vld [vmem:[%s12815_s7 + $0x498] sm:$0xf0] }
 0x1ef   :  { %5536 = vmatpush.bf16.msrb.mxu3 %v8356_v44  ;;  %5563 = vmatpush.bf16.msra.mxu1 %v8200_v58  ;;  %v9487_v44 = vld [vmem:[%s12814_s6] ss:$0 sm:$0xff] }
 0x1f1   :  { %5549 = vmatpush.bf16.msra.mxu0 %v8360_v45 }
 0x1f3   :  { %5537 = vmatpush.bf16.msrb.mxu3 %v8192_v56 }
 0x1f5   :  { %5550 = vmatpush.bf16.msra.mxu0 %v8196_v57  ;;  %v8700_v57 = vor.u32 %v9467_v48, %v8699_v47  ;;  %v9242_v48 = vld [vmem:[%s12815_s7 + $0x2b4] sm:$0xf] }
 0x1f9   :  { %5551 = vmatpush.bf16.msra.mxu0 %v8032_v5 }
 0x257   :  { %v3343_v59 = vpop.f32.mrf.mxu1 }
 0x258   :  { %v3344_v1 = vadd.f32 %v9486_v42, %v3343_v59  ;;  %v9364_v42 = vld [vmem:[%s12815_s7 + $0x684] sm:$0xf]  ;;  %v8027_v59 = vld [vmem:[%s12815_s7 + $0x3e8] sm:$0xf] }
 0x259   :  { %v8368_v50 = vor.u32 %v9364_v42, %v8365_v43  ;;  %v8028_v4 = vor.u32 %v9301_v60, %v8027_v59  ;;  %v7545_v42 = vld [vmem:[%s12815_s7 + $0xbc] sm:$0xf0]  ;;  %v8535_v59 = vld [vmem:[%s12815_s7 + $0x7d0] sm:$0xf]  ;;  %v9426_v60 = vld [vmem:[%s12815_s7 + $0x870] sm:$0xf0] }
 0x25a   :  { %v3347_v9 = vmax.f32 %v3344_v1, 0.0  ;;  %v9302_v1 = vld [vmem:[%s12815_s7 + $0x490] sm:$0xf0]  ;;  %v7548_v43 = vor.u32 %v9159_v41, %v7545_v42  ;;  %v8053_v41 = vld [vmem:[%s12815_s7 + $0x4a4] sm:$0xf0]  ;;  %v8044_v42 = vor.u32 %v9303_v33, %v8043_v32 }
 0x25b   :  { %v8036_v6 = vor.u32 %v9302_v1, %v8035_v0  ;;  %5538 = vmatpush.bf16.msrb.mxu3 %v8028_v4  ;;  %v8537_v0 = vld [vmem:[%s12815_s7 + $0x874] sm:$0xf0]  ;;  %v8545_v4 = vld [vmem:[%s12815_s7 + $0x87c] sm:$0xf0]  ;;  %v9408_v33 = vld [vmem:[%s12815_s7 + $0x7e4] sm:$0xf] }
 0x25c   :  { %v3348_v17 = vpack.c.bf16 %v3347_v9, %v3347_v9  ;;  %v9240_v9 = vld [vmem:[%s12815_s7 + $0x2a4] sm:$0xf]  ;;  %v8543_v1 = vld [vmem:[%s12815_s7 + $0x7d8] sm:$0xf]  ;;  %v8540_v7 = vor.u32 %v9406_v63, %v8537_v0  ;;  %v7723_v63 = vld [vmem:[%s12815_s7 + $0x170] sm:$0xf] }
 0x25d   :  { %5564 = vmatpush.bf16.msra.mxu1 %v8036_v6  ;;  %v8536_v6 = vor.u32 %v9426_v60, %v8535_v59  ;;  %v9222_v0 = vld [vmem:[%s12815_s7 + $0x210] sm:$0xf0] }
 0x25e   :  { %7516 = vmatmul.msk.bf16.vlgmr.msra.gmra.mxu2 %vm3385_vm3, %v3348_v17  ;;  %v7868_v17 = vor.u32 %v9240_v9, %v7865_v11  ;;  %v9385_v9 = vld [vmem:[%s12815_s7 + $0x728] sm:$0xf0]  ;;  %v8548_v11 = vor.u32 %v9407_v3, %v8545_v4  ;;  %v7551_v3 = vld [vmem:[%s12815_s7 + $0x20] sm:$0xf] }
 0x25f   :  { %v3345_v29 = vpop.f32.mrf.mxu1  ;;  %5573 = vmatpush.bf16.msra.mxu2 %v8696_v25  ;;  %5539 = vmatpush.bf16.msrb.mxu3 %v7864_v16  ;;  %v7707_v25 = vld [vmem:[%s12815_s7 + $0x160] sm:$0xf]  ;;  %v9366_v16 = vld [vmem:[%s12815_s7 + $0x694] sm:$0xf] }
 0x260   :  { %5552 = vmatpush.bf16.msra.mxu0 %v7868_v17  ;;  %v7708_v28 = vor.u32 %v9220_v26, %v7707_v25  ;;  %v9200_v29 = vld [vmem:[%s12815_s7 + $0x164] sm:$0xf]  ;;  %v8381_v17 = vld [vmem:[%s12815_s7 + $0x734] sm:$0xf0]  ;;  %v8209_v25 = vld [vmem:[%s12815_s7 + $0x5e4] sm:$0xf0] }
 0x261   :  { %5565 = vmatpush.bf16.msra.mxu1 %v7872_v18  ;;  %v7712_v31 = vor.u32 %v9200_v29, %v7709_v30  ;;  %v8372_v18 = vor.u32 %v9385_v9, %v8371_v8  ;;  %v8215_v26 = vld [vmem:[%s12815_s7 + $0x548] sm:$0xf]  ;;  %v8217_v29 = vld [vmem:[%s12815_s7 + $0x5ec] sm:$0xf0]  ;;  %v8208_v30 = vor.u32 %v9344_v21, %v8207_v20  ;;  %v7724_v9 = vor.u32 %v9222_v0, %v7723_v63  ;;  %v8233_v63 = vld [vmem:[%s12815_s7 + $0x5fc] sm:$0xf0] }
 0x262   :  { %v7553_v8 = vld [vmem:[%s12815_s7 + $0xc4] sm:$0xf0] }
 0x263   :  { %5574 = vmatpush.bf16.msra.mxu2 %v8532_v38  ;;  %5540 = vmatpush.bf16.msrb.mxu3 %v7700_v23  ;;  %v9179_v38 = vld [vmem:[%s12815_s7 + $0xb8] sm:$0xf0]  ;;  %v8384_v23 = vor.u32 %v9366_v16, %v8381_v17  ;;  %v9469_v16 = vld [vmem:[%s12815_s7 + $0x9c8] sm:$0xf0] }
 0x264   :  { %5553 = vmatpush.bf16.msra.mxu0 %v7704_v27  ;;  %v7544_v40 = vor.u32 %v9179_v38, %v7543_v37  ;;  %v9345_v27 = vld [vmem:[%s12815_s7 + $0x5e8] sm:$0xf0]  ;;  %v8045_v37 = vld [vmem:[%s12815_s7 + $0x49c] sm:$0xf0] }
 0x265   :  { %5566 = vmatpush.bf16.msra.mxu1 %v7708_v28  ;;  %v9325_v28 = vld [vmem:[%s12815_s7 + $0x54c] sm:$0xf]  ;;  %v8216_v34 = vor.u32 %v9345_v27, %v8215_v26  ;;  %v8051_v38 = vld [vmem:[%s12815_s7 + $0x400] sm:$0xf]  ;;  %v8716_v27 = vor.u32 %v9469_v16, %v8715_v15  ;;  %v9264_v15 = vld [vmem:[%s12815_s7 + $0x360] sm:$0xf0] }
 0x266   :  { %v9449_v17 = vld [vmem:[%s12815_s7 + $0x92c] sm:$0xf] }
 0x267   :  { %5575 = vmatpush.bf16.msra.mxu2 %v8368_v50  ;;  %5541 = vmatpush.bf16.msrb.mxu3 %v7536_v35  ;;  %v8701_v50 = vld [vmem:[%s12815_s7 + $0x9bc] sm:$0xf0]  ;;  %v8220_v35 = vor.u32 %v9325_v28, %v8217_v29 }
 0x268   :  { %5554 = vmatpush.bf16.msra.mxu0 %v7540_v39  ;;  %v8704_v58 = vor.u32 %v9447_v49, %v8701_v50  ;;  %v9304_v39 = vld [vmem:[%s12815_s7 + $0x4a0] sm:$0xf0]  ;;  %v7881_v49 = vld [vmem:[%s12815_s7 + $0x354] sm:$0xf0]  ;;  %v8551_v29 = vld [vmem:[%s12815_s7 + $0x7e0] sm:$0xf] }
 0x269   :  { %5567 = vmatpush.bf16.msra.mxu1 %v7544_v40  ;;  %v9284_v40 = vld [vmem:[%s12815_s7 + $0x404] sm:$0xf]  ;;  %v7887_v50 = vld [vmem:[%s12815_s7 + $0x2b8] sm:$0xf] }
 0x26a   :  { %v8056_v47 = vor.u32 %v9284_v40, %v8053_v41  ;;  %v7888_v59 = vor.u32 %v9263_v51, %v7887_v50  ;;  %v8387_v41 = vld [vmem:[%s12815_s7 + $0x698] sm:$0xf]  ;;  %v8397_v50 = vld [vmem:[%s12815_s7 + $0x744] sm:$0xf0] }
 0x26b   :  { %5576 = vmatpush.bf16.msra.mxu2 %v8204_v62  ;;  %v8712_v62 = vor.u32 %v9448_v54, %v8709_v55  ;;  %v7884_v55 = vor.u32 %v9242_v48, %v7881_v49  ;;  %v9388_v48 = vld [vmem:[%s12815_s7 + $0x740] sm:$0xf0] }
 0x26c   :  { %v9368_v49 = vld [vmem:[%s12815_s7 + $0x6a4] sm:$0xf] }
 0x26f   :  { %5577 = vmatpush.bf16.msra.mxu2 %v8040_v10  ;;  %v8544_v10 = vor.u32 %v9427_v2, %v8543_v1  ;;  %v9202_v1 = vld [vmem:[%s12815_s7 + $0x174] sm:$0xf]  ;;  %v7725_v2 = vld [vmem:[%s12815_s7 + $0x214] sm:$0xf0] }
 0x273   :  { %5578 = vmatpush.bf16.msra.mxu2 %v7876_v19  ;;  %v8376_v19 = vor.u32 %v9365_v12, %v8373_v13  ;;  %v9181_v12 = vld [vmem:[%s12815_s7 + $0xc8] sm:$0xf0] }
 0x274   :  { %v9161_v13 = vld [vmem:[%s12815_s7 + $0x2c] sm:$0xf] }
 0x275   :  { %v7564_v26 = vor.u32 %v9161_v13, %v7561_v14  ;;  %v7895_v14 = vld [vmem:[%s12815_s7 + $0x2c0] sm:$0xf] }
 0x277   :  { %5579 = vmatpush.bf16.msra.mxu2 %v7712_v31  ;;  %v8212_v31 = vor.u32 %v9324_v24, %v8209_v25  ;;  %v8725_v24 = vld [vmem:[%s12815_s7 + $0x9d4] sm:$0xf0] }
 0x27b   :  { %5580 = vmatpush.bf16.msra.mxu2 %v7548_v43  ;;  %v8048_v43 = vor.u32 %v9283_v36, %v8045_v37  ;;  %v9429_v36 = vld [vmem:[%s12815_s7 + $0x888] sm:$0xf0] }
 0x27c   :  { %v9409_v37 = vld [vmem:[%s12815_s7 + $0x7ec] sm:$0xf] }
 0x2e1   :  { %v3398_v45 = vpop.f32.mrf.mxu2 }
 0x2e2   :  { %v3399_v46 = vadd.f32 %v9487_v44, %v3398_v45  ;;  %v7879_v44 = vld [vmem:[%s12815_s7 + $0x2b0] sm:$0xf]  ;;  %v9262_v45 = vld [vmem:[%s12815_s7 + $0x350] sm:$0xf0] }
 0x2e3   :  { %v7880_v54 = vor.u32 %v9262_v45, %v7879_v44  ;;  %v9367_v45 = vld [vmem:[%s12815_s7 + $0x69c] sm:$0xf] }
 0x2e4   :  { %v3402_v53 = vmax.f32 %v3399_v46, 0.0  ;;  %v8052_v46 = vor.u32 %v9304_v39, %v8051_v38  ;;  %v8561_v38 = vld [vmem:[%s12815_s7 + $0x88c] sm:$0xf0] }
 0x2e5   :  { %v8564_v44 = vor.u32 %v9409_v37, %v8561_v38 }
 0x2e6   :  { %v11064_v56 = vpack.c.bf16 %v3402_v53, %v3402_v53  ;;  %v7889_v53 = vld [vmem:[%s12815_s7 + $0x35c] sm:$0xf0] }
 0x2e7   :  { %v7892_v60 = vor.u32 %v9243_v52, %v7889_v53  ;;  %v8223_v53 = vld [vmem:[%s12815_s7 + $0x550] sm:$0xf] }
 0x2e8   :  { %5490 = vmatmul.bf16.vlgmr.msra.gmra.mxu3 %v11064_v56  ;;  %5503 = vmatmul.bf16.vlgmr.msrb.gmra.mxu0 %v11064_v56 }
 0x2e9   :  { %5516 = vmatmul.bf16.vlgmr.msrb.gmra.mxu1 %v11064_v56  ;;  %5529 = vmatmul.bf16.vlgmr.msrb.gmra.mxu2 %v11064_v56  ;;  %v3400_v5 = vpop.f32.mrf.mxu2 }
 0x2ea   :  { %5586 = vmatpush.bf16.msra.mxu3 %v8700_v57  ;;  %5599 = vmatpush.bf16.msrb.mxu0 %v8704_v58  ;;  %v7715_v57 = vld [vmem:[%s12815_s7 + $0x168] sm:$0xf]  ;;  %v9221_v58 = vld [vmem:[%s12815_s7 + $0x208] sm:$0xf0] }
 0x2eb   :  { %5612 = vmatpush.bf16.msrb.mxu1 %v8708_v61  ;;  %5625 = vmatpush.bf16.msrb.mxu2 %v8712_v62  ;;  %v9201_v61 = vld [vmem:[%s12815_s7 + $0x16c] sm:$0xf]  ;;  %v7717_v62 = vld [vmem:[%s12815_s7 + $0x20c] sm:$0xf0]  ;;  %v7716_v4 = vor.u32 %v9221_v58, %v7715_v57  ;;  %v8400_v57 = vor.u32 %v9368_v49, %v8397_v50  ;;  %v9326_v58 = vld [vmem:[%s12815_s7 + $0x554] sm:$0xf] }
 0x2ec   :  { %v7720_v5 = vor.u32 %v9201_v61, %v7717_v62  ;;  %v9347_v61 = vld [vmem:[%s12815_s7 + $0x5f8] sm:$0xf0] }
 0x2ed   :  { %v9327_v62 = vld [vmem:[%s12815_s7 + $0x55c] sm:$0xf] }
 0x2ee   :  { %5587 = vmatpush.bf16.msra.mxu3 %v8536_v6  ;;  %5600 = vmatpush.bf16.msrb.mxu0 %v8540_v7  ;;  %v9180_v6 = vld [vmem:[%s12815_s7 + $0xc0] sm:$0xf0]  ;;  %v9471_v49 = vld [vmem:[%s12815_s7 + $0x9d8] sm:$0xf0] }
 0x2ef   :  { %5613 = vmatpush.bf16.msrb.mxu1 %v8544_v10  ;;  %5626 = vmatpush.bf16.msrb.mxu2 %v8548_v11  ;;  %v9160_v7 = vld [vmem:[%s12815_s7 + $0x24] sm:$0xf]  ;;  %v7728_v10 = vor.u32 %v9202_v1, %v7725_v2  ;;  %v7559_v11 = vld [vmem:[%s12815_s7 + $0x28] sm:$0xf]  ;;  %v7552_v20 = vor.u32 %v9180_v6, %v7551_v3  ;;  %v9305_v3 = vld [vmem:[%s12815_s7 + $0x4a8] sm:$0xf0] }
 0x2f0   :  { %v7556_v21 = vor.u32 %v9160_v7, %v7553_v8  ;;  %v7560_v25 = vor.u32 %v9181_v12, %v7559_v11  ;;  %v8059_v2 = vld [vmem:[%s12815_s7 + $0x408] sm:$0xf]  ;;  %v9285_v6 = vld [vmem:[%s12815_s7 + $0x40c] sm:$0xf]  ;;  %v8061_v7 = vld [vmem:[%s12815_s7 + $0x4ac] sm:$0xf0] }
 0x2f1   :  { %v8067_v8 = vld [vmem:[%s12815_s7 + $0x410] sm:$0xf]  ;;  %v8069_v11 = vld [vmem:[%s12815_s7 + $0x4b4] sm:$0xf0]  ;;  %v8060_v12 = vor.u32 %v9305_v3, %v8059_v2  ;;  %v8064_v13 = vor.u32 %v9285_v6, %v8061_v7  ;;  %v9451_v50 = vld [vmem:[%s12815_s7 + $0x93c] sm:$0xf] }
 0x2f2   :  { %5588 = vmatpush.bf16.msra.mxu3 %v8372_v18  ;;  %5601 = vmatpush.bf16.msrb.mxu0 %v8376_v19  ;;  %v8717_v18 = vld [vmem:[%s12815_s7 + $0x9cc] sm:$0xf0]  ;;  %v9410_v3 = vld [vmem:[%s12815_s7 + $0x7f4] sm:$0xf]  ;;  %v9431_v6 = vld [vmem:[%s12815_s7 + $0x898] sm:$0xf0] }
 0x2f3   :  { %5614 = vmatpush.bf16.msrb.mxu1 %v8380_v22  ;;  %5627 = vmatpush.bf16.msrb.mxu2 %v8384_v23  ;;  %v8723_v19 = vld [vmem:[%s12815_s7 + $0x930] sm:$0xf]  ;;  %v9470_v22 = vld [vmem:[%s12815_s7 + $0x9d0] sm:$0xf0]  ;;  %v8720_v28 = vor.u32 %v9449_v17, %v8717_v18  ;;  %v9244_v18 = vld [vmem:[%s12815_s7 + $0x2c4] sm:$0xf] }
 0x2f4   :  { %v9450_v23 = vld [vmem:[%s12815_s7 + $0x934] sm:$0xf]  ;;  %v9411_v7 = vld [vmem:[%s12815_s7 + $0x7fc] sm:$0xf] }
 0x2f5   :  { %v8728_v32 = vor.u32 %v9450_v23, %v8725_v24  ;;  %v7905_v23 = vld [vmem:[%s12815_s7 + $0x36c] sm:$0xf0]  ;;  %v7896_v24 = vor.u32 %v9264_v15, %v7895_v14  ;;  %v9369_v15 = vld [vmem:[%s12815_s7 + $0x6ac] sm:$0xf] }
 0x2f6   :  { %5589 = vmatpush.bf16.msra.mxu3 %v8208_v30  ;;  %5602 = vmatpush.bf16.msrb.mxu0 %v8212_v31  ;;  %v9428_v30 = vld [vmem:[%s12815_s7 + $0x880] sm:$0xf0]  ;;  %v8724_v31 = vor.u32 %v9470_v22, %v8723_v19  ;;  %v7897_v19 = vld [vmem:[%s12815_s7 + $0x364] sm:$0xf0]  ;;  %v9245_v22 = vld [vmem:[%s12815_s7 + $0x2cc] sm:$0xf] }
 0x2f7   :  { %5615 = vmatpush.bf16.msrb.mxu1 %v8216_v34  ;;  %5628 = vmatpush.bf16.msrb.mxu2 %v8220_v35  ;;  %v8553_v34 = vld [vmem:[%s12815_s7 + $0x884] sm:$0xf0]  ;;  %v8552_v39 = vor.u32 %v9428_v30, %v8551_v29  ;;  %v7908_v29 = vor.u32 %v9245_v22, %v7905_v23  ;;  %v9203_v30 = vld [vmem:[%s12815_s7 + $0x17c] sm:$0xf]  ;;  %v8239_v23 = vld [vmem:[%s12815_s7 + $0x560] sm:$0xf] }
 0x2f8   :  { %5542 = vmatmul.bf16.vlgmr.msrb.gmra.mxu3 %v11064_v56  ;;  %5555 = vmatmul.bf16.vlgmr.msra.gmra.mxu0 %v11064_v56  ;;  %v8559_v35 = vld [vmem:[%s12815_s7 + $0x7e8] sm:$0xf]  ;;  %v8556_v40 = vor.u32 %v9408_v33, %v8553_v34  ;;  %v9224_v33 = vld [vmem:[%s12815_s7 + $0x220] sm:$0xf0] }
 0x2f9   :  { %5568 = vmatmul.bf16.vlgmr.msra.gmra.mxu1 %v11064_v56  ;;  %5581 = vmatmul.bf16.vlgmr.msra.gmra.mxu2 %v11064_v56  ;;  %v9204_v34 = vld [vmem:[%s12815_s7 + $0x184] sm:$0xf] }
 0x2fa   :  { %5590 = vmatpush.bf16.msra.mxu3 %v8044_v42  ;;  %5603 = vmatpush.bf16.msrb.mxu0 %v8048_v43  ;;  %v9387_v42 = vld [vmem:[%s12815_s7 + $0x738] sm:$0xf0]  ;;  %v8560_v43 = vor.u32 %v9429_v36, %v8559_v35  ;;  %v7741_v35 = vld [vmem:[%s12815_s7 + $0x224] sm:$0xf0]  ;;  %v7567_v36 = vld [vmem:[%s12815_s7 + $0x30] sm:$0xf] }
 0x2fb   :  { %5616 = vmatpush.bf16.msrb.mxu1 %v8052_v46  ;;  %5629 = vmatpush.bf16.msrb.mxu2 %v8056_v47  ;;  %v8389_v46 = vld [vmem:[%s12815_s7 + $0x73c] sm:$0xf0]  ;;  %v8388_v51 = vor.u32 %v9387_v42, %v8387_v41  ;;  %v7569_v41 = vld [vmem:[%s12815_s7 + $0xd4] sm:$0xf0] }
 0x2fc   :  { %v8395_v47 = vld [vmem:[%s12815_s7 + $0x6a0] sm:$0xf]  ;;  %v8392_v52 = vor.u32 %v9367_v45, %v8389_v46  ;;  %v9183_v45 = vld [vmem:[%s12815_s7 + $0xd8] sm:$0xf0] }
 0x2fd   :  { %v9163_v46 = vld [vmem:[%s12815_s7 + $0x3c] sm:$0xf] }
 0x2fe   :  { %5591 = vmatpush.bf16.msra.mxu3 %v7880_v54  ;;  %5604 = vmatpush.bf16.msrb.mxu0 %v7884_v55  ;;  %v9346_v54 = vld [vmem:[%s12815_s7 + $0x5f0] sm:$0xf0]  ;;  %v8396_v55 = vor.u32 %v9388_v48, %v8395_v47  ;;  %v7577_v47 = vld [vmem:[%s12815_s7 + $0xdc] sm:$0xf0]  ;;  %v8731_v48 = vld [vmem:[%s12815_s7 + $0x938] sm:$0xf] }
 0x2ff   :  { %5617 = vmatpush.bf16.msrb.mxu1 %v7888_v59  ;;  %5630 = vmatpush.bf16.msrb.mxu2 %v7892_v60  ;;  %v8225_v59 = vld [vmem:[%s12815_s7 + $0x5f4] sm:$0xf0]  ;;  %v8224_v0 = vor.u32 %v9346_v54, %v8223_v53 }
 0x300   :  { %v8231_v60 = vld [vmem:[%s12815_s7 + $0x558] sm:$0xf]  ;;  %v8228_v1 = vor.u32 %v9326_v58, %v8225_v59  ;;  %v8741_v58 = vld [vmem:[%s12815_s7 + $0x9e4] sm:$0xf0] }
 0x302   :  { %5592 = vmatpush.bf16.msra.mxu3 %v7716_v4  ;;  %5605 = vmatpush.bf16.msrb.mxu0 %v7720_v5  ;;  %v8232_v4 = vor.u32 %v9347_v61, %v8231_v60  ;;  %v8236_v5 = vor.u32 %v9327_v62, %v8233_v63  ;;  %v7580_v60 = vor.u32 %v9163_v46, %v7577_v47  ;;  %v8567_v63 = vld [vmem:[%s12815_s7 + $0x7f0] sm:$0xf] }
 0x303   :  { %5618 = vmatpush.bf16.msrb.mxu1 %v7724_v9  ;;  %5631 = vmatpush.bf16.msrb.mxu2 %v7728_v10  ;;  %v9306_v9 = vld [vmem:[%s12815_s7 + $0x4b0] sm:$0xf0]  ;;  %v8732_v61 = vor.u32 %v9471_v49, %v8731_v48  ;;  %v7911_v47 = vld [vmem:[%s12815_s7 + $0x2d0] sm:$0xf] }
 0x304   :  { %v9286_v10 = vld [vmem:[%s12815_s7 + $0x414] sm:$0xf]  ;;  %v8068_v16 = vor.u32 %v9306_v9, %v8067_v8  ;;  %v8577_v8 = vld [vmem:[%s12815_s7 + $0x89c] sm:$0xf0] }
 0x305   :  { %v8072_v17 = vor.u32 %v9286_v10, %v8069_v11  ;;  %v8403_v11 = vld [vmem:[%s12815_s7 + $0x6a8] sm:$0xf]  ;;  %v8580_v14 = vor.u32 %v9411_v7, %v8577_v8  ;;  %v9266_v48 = vld [vmem:[%s12815_s7 + $0x370] sm:$0xf0] }
 0x306   :  { %5593 = vmatpush.bf16.msra.mxu3 %v7552_v20  ;;  %5606 = vmatpush.bf16.msrb.mxu0 %v7556_v21  ;;  %v7903_v20 = vld [vmem:[%s12815_s7 + $0x2c8] sm:$0xf]  ;;  %v9265_v21 = vld [vmem:[%s12815_s7 + $0x368] sm:$0xf0] }
 0x307   :  { %5619 = vmatpush.bf16.msrb.mxu1 %v7560_v25  ;;  %5632 = vmatpush.bf16.msrb.mxu2 %v7564_v26  ;;  %v7900_v25 = vor.u32 %v9244_v18, %v7897_v19  ;;  %v7731_v26 = vld [vmem:[%s12815_s7 + $0x178] sm:$0xf]  ;;  %v9390_v18 = vld [vmem:[%s12815_s7 + $0x750] sm:$0xf0] }
 0x308   :  { %v9370_v19 = vld [vmem:[%s12815_s7 + $0x6b4] sm:$0xf] }
 0x309   :  { %5594 = vmatmul.bf16.vlgmr.msra.gmra.mxu3 %v11064_v56  ;;  %5607 = vmatmul.bf16.vlgmr.msrb.gmra.mxu0 %v11064_v56 }
 0x30a   :  { %5638 = vmatpush.bf16.msrb.mxu3 %v8716_v27  ;;  %5651 = vmatpush.bf16.msra.mxu0 %v8720_v28  ;;  %v9223_v27 = vld [vmem:[%s12815_s7 + $0x218] sm:$0xf0]  ;;  %v7904_v28 = vor.u32 %v9265_v21, %v7903_v20  ;;  %v8413_v20 = vld [vmem:[%s12815_s7 + $0x754] sm:$0xf0] }
 0x30b   :  { %5664 = vmatpush.bf16.msra.mxu1 %v8724_v31  ;;  %5677 = vmatpush.bf16.msra.mxu2 %v8728_v32  ;;  %v7733_v31 = vld [vmem:[%s12815_s7 + $0x21c] sm:$0xf0]  ;;  %v7732_v37 = vor.u32 %v9223_v27, %v7731_v26  ;;  %v8416_v26 = vor.u32 %v9370_v19, %v8413_v20  ;;  %v9328_v27 = vld [vmem:[%s12815_s7 + $0x564] sm:$0xf]  ;;  %v9473_v19 = vld [vmem:[%s12815_s7 + $0x9e8] sm:$0xf0] }
 0x30c   :  { %5620 = vmatmul.bf16.vlgmr.msrb.gmra.mxu1 %v11064_v56  ;;  %5633 = vmatmul.bf16.vlgmr.msrb.gmra.mxu2 %v11064_v56  ;;  %v7739_v32 = vld [vmem:[%s12815_s7 + $0x180] sm:$0xf]  ;;  %v7736_v38 = vor.u32 %v9203_v30, %v7733_v31  ;;  %v9349_v30 = vld [vmem:[%s12815_s7 + $0x608] sm:$0xf0] }
 0x30d   :  { %v7740_v42 = vor.u32 %v9224_v33, %v7739_v32  ;;  %v9329_v31 = vld [vmem:[%s12815_s7 + $0x56c] sm:$0xf]  ;;  %v8249_v32 = vld [vmem:[%s12815_s7 + $0x60c] sm:$0xf0] }
 0x30e   :  { %5639 = vmatpush.bf16.msrb.mxu3 %v8552_v39  ;;  %5652 = vmatpush.bf16.msra.mxu0 %v8556_v40  ;;  %v9182_v39 = vld [vmem:[%s12815_s7 + $0xd0] sm:$0xf0]  ;;  %v9453_v20 = vld [vmem:[%s12815_s7 + $0x94c] sm:$0xf] }
 0x30f   :  { %5665 = vmatpush.bf16.msra.mxu1 %v8560_v43  ;;  %5678 = vmatpush.bf16.msra.mxu2 %v8564_v44  ;;  %v9162_v40 = vld [vmem:[%s12815_s7 + $0x34] sm:$0xf]  ;;  %v7744_v43 = vor.u32 %v9204_v34, %v7741_v35  ;;  %v7575_v44 = vld [vmem:[%s12815_s7 + $0x38] sm:$0xf]  ;;  %v7568_v53 = vor.u32 %v9182_v39, %v7567_v36  ;;  %v9307_v36 = vld [vmem:[%s12815_s7 + $0x4b8] sm:$0xf0] }
 0x310   :  { %v7572_v54 = vor.u32 %v9162_v40, %v7569_v41  ;;  %v7576_v59 = vor.u32 %v9183_v45, %v7575_v44  ;;  %v8075_v35 = vld [vmem:[%s12815_s7 + $0x418] sm:$0xf]  ;;  %v9287_v39 = vld [vmem:[%s12815_s7 + $0x41c] sm:$0xf]  ;;  %v8077_v40 = vld [vmem:[%s12815_s7 + $0x4bc] sm:$0xf0] }
 0x311   :  { %v8083_v41 = vld [vmem:[%s12815_s7 + $0x420] sm:$0xf]  ;;  %v8085_v44 = vld [vmem:[%s12815_s7 + $0x4c4] sm:$0xf0]  ;;  %v8076_v45 = vor.u32 %v9307_v36, %v8075_v35  ;;  %v8080_v46 = vor.u32 %v9287_v39, %v8077_v40  ;;  %v9412_v36 = vld [vmem:[%s12815_s7 + $0x804] sm:$0xf] }
 0x312   :  { %5640 = vmatpush.bf16.msrb.mxu3 %v8388_v51  ;;  %5653 = vmatpush.bf16.msra.mxu0 %v8392_v52  ;;  %v8733_v51 = vld [vmem:[%s12815_s7 + $0x9dc] sm:$0xf0]  ;;  %v9433_v39 = vld [vmem:[%s12815_s7 + $0x8a8] sm:$0xf0] }
 0x313   :  { %5666 = vmatpush.bf16.msra.mxu1 %v8396_v55  ;;  %5679 = vmatpush.bf16.msra.mxu2 %v8400_v57  ;;  %v8739_v52 = vld [vmem:[%s12815_s7 + $0x940] sm:$0xf]  ;;  %v9472_v55 = vld [vmem:[%s12815_s7 + $0x9e0] sm:$0xf0]  ;;  %v8736_v62 = vor.u32 %v9451_v50, %v8733_v51  ;;  %v9246_v51 = vld [vmem:[%s12815_s7 + $0x2d4] sm:$0xf] }
 0x314   :  { %v9452_v57 = vld [vmem:[%s12815_s7 + $0x944] sm:$0xf]  ;;  %v9413_v40 = vld [vmem:[%s12815_s7 + $0x80c] sm:$0xf] }
 0x315   :  { %v8744_v2 = vor.u32 %v9452_v57, %v8741_v58  ;;  %v7921_v57 = vld [vmem:[%s12815_s7 + $0x37c] sm:$0xf0]  ;;  %v7912_v58 = vor.u32 %v9266_v48, %v7911_v47  ;;  %v9371_v48 = vld [vmem:[%s12815_s7 + $0x6bc] sm:$0xf] }
 0x316   :  { %5641 = vmatpush.bf16.msrb.mxu3 %v8224_v0  ;;  %5654 = vmatpush.bf16.msra.mxu0 %v8228_v1  ;;  %v9430_v0 = vld [vmem:[%s12815_s7 + $0x890] sm:$0xf0]  ;;  %v8740_v1 = vor.u32 %v9472_v55, %v8739_v52  ;;  %v7913_v52 = vld [vmem:[%s12815_s7 + $0x374] sm:$0xf0]  ;;  %v9247_v55 = vld [vmem:[%s12815_s7 + $0x2dc] sm:$0xf] }
 0x317   :  { %5667 = vmatpush.bf16.msra.mxu1 %v8232_v4  ;;  %5680 = vmatpush.bf16.msra.mxu2 %v8236_v5  ;;  %v8569_v4 = vld [vmem:[%s12815_s7 + $0x894] sm:$0xf0]  ;;  %v8568_v9 = vor.u32 %v9430_v0, %v8567_v63  ;;  %v7924_v63 = vor.u32 %v9247_v55, %v7921_v57  ;;  %v9205_v0 = vld [vmem:[%s12815_s7 + $0x18c] sm:$0xf]  ;;  %v8255_v57 = vld [vmem:[%s12815_s7 + $0x570] sm:$0xf] }
 0x318   :  { %v8575_v5 = vld [vmem:[%s12815_s7 + $0x7f8] sm:$0xf]  ;;  %v8572_v10 = vor.u32 %v9410_v3, %v8569_v4  ;;  %v9226_v3 = vld [vmem:[%s12815_s7 + $0x230] sm:$0xf0] }
 0x319   :  { %v9206_v4 = vld [vmem:[%s12815_s7 + $0x194] sm:$0xf] }
 0x31a   :  { %5642 = vmatpush.bf16.msrb.mxu3 %v8060_v12  ;;  %5655 = vmatpush.bf16.msra.mxu0 %v8064_v13  ;;  %v9389_v12 = vld [vmem:[%s12815_s7 + $0x748] sm:$0xf0]  ;;  %v8576_v13 = vor.u32 %v9431_v6, %v8575_v5  ;;  %v7757_v5 = vld [vmem:[%s12815_s7 + $0x234] sm:$0xf0]  ;;  %v7583_v6 = vld [vmem:[%s12815_s7 + $0x40] sm:$0xf] }
 0x31b   :  { %5668 = vmatpush.bf16.msra.mxu1 %v8068_v16  ;;  %5681 = vmatpush.bf16.msra.mxu2 %v8072_v17  ;;  %v8405_v16 = vld [vmem:[%s12815_s7 + $0x74c] sm:$0xf0]  ;;  %v8404_v21 = vor.u32 %v9389_v12, %v8403_v11  ;;  %v7585_v11 = vld [vmem:[%s12815_s7 + $0xe4] sm:$0xf0] }
 0x31c   :  { %v8411_v17 = vld [vmem:[%s12815_s7 + $0x6b0] sm:$0xf]  ;;  %v8408_v22 = vor.u32 %v9369_v15, %v8405_v16  ;;  %v9185_v15 = vld [vmem:[%s12815_s7 + $0xe8] sm:$0xf0] }
 0x31d   :  { %v9165_v16 = vld [vmem:[%s12815_s7 + $0x4c] sm:$0xf] }
 0x31e   :  { %5643 = vmatpush.bf16.msrb.mxu3 %v7896_v24  ;;  %5656 = vmatpush.bf16.msra.mxu0 %v7900_v25  ;;  %v9348_v24 = vld [vmem:[%s12815_s7 + $0x600] sm:$0xf0]  ;;  %v8412_v25 = vor.u32 %v9390_v18, %v8411_v17  ;;  %v7593_v17 = vld [vmem:[%s12815_s7 + $0xec] sm:$0xf0]  ;;  %v8747_v18 = vld [vmem:[%s12815_s7 + $0x948] sm:$0xf] }
 0x31f   :  { %5669 = vmatpush.bf16.msra.mxu1 %v7904_v28  ;;  %5682 = vmatpush.bf16.msra.mxu2 %v7908_v29  ;;  %v8241_v28 = vld [vmem:[%s12815_s7 + $0x604] sm:$0xf0]  ;;  %v8240_v33 = vor.u32 %v9348_v24, %v8239_v23 }
 0x320   :  { %v8247_v29 = vld [vmem:[%s12815_s7 + $0x568] sm:$0xf]  ;;  %v8244_v34 = vor.u32 %v9328_v27, %v8241_v28  ;;  %v8757_v27 = vld [vmem:[%s12815_s7 + $0x9f4] sm:$0xf0] }
 0x322   :  { %5644 = vmatpush.bf16.msrb.mxu3 %v7732_v37  ;;  %5657 = vmatpush.bf16.msra.mxu0 %v7736_v38  ;;  %v8248_v37 = vor.u32 %v9349_v30, %v8247_v29  ;;  %v8252_v38 = vor.u32 %v9329_v31, %v8249_v32  ;;  %v7596_v29 = vor.u32 %v9165_v16, %v7593_v17  ;;  %v8583_v32 = vld [vmem:[%s12815_s7 + $0x800] sm:$0xf] }
 0x323   :  { %5670 = vmatpush.bf16.msra.mxu1 %v7740_v42  ;;  %5683 = vmatpush.bf16.msra.mxu2 %v7744_v43  ;;  %v9308_v42 = vld [vmem:[%s12815_s7 + $0x4c0] sm:$0xf0]  ;;  %v8748_v30 = vor.u32 %v9473_v19, %v8747_v18  ;;  %v7927_v17 = vld [vmem:[%s12815_s7 + $0x2e0] sm:$0xf] }
 0x324   :  { %v9288_v43 = vld [vmem:[%s12815_s7 + $0x424] sm:$0xf]  ;;  %v8084_v49 = vor.u32 %v9308_v42, %v8083_v41  ;;  %v8593_v41 = vld [vmem:[%s12815_s7 + $0x8ac] sm:$0xf0] }
 0x325   :  { %v8088_v50 = vor.u32 %v9288_v43, %v8085_v44  ;;  %v8419_v44 = vld [vmem:[%s12815_s7 + $0x6b8] sm:$0xf]  ;;  %v8596_v47 = vor.u32 %v9413_v40, %v8593_v41  ;;  %v9268_v18 = vld [vmem:[%s12815_s7 + $0x380] sm:$0xf0] }
 0x326   :  { %5645 = vmatpush.bf16.msrb.mxu3 %v7568_v53  ;;  %5658 = vmatpush.bf16.msra.mxu0 %v7572_v54  ;;  %v7919_v53 = vld [vmem:[%s12815_s7 + $0x2d8] sm:$0xf]  ;;  %v9267_v54 = vld [vmem:[%s12815_s7 + $0x378] sm:$0xf0] }
 0x327   :  { %5671 = vmatpush.bf16.msra.mxu1 %v7576_v59  ;;  %5684 = vmatpush.bf16.msra.mxu2 %v7580_v60  ;;  %v7916_v59 = vor.u32 %v9246_v51, %v7913_v52  ;;  %v7747_v60 = vld [vmem:[%s12815_s7 + $0x188] sm:$0xf]  ;;  %v9392_v51 = vld [vmem:[%s12815_s7 + $0x760] sm:$0xf0] }
 0x328   :  { %v9372_v52 = vld [vmem:[%s12815_s7 + $0x6c4] sm:$0xf] }
 0x329   :  { %5646 = vmatmul.bf16.vlgmr.msrb.gmra.mxu3 %v11064_v56  ;;  %5659 = vmatmul.bf16.vlgmr.msra.gmra.mxu0 %v11064_v56 }
 0x32a   :  { %5690 = vmatpush.bf16.msra.mxu3 %v8732_v61  ;;  %5703 = vmatpush.bf16.msrb.mxu0 %v8736_v62  ;;  %v9225_v61 = vld [vmem:[%s12815_s7 + $0x228] sm:$0xf0]  ;;  %v7920_v62 = vor.u32 %v9267_v54, %v7919_v53  ;;  %v8429_v53 = vld [vmem:[%s12815_s7 + $0x764] sm:$0xf0] }
 0x32b   :  { %5716 = vmatpush.bf16.msrb.mxu1 %v8740_v1  ;;  %5729 = vmatpush.bf16.msrb.mxu2 %v8744_v2  ;;  %v7749_v1 = vld [vmem:[%s12815_s7 + $0x22c] sm:$0xf0]  ;;  %v7748_v7 = vor.u32 %v9225_v61, %v7747_v60  ;;  %v8432_v60 = vor.u32 %v9372_v52, %v8429_v53  ;;  %v9330_v61 = vld [vmem:[%s12815_s7 + $0x574] sm:$0xf]  ;;  %v9475_v52 = vld [vmem:[%s12815_s7 + $0x9f8] sm:$0xf0] }
 0x32c   :  { %5672 = vmatmul.bf16.vlgmr.msra.gmra.mxu1 %v11064_v56  ;;  %5685 = vmatmul.bf16.vlgmr.msra.gmra.mxu2 %v11064_v56  ;;  %v7755_v2 = vld [vmem:[%s12815_s7 + $0x190] sm:$0xf]  ;;  %v7752_v8 = vor.u32 %v9205_v0, %v7749_v1  ;;  %v9351_v0 = vld [vmem:[%s12815_s7 + $0x618] sm:$0xf0] }
 0x32d   :  { %v7756_v12 = vor.u32 %v9226_v3, %v7755_v2  ;;  %v9331_v1 = vld [vmem:[%s12815_s7 + $0x57c] sm:$0xf]  ;;  %v8265_v2 = vld [vmem:[%s12815_s7 + $0x61c] sm:$0xf0] }
 0x32e   :  { %5691 = vmatpush.bf16.msra.mxu3 %v8568_v9  ;;  %5704 = vmatpush.bf16.msrb.mxu0 %v8572_v10  ;;  %v9184_v9 = vld [vmem:[%s12815_s7 + $0xe0] sm:$0xf0]  ;;  %v9455_v53 = vld [vmem:[%s12815_s7 + $0x95c] sm:$0xf] }
 0x32f   :  { %5717 = vmatpush.bf16.msrb.mxu1 %v8576_v13  ;;  %5730 = vmatpush.bf16.msrb.mxu2 %v8580_v14  ;;  %v9164_v10 = vld [vmem:[%s12815_s7 + $0x44] sm:$0xf]  ;;  %v7760_v13 = vor.u32 %v9206_v4, %v7757_v5  ;;  %v7591_v14 = vld [vmem:[%s12815_s7 + $0x48] sm:$0xf]  ;;  %v7584_v23 = vor.u32 %v9184_v9, %v7583_v6  ;;  %v9309_v6 = vld [vmem:[%s12815_s7 + $0x4c8] sm:$0xf0] }
 0x330   :  { %v7588_v24 = vor.u32 %v9164_v10, %v7585_v11  ;;  %v7592_v28 = vor.u32 %v9185_v15, %v7591_v14  ;;  %v8091_v5 = vld [vmem:[%s12815_s7 + $0x428] sm:$0xf]  ;;  %v9289_v9 = vld [vmem:[%s12815_s7 + $0x42c] sm:$0xf]  ;;  %v8093_v10 = vld [vmem:[%s12815_s7 + $0x4cc] sm:$0xf0] }
 0x331   :  { %v8099_v11 = vld [vmem:[%s12815_s7 + $0x430] sm:$0xf]  ;;  %v8101_v14 = vld [vmem:[%s12815_s7 + $0x4d4] sm:$0xf0]  ;;  %v8092_v15 = vor.u32 %v9309_v6, %v8091_v5  ;;  %v8096_v16 = vor.u32 %v9289_v9, %v8093_v10  ;;  %v9414_v6 = vld [vmem:[%s12815_s7 + $0x814] sm:$0xf] }
 0x332   :  { %5692 = vmatpush.bf16.msra.mxu3 %v8404_v21  ;;  %5705 = vmatpush.bf16.msrb.mxu0 %v8408_v22  ;;  %v8749_v21 = vld [vmem:[%s12815_s7 + $0x9ec] sm:$0xf0]  ;;  %v9435_v9 = vld [vmem:[%s12815_s7 + $0x8b8] sm:$0xf0] }
 0x333   :  { %5718 = vmatpush.bf16.msrb.mxu1 %v8412_v25  ;;  %5731 = vmatpush.bf16.msrb.mxu2 %v8416_v26  ;;  %v8755_v22 = vld [vmem:[%s12815_s7 + $0x950] sm:$0xf]  ;;  %v9474_v25 = vld [vmem:[%s12815_s7 + $0x9f0] sm:$0xf0]  ;;  %v8752_v31 = vor.u32 %v9453_v20, %v8749_v21  ;;  %v9248_v21 = vld [vmem:[%s12815_s7 + $0x2e4] sm:$0xf] }
 0x334   :  { %v9454_v26 = vld [vmem:[%s12815_s7 + $0x954] sm:$0xf]  ;;  %v9415_v10 = vld [vmem:[%s12815_s7 + $0x81c] sm:$0xf] }
 0x335   :  { %v8760_v35 = vor.u32 %v9454_v26, %v8757_v27  ;;  %v7937_v26 = vld [vmem:[%s12815_s7 + $0x38c] sm:$0xf0]  ;;  %v7928_v27 = vor.u32 %v9268_v18, %v7927_v17  ;;  %v9373_v18 = vld [vmem:[%s12815_s7 + $0x6cc] sm:$0xf] }
 0x336   :  { %5693 = vmatpush.bf16.msra.mxu3 %v8240_v33  ;;  %5706 = vmatpush.bf16.msrb.mxu0 %v8244_v34  ;;  %v9432_v33 = vld [vmem:[%s12815_s7 + $0x8a0] sm:$0xf0]  ;;  %v8756_v34 = vor.u32 %v9474_v25, %v8755_v22  ;;  %v7929_v22 = vld [vmem:[%s12815_s7 + $0x384] sm:$0xf0]  ;;  %v9249_v25 = vld [vmem:[%s12815_s7 + $0x2ec] sm:$0xf] }
 0x337   :  { %5719 = vmatpush.bf16.msrb.mxu1 %v8248_v37  ;;  %5732 = vmatpush.bf16.msrb.mxu2 %v8252_v38  ;;  %v8585_v37 = vld [vmem:[%s12815_s7 + $0x8a4] sm:$0xf0]  ;;  %v8584_v42 = vor.u32 %v9432_v33, %v8583_v32  ;;  %v7940_v32 = vor.u32 %v9249_v25, %v7937_v26  ;;  %v9207_v33 = vld [vmem:[%s12815_s7 + $0x19c] sm:$0xf] }
 0x338   :  { %v8591_v38 = vld [vmem:[%s12815_s7 + $0x808] sm:$0xf]  ;;  %v8588_v43 = vor.u32 %v9412_v36, %v8585_v37  ;;  %v9228_v36 = vld [vmem:[%s12815_s7 + $0x240] sm:$0xf0] }
 0x339   :  { %v9208_v37 = vld [vmem:[%s12815_s7 + $0x1a4] sm:$0xf] }
 0x33a   :  { %5694 = vmatpush.bf16.msra.mxu3 %v8076_v45  ;;  %5707 = vmatpush.bf16.msrb.mxu0 %v8080_v46  ;;  %v9391_v45 = vld [vmem:[%s12815_s7 + $0x758] sm:$0xf0]  ;;  %v8592_v46 = vor.u32 %v9433_v39, %v8591_v38  ;;  %v7773_v38 = vld [vmem:[%s12815_s7 + $0x244] sm:$0xf0]  ;;  %v7599_v39 = vld [vmem:[%s12815_s7 + $0x50] sm:$0xf] }
 0x33b   :  { %5720 = vmatpush.bf16.msrb.mxu1 %v8084_v49  ;;  %5733 = vmatpush.bf16.msrb.mxu2 %v8088_v50  ;;  %v8421_v49 = vld [vmem:[%s12815_s7 + $0x75c] sm:$0xf0]  ;;  %v8420_v54 = vor.u32 %v9391_v45, %v8419_v44  ;;  %v7601_v44 = vld [vmem:[%s12815_s7 + $0xf4] sm:$0xf0] }
 0x33c   :  { %v8427_v50 = vld [vmem:[%s12815_s7 + $0x6c0] sm:$0xf]  ;;  %v8424_v55 = vor.u32 %v9371_v48, %v8421_v49  ;;  %v9187_v48 = vld [vmem:[%s12815_s7 + $0xf8] sm:$0xf0] }
 0x33d   :  { %v9167_v49 = vld [vmem:[%s12815_s7 + $0x5c] sm:$0xf] }
 0x33e   :  { %5695 = vmatpush.bf16.msra.mxu3 %v7912_v58  ;;  %5708 = vmatpush.bf16.msrb.mxu0 %v7916_v59  ;;  %v9350_v58 = vld [vmem:[%s12815_s7 + $0x610] sm:$0xf0]  ;;  %v8428_v59 = vor.u32 %v9392_v51, %v8427_v50  ;;  %v7609_v50 = vld [vmem:[%s12815_s7 + $0xfc] sm:$0xf0]  ;;  %v8763_v51 = vld [vmem:[%s12815_s7 + $0x958] sm:$0xf] }
 0x33f   :  { %5721 = vmatpush.bf16.msrb.mxu1 %v7920_v62  ;;  %5734 = vmatpush.bf16.msrb.mxu2 %v7924_v63  ;;  %v8257_v62 = vld [vmem:[%s12815_s7 + $0x614] sm:$0xf0]  ;;  %v8256_v3 = vor.u32 %v9350_v58, %v8255_v57 }
 0x340   :  { %v8263_v63 = vld [vmem:[%s12815_s7 + $0x578] sm:$0xf]  ;;  %v8260_v4 = vor.u32 %v9330_v61, %v8257_v62  ;;  %v8773_v61 = vld [vmem:[%s12815_s7 + $0xa04] sm:$0xf0] }
 0x342   :  { %5696 = vmatpush.bf16.msra.mxu3 %v7748_v7  ;;  %5709 = vmatpush.bf16.msrb.mxu0 %v7752_v8  ;;  %v8264_v7 = vor.u32 %v9351_v0, %v8263_v63  ;;  %v8268_v8 = vor.u32 %v9331_v1, %v8265_v2  ;;  %v7612_v63 = vor.u32 %v9167_v49, %v7609_v50  ;;  %v8599_v2 = vld [vmem:[%s12815_s7 + $0x810] sm:$0xf]  ;;  %v9312_v49 = vld [vmem:[%s12815_s7 + $0x4e0] sm:$0xf0] }
 0x343   :  { %5722 = vmatpush.bf16.msrb.mxu1 %v7756_v12  ;;  %5735 = vmatpush.bf16.msrb.mxu2 %v7760_v13  ;;  %v9310_v12 = vld [vmem:[%s12815_s7 + $0x4d0] sm:$0xf0]  ;;  %v8764_v0 = vor.u32 %v9475_v52, %v8763_v51  ;;  %v9292_v50 = vld [vmem:[%s12815_s7 + $0x444] sm:$0xf]  ;;  %v8117_v51 = vld [vmem:[%s12815_s7 + $0x4e4] sm:$0xf0] }
 0x344   :  { %v9290_v13 = vld [vmem:[%s12815_s7 + $0x434] sm:$0xf]  ;;  %v8100_v19 = vor.u32 %v9310_v12, %v8099_v11  ;;  %v8609_v11 = vld [vmem:[%s12815_s7 + $0x8bc] sm:$0xf0] }
 0x345   :  { %v8104_v20 = vor.u32 %v9290_v13, %v8101_v14  ;;  %v8435_v14 = vld [vmem:[%s12815_s7 + $0x6c8] sm:$0xf]  ;;  %v8612_v17 = vor.u32 %v9415_v10, %v8609_v11  ;;  %v11961_v52 = vld [vmem:[%s12816_s8] sm:$0xff]  ;;  %v9229_v11 = vld [vmem:[%s12815_s7 + $0x248] sm:$0xf0] }
 0x346   :  { %5697 = vmatpush.bf16.msra.mxu3 %v7584_v23  ;;  %5710 = vmatpush.bf16.msrb.mxu0 %v7588_v24  ;;  %v7935_v23 = vld [vmem:[%s12815_s7 + $0x2e8] sm:$0xf]  ;;  %v9269_v24 = vld [vmem:[%s12815_s7 + $0x388] sm:$0xf0] }
 0x347   :  { %5723 = vmatpush.bf16.msrb.mxu1 %v7592_v28  ;;  %5736 = vmatpush.bf16.msrb.mxu2 %v7596_v29  ;;  %v7932_v28 = vor.u32 %v9248_v21, %v7929_v22  ;;  %v7763_v29 = vld [vmem:[%s12815_s7 + $0x198] sm:$0xf]  ;;  %v9394_v21 = vld [vmem:[%s12815_s7 + $0x770] sm:$0xf0] }
 0x348   :  { %v9374_v22 = vld [vmem:[%s12815_s7 + $0x6d4] sm:$0xf] }
 0x349   :  { %5698 = vmatmul.bf16.vlgmr.msra.gmra.mxu3 %v11064_v56  ;;  %5711 = vmatmul.bf16.vlgmr.msrb.gmra.mxu0 %v11064_v56 }
 0x34a   :  { %5742 = vmatpush.bf16.msrb.mxu3 %v8748_v30  ;;  %5755 = vmatpush.bf16.msra.mxu0 %v8752_v31  ;;  %v9227_v30 = vld [vmem:[%s12815_s7 + $0x238] sm:$0xf0]  ;;  %v7936_v31 = vor.u32 %v9269_v24, %v7935_v23  ;;  %v8445_v23 = vld [vmem:[%s12815_s7 + $0x774] sm:$0xf0] }
 0x34b   :  { %5768 = vmatpush.bf16.msra.mxu1 %v8756_v34  ;;  %5781 = vmatpush.bf16.msra.mxu2 %v8760_v35  ;;  %v7765_v34 = vld [vmem:[%s12815_s7 + $0x23c] sm:$0xf0]  ;;  %v7764_v40 = vor.u32 %v9227_v30, %v7763_v29  ;;  %v9352_v29 = vld [vmem:[%s12815_s7 + $0x620] sm:$0xf0] }
 0x34c   :  { %5724 = vmatmul.bf16.vlgmr.msrb.gmra.mxu1 %v11064_v56  ;;  %5737 = vmatmul.bf16.vlgmr.msrb.gmra.mxu2 %v11064_v56  ;;  %v7771_v35 = vld [vmem:[%s12815_s7 + $0x1a0] sm:$0xf]  ;;  %v7768_v41 = vor.u32 %v9207_v33, %v7765_v34  ;;  %v8273_v33 = vld [vmem:[%s12815_s7 + $0x624] sm:$0xf0] }
 0x34d   :  { %v7772_v45 = vor.u32 %v9228_v36, %v7771_v35  ;;  %v8279_v34 = vld [vmem:[%s12815_s7 + $0x588] sm:$0xf]  ;;  %v9353_v35 = vld [vmem:[%s12815_s7 + $0x628] sm:$0xf0] }
 0x34e   :  { %5743 = vmatpush.bf16.msrb.mxu3 %v8584_v42  ;;  %5756 = vmatpush.bf16.msra.mxu0 %v8588_v43  ;;  %v9186_v42 = vld [vmem:[%s12815_s7 + $0xf0] sm:$0xf0]  ;;  %v9333_v36 = vld [vmem:[%s12815_s7 + $0x58c] sm:$0xf] }
 0x34f   :  { %5769 = vmatpush.bf16.msra.mxu1 %v8592_v46  ;;  %5782 = vmatpush.bf16.msra.mxu2 %v8596_v47  ;;  %v9166_v43 = vld [vmem:[%s12815_s7 + $0x54] sm:$0xf]  ;;  %v7776_v46 = vor.u32 %v9208_v37, %v7773_v38  ;;  %v7607_v47 = vld [vmem:[%s12815_s7 + $0x58] sm:$0xf]  ;;  %v7600_v57 = vor.u32 %v9186_v42, %v7599_v39  ;;  %v8281_v37 = vld [vmem:[%s12815_s7 + $0x62c] sm:$0xf0]  ;;  %v8280_v42 = vor.u32 %v9353_v35, %v8279_v34 }
 0x350   :  { %v7604_v58 = vor.u32 %v9166_v43, %v7601_v44  ;;  %v7608_v62 = vor.u32 %v9187_v48, %v7607_v47  ;;  %v8284_v43 = vor.u32 %v9333_v36, %v8281_v37  ;;  %v8115_v47 = vld [vmem:[%s12815_s7 + $0x440] sm:$0xf]  ;;  %v9169_v37 = vld [vmem:[%s12815_s7 + $0x6c] sm:$0xf] }
 0x352   :  { %5744 = vmatpush.bf16.msrb.mxu3 %v8420_v54  ;;  %5757 = vmatpush.bf16.msra.mxu0 %v8424_v55  ;;  %v8765_v54 = vld [vmem:[%s12815_s7 + $0x9fc] sm:$0xf0] }
 0x353   :  { %5770 = vmatpush.bf16.msra.mxu1 %v8428_v59  ;;  %5783 = vmatpush.bf16.msra.mxu2 %v8432_v60  ;;  %v8771_v55 = vld [vmem:[%s12815_s7 + $0x960] sm:$0xf]  ;;  %v9476_v59 = vld [vmem:[%s12815_s7 + $0xa00] sm:$0xf0]  ;;  %v8768_v1 = vor.u32 %v9455_v53, %v8765_v54  ;;  %v3752_v54 = vperm.slane %v11961_v52, 0 }
 0x354   :  { %v9456_v60 = vld [vmem:[%s12815_s7 + $0x964] sm:$0xf] }
 0x355   :  { %v8776_v5 = vor.u32 %v9456_v60, %v8773_v61  ;;  %v9270_v60 = vld [vmem:[%s12815_s7 + $0x390] sm:$0xf0]  ;;  %v8116_v61 = vor.u32 %v9312_v49, %v8115_v47 }
 0x356   :  { %5745 = vmatpush.bf16.msrb.mxu3 %v8256_v3  ;;  %5758 = vmatpush.bf16.msra.mxu0 %v8260_v4  ;;  %v9434_v3 = vld [vmem:[%s12815_s7 + $0x8b0] sm:$0xf0]  ;;  %v8772_v4 = vor.u32 %v9476_v59, %v8771_v55  ;;  %v7943_v59 = vld [vmem:[%s12815_s7 + $0x2f0] sm:$0xf] }
 0x357   :  { %5771 = vmatpush.bf16.msra.mxu1 %v8264_v7  ;;  %5784 = vmatpush.bf16.msra.mxu2 %v8268_v8  ;;  %v8601_v7 = vld [vmem:[%s12815_s7 + $0x8b4] sm:$0xf0]  ;;  %v8600_v12 = vor.u32 %v9434_v3, %v8599_v2  ;;  %v9271_v2 = vld [vmem:[%s12815_s7 + $0x398] sm:$0xf0]  ;;  %v12078_v47 = vld [vmem:[%s12815_s7 + $0xa10] sm:$0xf0] }
 0x358   :  { %v8607_v8 = vld [vmem:[%s12815_s7 + $0x818] sm:$0xf]  ;;  %v8604_v13 = vor.u32 %v9414_v6, %v8601_v7  ;;  %v9251_v3 = vld [vmem:[%s12815_s7 + $0x2fc] sm:$0xf]  ;;  %v3754_v6 = vperm.slane %v11961_v52, 2  ;;  %v3755_v7 = vperm.slane %v11961_v52, 3 }
 0x35a   :  { %5746 = vmatpush.bf16.msrb.mxu3 %v8092_v15  ;;  %5759 = vmatpush.bf16.msra.mxu0 %v8096_v16  ;;  %v9393_v15 = vld [vmem:[%s12815_s7 + $0x768] sm:$0xf0]  ;;  %v8608_v16 = vor.u32 %v9435_v9, %v8607_v8  ;;  %v7779_v8 = vld [vmem:[%s12815_s7 + $0x1a8] sm:$0xf]  ;;  %v7944_v9 = vor.u32 %v9270_v60, %v7943_v59  ;;  %v12098_v60 = vld [vmem:[%s12815_s7 + $0x820] sm:$0xf] }
 0x35b   :  { %5772 = vmatpush.bf16.msra.mxu1 %v8100_v19  ;;  %5785 = vmatpush.bf16.msra.mxu2 %v8104_v20  ;;  %v8437_v19 = vld [vmem:[%s12815_s7 + $0x76c] sm:$0xf0]  ;;  %v8436_v25 = vor.u32 %v9393_v15, %v8435_v14  ;;  %v7780_v34 = vor.u32 %v9229_v11, %v7779_v8  ;;  %v8623_v8 = vld [vmem:[%s12815_s7 + $0x828] sm:$0xf] }
 0x35c   :  { %v8443_v20 = vld [vmem:[%s12815_s7 + $0x6d0] sm:$0xf]  ;;  %v8440_v26 = vor.u32 %v9373_v18, %v8437_v19  ;;  %v9230_v18 = vld [vmem:[%s12815_s7 + $0x250] sm:$0xf0] }
 0x35d   :  { %v8444_v30 = vor.u32 %v9394_v21, %v8443_v20  ;;  %v9210_v19 = vld [vmem:[%s12815_s7 + $0x1b4] sm:$0xf] }
 0x35e   :  { %5747 = vmatpush.bf16.msrb.mxu3 %v7928_v27  ;;  %5760 = vmatpush.bf16.msra.mxu0 %v7932_v28  ;;  %v8271_v28 = vld [vmem:[%s12815_s7 + $0x580] sm:$0xf] }
 0x35f   :  { %5773 = vmatpush.bf16.msra.mxu1 %v7936_v31  ;;  %5786 = vmatpush.bf16.msra.mxu2 %v7940_v32  ;;  %v8448_v31 = vor.u32 %v9374_v22, %v8445_v23  ;;  %v9332_v32 = vld [vmem:[%s12815_s7 + $0x584] sm:$0xf]  ;;  %v8272_v38 = vor.u32 %v9352_v29, %v8271_v28  ;;  %v7789_v22 = vld [vmem:[%s12815_s7 + $0x254] sm:$0xf0]  ;;  %v12018_v23 = vld [vmem:[%s12815_s7 + $0x60] sm:$0xf] }
 0x360   :  { %v8276_v39 = vor.u32 %v9332_v32, %v8273_v33  ;;  %v12028_v29 = vld [vmem:[%s12815_s7 + $0x64] sm:$0xf]  ;;  %v12043_v32 = vld [vmem:[%s12815_s7 + $0x108] sm:$0xf0] }
 0x362   :  { %5748 = vmatpush.bf16.msrb.mxu3 %v7764_v40  ;;  %5761 = vmatpush.bf16.msra.mxu0 %v7768_v41  ;;  %v8107_v40 = vld [vmem:[%s12815_s7 + $0x438] sm:$0xf]  ;;  %v9311_v41 = vld [vmem:[%s12815_s7 + $0x4d8] sm:$0xf0] }
 0x363   :  { %5774 = vmatpush.bf16.msra.mxu1 %v7772_v45  ;;  %5787 = vmatpush.bf16.msra.mxu2 %v7776_v46  ;;  %v9291_v45 = vld [vmem:[%s12815_s7 + $0x43c] sm:$0xf]  ;;  %v8109_v46 = vld [vmem:[%s12815_s7 + $0x4dc] sm:$0xf0]  ;;  %v8108_v55 = vor.u32 %v9311_v41, %v8107_v40  ;;  %v7792_v41 = vor.u32 %v9210_v19, %v7789_v22  ;;  %v8451_v22 = vld [vmem:[%s12815_s7 + $0x6d8] sm:$0xf] }
 0x365   :  { %v11906_v24 = vpop.f32.mrf.mxu0 }
 0x366   :  { %5749 = vmatpush.bf16.msrb.mxu3 %v7600_v57  ;;  %5762 = vmatpush.bf16.msra.mxu0 %v7604_v58  ;;  %v11908_v27 = vpop.f32.mrf.mxu1  ;;  %v8112_v57 = vor.u32 %v9291_v45, %v8109_v46  ;;  %v12073_v46 = vld [vmem:[%s12815_s7 + $0x970] sm:$0xf] }
 0x367   :  { %5775 = vmatpush.bf16.msra.mxu1 %v7608_v62  ;;  %5788 = vmatpush.bf16.msra.mxu2 %v7612_v63  ;;  %v8120_v62 = vor.u32 %v9292_v50, %v8117_v51  ;;  %v9250_v63 = vld [vmem:[%s12815_s7 + $0x2f4] sm:$0xf]  ;;  %v3758_v50 = vperm.slane %v11961_v52, 6 }
 0x369   :  { %5750 = vmatmul.bf16.vlgmr.msrb.gmra.mxu3 %v11064_v56  ;;  %5763 = vmatmul.bf16.vlgmr.msra.gmra.mxu0 %v11064_v56 }
 0x36a   :  { %5794 = vmatpush.bf16.msra.mxu3 %v8764_v0  ;;  %5807 = vmatpush.bf16.msrb.mxu0 %v8768_v1  ;;  %v7945_v0 = vld [vmem:[%s12815_s7 + $0x394] sm:$0xf0] }
 0x36b   :  { %5820 = vmatpush.bf16.msrb.mxu1 %v8772_v4  ;;  %5833 = vmatpush.bf16.msrb.mxu2 %v8776_v5  ;;  %v5491_v44 = vpop.f32.mrf.mxu3  ;;  %v7951_v1 = vld [vmem:[%s12815_s7 + $0x2f8] sm:$0xf]  ;;  %v7953_v4 = vld [vmem:[%s12815_s7 + $0x39c] sm:$0xf0]  ;;  %v3753_v5 = vperm.slane %v11961_v52, 1  ;;  %v7948_v10 = vor.u32 %v9250_v63, %v7945_v0 }
 0x36c   :  { %5776 = vmatmul.bf16.vlgmr.msra.gmra.mxu1 %v11064_v56  ;;  %5789 = vmatmul.bf16.vlgmr.msra.gmra.mxu2 %v11064_v56  ;;  %v5530_v48 = vpop.f32.mrf.mxu2  ;;  %v7952_v14 = vor.u32 %v9271_v2, %v7951_v1  ;;  %v7956_v15 = vor.u32 %v9251_v3, %v7953_v4  ;;  %v5492_v20 = vadd.f32 %v5491_v44, %v3752_v54  ;;  %v8781_v44 = vld [vmem:[%s12815_s7 + $0xa0c] sm:$0xf0]  ;;  %v8789_v54 = vld [vmem:[%s12815_s7 + $0xa14] sm:$0xf0]  ;;  %v9436_v0 = vld [vmem:[%s12815_s7 + $0x8c0] sm:$0xf0] }
 0x36d   :  { %v5506_v53 = vpop.f32.mrf.mxu0  ;;  %v5505_v33 = vadd.f32 %v11906_v24, %v3753_v5  ;;  %v5518_v24 = vadd.f32 %v11908_v27, %v3754_v6  ;;  %v3757_v27 = vperm.slane %v11961_v52, 5  ;;  %v9416_v1 = vld [vmem:[%s12815_s7 + $0x824] sm:$0xf]  ;;  %v8617_v2 = vld [vmem:[%s12815_s7 + $0x8c4] sm:$0xf0] }
 0x36e   :  { %5795 = vmatpush.bf16.msra.mxu3 %v8600_v12  ;;  %5808 = vmatpush.bf16.msrb.mxu0 %v8604_v13  ;;  %v5519_v58 = vpop.f32.mrf.mxu1  ;;  %v9209_v12 = vld [vmem:[%s12815_s7 + $0x1ac] sm:$0xf]  ;;  %v7781_v13 = vld [vmem:[%s12815_s7 + $0x24c] sm:$0xf0]  ;;  %v9458_v53 = vld [vmem:[%s12815_s7 + $0x974] sm:$0xf] }
 0x36f   :  { %5821 = vmatpush.bf16.msrb.mxu1 %v8608_v16  ;;  %5834 = vmatpush.bf16.msrb.mxu2 %v8612_v17  ;;  %v7787_v17 = vld [vmem:[%s12815_s7 + $0x1b0] sm:$0xf]  ;;  %v7784_v35 = vor.u32 %v9209_v12, %v7781_v13  ;;  %v12067_v45 = vpack.c.bf16 %v5505_v33, %v5492_v20  ;;  %v8792_v5 = vor.u32 %v9458_v53, %v8789_v54  ;;  %v8289_v53 = vld [vmem:[%s12815_s7 + $0x634] sm:$0xf0] }
 0x370   :  { %v7788_v40 = vor.u32 %v9230_v18, %v7787_v17  ;;  %v8616_v20 = vor.u32 %v9436_v0, %v12098_v60  ;;  %v8295_v54 = vld [vmem:[%s12815_s7 + $0x598] sm:$0xf] }
 0x371   :  { %v6057_v3 = vrot.slane %v12067_v45, 3 }
 0x372   :  { %5796 = vmatpush.bf16.msra.mxu3 %v8436_v25  ;;  %5809 = vmatpush.bf16.msrb.mxu0 %v8440_v26  ;;  %v12023_v25 = vld [vmem:[%s12815_s7 + $0x100] sm:$0xf0]  ;;  %v5531_v26 = vadd.f32 %v5530_v48, %v3755_v7  ;;  %v3756_v48 = vperm.slane %v11961_v52, 4 }
 0x373   :  { %5822 = vmatpush.bf16.msrb.mxu1 %v8444_v30  ;;  %5835 = vmatpush.bf16.msrb.mxu2 %v8448_v31  ;;  %v5493_v16 = vpop.f32.mrf.mxu3  ;;  %v12033_v30 = vld [vmem:[%s12815_s7 + $0x104] sm:$0xf0]  ;;  %v7616_v51 = vor.u32 %v12023_v25, %v12018_v23 }
 0x374   :  { %v5532_v21 = vpop.f32.mrf.mxu2  ;;  %v12038_v31 = vld [vmem:[%s12815_s7 + $0x68] sm:$0xf]  ;;  %v6016_v49 = vpack.c.bf16 %v5531_v26, %v5518_v24  ;;  %v8625_v16 = vld [vmem:[%s12815_s7 + $0x8cc] sm:$0xf0] }
 0x375   :  { %v5556_v28 = vpop.f32.mrf.mxu0  ;;  %v7624_v58 = vor.u32 %v12043_v32, %v12038_v31  ;;  %v8620_v21 = vor.u32 %v9416_v1, %v8617_v2  ;;  %v6095_v31 = vsel %vm2771_vm0, %v12067_v45, %v6057_v3  ;;  %v8461_v24 = vld [vmem:[%s12815_s7 + $0x784] sm:$0xf0]  ;;  %v9293_v2 = vld [vmem:[%s12815_s7 + $0x44c] sm:$0xf]  ;;  %v8125_v3 = vld [vmem:[%s12815_s7 + $0x4ec] sm:$0xf0] }
 0x376   :  { %5797 = vmatpush.bf16.msra.mxu3 %v8272_v38  ;;  %5810 = vmatpush.bf16.msrb.mxu0 %v8276_v39  ;;  %v5569_v36 = vpop.f32.mrf.mxu1  ;;  %v7625_v38 = vld [vmem:[%s12815_s7 + $0x10c] sm:$0xf0]  ;;  %v12055_v39 = vld [vmem:[%s12815_s7 + $0x968] sm:$0xf]  ;;  %v5557_v4 = vadd.f32 %v5556_v28, %v3757_v27  ;;  %v6059_v11 = vrot.slane %v6016_v49, 1 }
 0x377   :  { %5823 = vmatpush.bf16.msrb.mxu1 %v8280_v42  ;;  %5836 = vmatpush.bf16.msrb.mxu2 %v8284_v43  ;;  %v9477_v42 = vld [vmem:[%s12815_s7 + $0xa08] sm:$0xf0]  ;;  %v7628_v59 = vor.u32 %v9169_v37, %v7625_v38  ;;  %v5570_v12 = vadd.f32 %v5569_v36, %v3758_v50  ;;  %v8459_v36 = vld [vmem:[%s12815_s7 + $0x6e0] sm:$0xf]  ;;  %v9396_v38 = vld [vmem:[%s12815_s7 + $0x780] sm:$0xf0] }
 0x378   :  { %v9457_v43 = vld [vmem:[%s12815_s7 + $0x96c] sm:$0xf]  ;;  %v8460_v50 = vor.u32 %v9396_v38, %v8459_v36  ;;  %v9212_v36 = vld [vmem:[%s12815_s7 + $0x1c4] sm:$0xf]  ;;  %v7631_v38 = vld [vmem:[%s12815_s7 + $0x70] sm:$0xf] }
 0x37a   :  { %5798 = vmatpush.bf16.msra.mxu3 %v8108_v55  ;;  %5811 = vmatpush.bf16.msrb.mxu0 %v8112_v57  ;;  %v3759_v55 = vperm.slane %v11961_v52, 7  ;;  %v7620_v57 = vor.u32 %v12028_v29, %v12033_v30  ;;  %v8784_v52 = vor.u32 %v9457_v43, %v8781_v44  ;;  %v9395_v29 = vld [vmem:[%s12815_s7 + $0x778] sm:$0xf0] }
 0x37b   :  { %5824 = vmatpush.bf16.msrb.mxu1 %v8116_v61  ;;  %5837 = vmatpush.bf16.msrb.mxu2 %v8120_v62  ;;  %v8780_v61 = vor.u32 %v9477_v42, %v12055_v39  ;;  %v8788_v62 = vor.u32 %v12078_v47, %v12073_v46  ;;  %v5543_v63 = vpop.f32.mrf.mxu3  ;;  %v9375_v30 = vld [vmem:[%s12815_s7 + $0x6dc] sm:$0xf]  ;;  %v9376_v39 = vld [vmem:[%s12815_s7 + $0x6e4] sm:$0xf]  ;;  %v8287_v46 = vld [vmem:[%s12815_s7 + $0x590] sm:$0xf] }
 0x37c   :  { %v5544_v6 = vadd.f32 %v5543_v63, %v3756_v48  ;;  %v5582_v7 = vpop.f32.mrf.mxu2  ;;  %v9354_v47 = vld [vmem:[%s12815_s7 + $0x630] sm:$0xf0]  ;;  %v9313_v63 = vld [vmem:[%s12815_s7 + $0x4e8] sm:$0xf0] }
 0x37d   :  { %v5583_v13 = vadd.f32 %v5582_v7, %v3759_v55  ;;  %v9334_v48 = vld [vmem:[%s12815_s7 + $0x594] sm:$0xf]  ;;  %v9355_v55 = vld [vmem:[%s12815_s7 + $0x638] sm:$0xf0]  ;;  %v8133_v7 = vld [vmem:[%s12815_s7 + $0x4f4] sm:$0xf0] }
 0x37e   :  { %5799 = vmatpush.bf16.msra.mxu3 %v7944_v9  ;;  %5812 = vmatpush.bf16.msrb.mxu0 %v7948_v10  ;;  %v9437_v9 = vld [vmem:[%s12815_s7 + $0x8c8] sm:$0xf0]  ;;  %v6058_v10 = vrot.slane %v6016_v49, 6  ;;  %v6017_v17 = vpack.c.bf16 %v5557_v4, %v5544_v6  ;;  %v5571_v18 = vpop.f32.mrf.mxu1  ;;  %v8296_v0 = vor.u32 %v9355_v55, %v8295_v54  ;;  %v8131_v4 = vld [vmem:[%s12815_s7 + $0x450] sm:$0xf] }
 0x37f   :  { %5825 = vmatpush.bf16.msrb.mxu1 %v7952_v14  ;;  %5838 = vmatpush.bf16.msrb.mxu2 %v7956_v15  ;;  %v5558_v14 = vpop.f32.mrf.mxu0  ;;  %v9417_v15 = vld [vmem:[%s12815_s7 + $0x82c] sm:$0xf]  ;;  %v6018_v19 = vpack.c.bf16 %v5583_v13, %v5570_v12  ;;  %v8624_v26 = vor.u32 %v9437_v9, %v8623_v8  ;;  %v9294_v6 = vld [vmem:[%s12815_s7 + $0x454] sm:$0xf]  ;;  %v8128_v9 = vor.u32 %v9293_v2, %v8125_v3  ;;  %v8797_v54 = vld [vmem:[%s12815_s7 + $0xa1c] sm:$0xf0] }
 0x380   :  { %v6060_v23 = vrot.slane %v6017_v17, 4  ;;  %v6061_v25 = vrot.slane %v6017_v17, 7  ;;  %v8628_v28 = vor.u32 %v9417_v15, %v8625_v16  ;;  %v6099_v32 = vsel %vm6096_vm4, %v6058_v10, %v6059_v11  ;;  %v7959_v10 = vld [vmem:[%s12815_s7 + $0x300] sm:$0xf]  ;;  %v9272_v11 = vld [vmem:[%s12815_s7 + $0x3a0] sm:$0xf0] }
 0x381   :  { %v6062_v33 = vrot.slane %v6018_v19, 2  ;;  %v6101_v43 = vsel %vm6100_vm5, %v6095_v31, %v6099_v32  ;;  %v8136_v13 = vor.u32 %v9294_v6, %v8133_v7  ;;  %v9252_v15 = vld [vmem:[%s12815_s7 + $0x304] sm:$0xf]  ;;  %v7961_v16 = vld [vmem:[%s12815_s7 + $0x3a4] sm:$0xf0] }
 0x382   :  { %5800 = vmatpush.bf16.msra.mxu3 %v7780_v34  ;;  %5813 = vmatpush.bf16.msrb.mxu0 %v7784_v35  ;;  %v6063_v34 = vrot.slane %v6018_v19, 5  ;;  %v8453_v35 = vld [vmem:[%s12815_s7 + $0x77c] sm:$0xf0]  ;;  %v6105_v37 = vsel %vm6102_vm6, %v6060_v23, %v6061_v25  ;;  %v7967_v17 = vld [vmem:[%s12815_s7 + $0x308] sm:$0xf]  ;;  %v7960_v25 = vor.u32 %v9272_v11, %v7959_v10 }
 0x383   :  { %5826 = vmatpush.bf16.msrb.mxu1 %v7788_v40  ;;  %5839 = vmatpush.bf16.msrb.mxu2 %v7792_v41  ;;  %v8452_v41 = vor.u32 %v9395_v29, %v8451_v22  ;;  %v5545_v42 = vpop.f32.mrf.mxu3  ;;  %v8456_v45 = vor.u32 %v9375_v30, %v8453_v35  ;;  %v9273_v19 = vld [vmem:[%s12815_s7 + $0x3a8] sm:$0xf0]  ;;  %v9231_v29 = vld [vmem:[%s12815_s7 + $0x258] sm:$0xf0]  ;;  %v9232_v35 = vld [vmem:[%s12815_s7 + $0x260] sm:$0xf0] }
 0x384   :  { %v6109_v40 = vsel %vm6106_vm7, %v6062_v33, %v6063_v34  ;;  %v5584_v27 = vpop.f32.mrf.mxu2  ;;  %v7968_v30 = vor.u32 %v9273_v19, %v7967_v17  ;;  %v9211_v32 = vld [vmem:[%s12815_s7 + $0x1bc] sm:$0xf]  ;;  %v7797_v33 = vld [vmem:[%s12815_s7 + $0x25c] sm:$0xf0]  ;;  %v7633_v42 = vld [vmem:[%s12815_s7 + $0x114] sm:$0xf0] }
 0x385   :  { %v6111_v44 = vsel %vm6110_vm8, %v6105_v37, %v6109_v40  ;;  %v7803_v34 = vld [vmem:[%s12815_s7 + $0x1c0] sm:$0xf]  ;;  %v7805_v37 = vld [vmem:[%s12815_s7 + $0x264] sm:$0xf0]  ;;  %v9190_v40 = vld [vmem:[%s12815_s7 + $0x110] sm:$0xf0] }
 0x386   :  { %5801 = vmatpush.bf16.msra.mxu3 %v7616_v51  ;;  %5814 = vmatpush.bf16.msrb.mxu0 %v7620_v57  ;;  %v6113_v49 = vsel %vm6112_vm9, %v6101_v43, %v6111_v44  ;;  %v8464_v51 = vor.u32 %v9376_v39, %v8461_v24  ;;  %v9335_v57 = vld [vmem:[%s12815_s7 + $0x59c] sm:$0xf]  ;;  %v7800_v24 = vor.u32 %v9211_v32, %v7797_v33  ;;  %v7639_v27 = vld [vmem:[%s12815_s7 + $0x78] sm:$0xf]  ;;  %v8803_v55 = vld [vmem:[%s12815_s7 + $0x980] sm:$0xf] }
 0x387   :  { %5827 = vmatpush.bf16.msrb.mxu1 %v7624_v58  ;;  %5840 = vmatpush.bf16.msrb.mxu2 %v7628_v59  ;;  %6183 = vst [vmem:[#allocation2] sm:$0xff] %v6113_v49  ;;  %v8297_v58 = vld [vmem:[%s12815_s7 + $0x63c] sm:$0xf0]  ;;  %v12186_v59 = vpop.f32.mrf.mxu0  ;;  %v7804_v43 = vor.u32 %v9232_v35, %v7803_v34  ;;  %v7808_v44 = vor.u32 %v9212_v36, %v7805_v37  ;;  %v8631_v3 = vld [vmem:[%s12815_s7 + $0x830] sm:$0xf] }
 0x388   :  { %v8300_v1 = vor.u32 %v9335_v57, %v8297_v58  ;;  %v7641_v49 = vld [vmem:[%s12815_s7 + $0x11c] sm:$0xf0]  ;;  %v7632_v57 = vor.u32 %v9190_v40, %v7631_v38  ;;  %v9418_v7 = vld [vmem:[%s12815_s7 + $0x834] sm:$0xf]  ;;  %v9439_v10 = vld [vmem:[%s12815_s7 + $0x8d8] sm:$0xf0] }
 0x389   :  { %5802 = vmatmul.bf16.vlgmr.msra.gmra.mxu3 %v11064_v56  ;;  %5815 = vmatmul.bf16.vlgmr.msrb.gmra.mxu0 %v11064_v56  ;;  %v12188_v60 = vpop.f32.mrf.mxu1  ;;  %v9419_v11 = vld [vmem:[%s12815_s7 + $0x83c] sm:$0xf]  ;;  %v8467_v19 = vld [vmem:[%s12815_s7 + $0x6e8] sm:$0xf]  ;;  %v8303_v36 = vld [vmem:[%s12815_s7 + $0x5a0] sm:$0xf] }
 0x38a   :  { %5846 = vmatpush.bf16.msrb.mxu3 %v8780_v61  ;;  %5859 = vmatpush.bf16.msra.mxu0 %v8784_v52  ;;  %v8288_v61 = vor.u32 %v9354_v47, %v8287_v46  ;;  %v8292_v52 = vor.u32 %v9334_v48, %v8289_v53  ;;  %v9191_v46 = vld [vmem:[%s12815_s7 + $0x118] sm:$0xf0]  ;;  %v9356_v37 = vld [vmem:[%s12815_s7 + $0x640] sm:$0xf0]  ;;  %v8305_v40 = vld [vmem:[%s12815_s7 + $0x644] sm:$0xf0] }
 0x38b   :  { %5872 = vmatpush.bf16.msra.mxu1 %v8788_v62  ;;  %5885 = vmatpush.bf16.msra.mxu2 %v8792_v5  ;;  %v8123_v62 = vld [vmem:[%s12815_s7 + $0x448] sm:$0xf]  ;;  %v9314_v5 = vld [vmem:[%s12815_s7 + $0x4f0] sm:$0xf0]  ;;  %v9171_v47 = vld [vmem:[%s12815_s7 + $0x7c] sm:$0xf] }
 0x38c   :  { %5828 = vmatmul.bf16.vlgmr.msrb.gmra.mxu1 %v11064_v56  ;;  %5841 = vmatmul.bf16.vlgmr.msrb.gmra.mxu2 %v11064_v56  ;;  %v8124_v8 = vor.u32 %v9313_v63, %v8123_v62  ;;  %v8132_v12 = vor.u32 %v9314_v5, %v8131_v4  ;;  %v12220_v14 = vpop.f32.mrf.mxu3  ;;  %v9459_v53 = vld [vmem:[%s12815_s7 + $0x97c] sm:$0xf]  ;;  %v8805_v62 = vld [vmem:[%s12815_s7 + $0xa24] sm:$0xf0]  ;;  %v7640_v63 = vor.u32 %v9191_v46, %v7639_v27  ;;  %v9438_v4 = vld [vmem:[%s12815_s7 + $0x8d0] sm:$0xf0] }
 0x38d   :  { %v8800_v2 = vor.u32 %v9459_v53, %v8797_v54 }
 0x38e   :  { %5847 = vmatpush.bf16.msrb.mxu3 %v8616_v20  ;;  %5860 = vmatpush.bf16.msra.mxu0 %v8620_v21  ;;  %v9253_v20 = vld [vmem:[%s12815_s7 + $0x30c] sm:$0xf]  ;;  %v7969_v21 = vld [vmem:[%s12815_s7 + $0x3ac] sm:$0xf0] }
 0x38f   :  { %5873 = vmatpush.bf16.msra.mxu1 %v8624_v26  ;;  %5886 = vmatpush.bf16.msra.mxu2 %v8628_v28  ;;  %v12231_v18 = vpop.f32.mrf.mxu2  ;;  %v5610_v22 = vpop.f32.mrf.mxu0  ;;  %v7964_v26 = vor.u32 %v9252_v15, %v7961_v16  ;;  %v7795_v28 = vld [vmem:[%s12815_s7 + $0x1b8] sm:$0xf]  ;;  %v7972_v31 = vor.u32 %v9253_v20, %v7969_v21  ;;  %v8632_v16 = vor.u32 %v9438_v4, %v8631_v3  ;;  %v9397_v20 = vld [vmem:[%s12815_s7 + $0x788] sm:$0xf0] }
 0x390   :  { %v7796_v39 = vor.u32 %v9231_v29, %v7795_v28  ;;  %v9398_v28 = vld [vmem:[%s12815_s7 + $0x790] sm:$0xf0]  ;;  %v8468_v34 = vor.u32 %v9397_v20, %v8467_v19  ;;  %v9255_v20 = vld [vmem:[%s12815_s7 + $0x31c] sm:$0xf] }
 0x391   :  { %v5623_v23 = vpop.f32.mrf.mxu1  ;;  %v9378_v29 = vld [vmem:[%s12815_s7 + $0x6f4] sm:$0xf] }
 0x392   :  { %5848 = vmatpush.bf16.msrb.mxu3 %v8452_v41  ;;  %5861 = vmatpush.bf16.msra.mxu0 %v8456_v45  ;;  %v9170_v41 = vld [vmem:[%s12815_s7 + $0x74] sm:$0xf]  ;;  %v9377_v23 = vld [vmem:[%s12815_s7 + $0x6ec] sm:$0xf] }
 0x393   :  { %5874 = vmatpush.bf16.msra.mxu1 %v8460_v50  ;;  %5887 = vmatpush.bf16.msra.mxu2 %v8464_v51  ;;  %v8795_v50 = vld [vmem:[%s12815_s7 + $0x978] sm:$0xf]  ;;  %v9479_v51 = vld [vmem:[%s12815_s7 + $0xa18] sm:$0xf0]  ;;  %v7636_v58 = vor.u32 %v9170_v41, %v7633_v42  ;;  %v8311_v41 = vld [vmem:[%s12815_s7 + $0x5a8] sm:$0xf] }
 0x394   :  { %v5597_v45 = vpop.f32.mrf.mxu3 }
 0x395   :  { %v8313_v45 = vld [vmem:[%s12815_s7 + $0x64c] sm:$0xf0] }
 0x396   :  { %5849 = vmatpush.bf16.msrb.mxu3 %v8288_v61  ;;  %5862 = vmatpush.bf16.msra.mxu0 %v8292_v52  ;;  %v9480_v61 = vld [vmem:[%s12815_s7 + $0xa20] sm:$0xf0] }
 0x397   :  { %5875 = vmatpush.bf16.msra.mxu1 %v8296_v0  ;;  %5888 = vmatpush.bf16.msra.mxu2 %v8300_v1  ;;  %v5636_v48 = vpop.f32.mrf.mxu2  ;;  %v9460_v52 = vld [vmem:[%s12815_s7 + $0x984] sm:$0xf]  ;;  %v7644_v0 = vor.u32 %v9171_v47, %v7641_v49  ;;  %v8796_v1 = vor.u32 %v9479_v51, %v8795_v50  ;;  %v8804_v5 = vor.u32 %v9480_v61, %v8803_v55  ;;  %v8139_v50 = vld [vmem:[%s12815_s7 + $0x458] sm:$0xf]  ;;  %v9315_v51 = vld [vmem:[%s12815_s7 + $0x4f8] sm:$0xf0] }
 0x398   :  { %v8808_v6 = vor.u32 %v9460_v52, %v8805_v62  ;;  %v8304_v48 = vor.u32 %v9356_v37, %v8303_v36  ;;  %v8141_v55 = vld [vmem:[%s12815_s7 + $0x4fc] sm:$0xf0]  ;;  %v8149_v62 = vld [vmem:[%s12815_s7 + $0x504] sm:$0xf0]  ;;  %v8140_v3 = vor.u32 %v9315_v51, %v8139_v50 }
 0x39a   :  { %5850 = vmatpush.bf16.msrb.mxu3 %v8124_v8  ;;  %5863 = vmatpush.bf16.msra.mxu0 %v8128_v9  ;;  %v8633_v8 = vld [vmem:[%s12815_s7 + $0x8d4] sm:$0xf0] }
 0x39b   :  { %5876 = vmatpush.bf16.msra.mxu1 %v8132_v12  ;;  %5889 = vmatpush.bf16.msra.mxu2 %v8136_v13  ;;  %v8639_v9 = vld [vmem:[%s12815_s7 + $0x838] sm:$0xf]  ;;  %v8641_v12 = vld [vmem:[%s12815_s7 + $0x8dc] sm:$0xf0]  ;;  %v12341_v13 = vld [vmem:[%s12816_s8 + $0x8] sm:$0xff]  ;;  %v8636_v17 = vor.u32 %v9418_v7, %v8633_v8 }
 0x39c   :  { %v3760_v15 = vperm.slane %v12341_v13, 0  ;;  %v8640_v21 = vor.u32 %v9439_v10, %v8639_v9  ;;  %v8644_v22 = vor.u32 %v9419_v11, %v8641_v12  ;;  %v3761_v32 = vperm.slane %v12341_v13, 1  ;;  %v9254_v7 = vld [vmem:[%s12815_s7 + $0x314] sm:$0xf]  ;;  %v7977_v11 = vld [vmem:[%s12815_s7 + $0x3b4] sm:$0xf0] }
 0x39d   :  { %v3762_v33 = vperm.slane %v12341_v13, 2  ;;  %v3765_v52 = vperm.slane %v12341_v13, 5  ;;  %v7983_v12 = vld [vmem:[%s12815_s7 + $0x318] sm:$0xf] }
 0x39e   :  { %5851 = vmatpush.bf16.msrb.mxu3 %v7960_v25  ;;  %5864 = vmatpush.bf16.msra.mxu0 %v7964_v26  ;;  %v8469_v25 = vld [vmem:[%s12815_s7 + $0x78c] sm:$0xf0]  ;;  %v5596_v42 = vadd.f32 %v12220_v14, %v3760_v15  ;;  %v5609_v47 = vadd.f32 %v12186_v59, %v3761_v32  ;;  %v7980_v32 = vor.u32 %v9254_v7, %v7977_v11  ;;  %v9482_v7 = vld [vmem:[%s12815_s7 + $0xa30] sm:$0xf0]  ;;  %v8821_v11 = vld [vmem:[%s12815_s7 + $0xa34] sm:$0xf0] }
 0x39f   :  { %5877 = vmatpush.bf16.msra.mxu1 %v7968_v30  ;;  %5890 = vmatpush.bf16.msra.mxu2 %v7972_v31  ;;  %v8475_v26 = vld [vmem:[%s12815_s7 + $0x6f0] sm:$0xf]  ;;  %v8477_v30 = vld [vmem:[%s12815_s7 + $0x794] sm:$0xf0]  ;;  %v3763_v31 = vperm.slane %v12341_v13, 3  ;;  %v8472_v35 = vor.u32 %v9377_v23, %v8469_v25  ;;  %v5622_v53 = vadd.f32 %v12188_v60, %v3762_v33 }
 0x3a0   :  { %v8476_v38 = vor.u32 %v9398_v28, %v8475_v26  ;;  %v6019_v61 = vpack.c.bf16 %v5609_v47, %v5596_v42  ;;  %v9296_v60 = vld [vmem:[%s12815_s7 + $0x464] sm:$0xf]  ;;  %v7811_v33 = vld [vmem:[%s12815_s7 + $0x1c8] sm:$0xf] }
 0x3a1   :  { %v5635_v27 = vadd.f32 %v12231_v18, %v3763_v31  ;;  %v9295_v18 = vld [vmem:[%s12815_s7 + $0x45c] sm:$0xf]  ;;  %v8152_v9 = vor.u32 %v9296_v60, %v8149_v62  ;;  %v7657_v60 = vld [vmem:[%s12815_s7 + $0x12c] sm:$0xf0] }
 0x3a2   :  { %5852 = vmatpush.bf16.msrb.mxu3 %v7796_v39  ;;  %5865 = vmatpush.bf16.msra.mxu0 %v7800_v24  ;;  %v8480_v39 = vor.u32 %v9378_v29, %v8477_v30  ;;  %v9336_v24 = vld [vmem:[%s12815_s7 + $0x5a4] sm:$0xf]  ;;  %v8144_v4 = vor.u32 %v9295_v18, %v8141_v55  ;;  %v6064_v15 = vrot.slane %v6019_v61, 3 }
 0x3a3   :  { %5878 = vmatpush.bf16.msra.mxu1 %v7804_v43  ;;  %5891 = vmatpush.bf16.msra.mxu2 %v7808_v44  ;;  %v9357_v43 = vld [vmem:[%s12815_s7 + $0x648] sm:$0xf0]  ;;  %v8308_v49 = vor.u32 %v9336_v24, %v8305_v40  ;;  %v7819_v24 = vld [vmem:[%s12815_s7 + $0x1d0] sm:$0xf]  ;;  %v9234_v40 = vld [vmem:[%s12815_s7 + $0x270] sm:$0xf0] }
 0x3a4   :  { %v9337_v44 = vld [vmem:[%s12815_s7 + $0x5ac] sm:$0xf]  ;;  %v8312_v59 = vor.u32 %v9357_v43, %v8311_v41  ;;  %v9214_v43 = vld [vmem:[%s12815_s7 + $0x1d4] sm:$0xf]  ;;  %v9172_v18 = vld [vmem:[%s12815_s7 + $0x84] sm:$0xf]  ;;  %v7820_v55 = vor.u32 %v9234_v40, %v7819_v24 }
 0x3a5   :  { %v8316_v54 = vor.u32 %v9337_v44, %v8313_v45  ;;  %v7821_v44 = vld [vmem:[%s12815_s7 + $0x274] sm:$0xf0]  ;;  %v6116_v45 = vsel %vm2771_vm0, %v6019_v61, %v6064_v15  ;;  %v9193_v61 = vld [vmem:[%s12815_s7 + $0x128] sm:$0xf0]  ;;  %v9380_v24 = vld [vmem:[%s12815_s7 + $0x704] sm:$0xf] }
 0x3a6   :  { %5853 = vmatpush.bf16.msrb.mxu3 %v7632_v57  ;;  %5866 = vmatpush.bf16.msra.mxu0 %v7636_v58  ;;  %v5660_v46 = vpop.f32.mrf.mxu0  ;;  %v8147_v57 = vld [vmem:[%s12815_s7 + $0x460] sm:$0xf]  ;;  %v9316_v58 = vld [vmem:[%s12815_s7 + $0x500] sm:$0xf0]  ;;  %v8493_v40 = vld [vmem:[%s12815_s7 + $0x7a4] sm:$0xf0] }
 0x3a7   :  { %5879 = vmatpush.bf16.msra.mxu1 %v7640_v63  ;;  %5892 = vmatpush.bf16.msra.mxu2 %v7644_v0  ;;  %v3764_v63 = vperm.slane %v12341_v13, 4  ;;  %v6020_v0 = vpack.c.bf16 %v5635_v27, %v5622_v53  ;;  %v8148_v8 = vor.u32 %v9316_v58, %v8147_v57  ;;  %v7649_v53 = vld [vmem:[%s12815_s7 + $0x124] sm:$0xf0]  ;;  %v7824_v57 = vor.u32 %v9214_v43, %v7821_v44  ;;  %v8319_v43 = vld [vmem:[%s12815_s7 + $0x5b0] sm:$0xf] }
 0x3a8   :  { %v9358_v44 = vld [vmem:[%s12815_s7 + $0x650] sm:$0xf0] }
 0x3a9   :  { %5854 = vmatmul.bf16.vlgmr.msrb.gmra.mxu3 %v11064_v56  ;;  %5867 = vmatmul.bf16.vlgmr.msra.gmra.mxu0 %v11064_v56  ;;  %v5673_v14 = vpop.f32.mrf.mxu1  ;;  %v6066_v23 = vrot.slane %v6020_v0, 1 }
 0x3aa   :  { %5898 = vmatpush.bf16.msra.mxu3 %v8796_v1  ;;  %5911 = vmatpush.bf16.msrb.mxu0 %v8800_v2  ;;  %v3766_v1 = vperm.slane %v12341_v13, 6  ;;  %v3767_v2 = vperm.slane %v12341_v13, 7  ;;  %v9275_v13 = vld [vmem:[%s12815_s7 + $0x3b8] sm:$0xf0] }
 0x3ab   :  { %5924 = vmatpush.bf16.msrb.mxu1 %v8804_v5  ;;  %5937 = vmatpush.bf16.msrb.mxu2 %v8808_v6  ;;  %v7975_v5 = vld [vmem:[%s12815_s7 + $0x310] sm:$0xf]  ;;  %v9274_v6 = vld [vmem:[%s12815_s7 + $0x3b0] sm:$0xf0]  ;;  %v7984_v37 = vor.u32 %v9275_v13, %v7983_v12 }
 0x3ac   :  { %5880 = vmatmul.bf16.vlgmr.msra.gmra.mxu1 %v11064_v56  ;;  %5893 = vmatmul.bf16.vlgmr.msra.gmra.mxu2 %v11064_v56  ;;  %v5647_v10 = vpop.f32.mrf.mxu3  ;;  %v5674_v25 = vadd.f32 %v5673_v14, %v3766_v1  ;;  %v7976_v31 = vor.u32 %v9274_v6, %v7975_v5  ;;  %v7647_v14 = vld [vmem:[%s12815_s7 + $0x80] sm:$0xf]  ;;  %v8811_v1 = vld [vmem:[%s12815_s7 + $0x988] sm:$0xf]  ;;  %v8813_v5 = vld [vmem:[%s12815_s7 + $0xa2c] sm:$0xf0] }
 0x3ad   :  { %v8819_v6 = vld [vmem:[%s12815_s7 + $0x990] sm:$0xf] }
 0x3ae   :  { %5899 = vmatpush.bf16.msra.mxu3 %v8632_v16  ;;  %5912 = vmatpush.bf16.msrb.mxu0 %v8636_v17  ;;  %v5661_v16 = vadd.f32 %v5660_v46, %v3765_v52  ;;  %v5648_v17 = vadd.f32 %v5647_v10, %v3764_v63  ;;  %v5662_v28 = vpop.f32.mrf.mxu0  ;;  %v9173_v52 = vld [vmem:[%s12815_s7 + $0x8c] sm:$0xf]  ;;  %v9462_v10 = vld [vmem:[%s12815_s7 + $0x994] sm:$0xf] }
 0x3af   :  { %5925 = vmatpush.bf16.msrb.mxu1 %v8640_v21  ;;  %5938 = vmatpush.bf16.msrb.mxu2 %v8644_v22  ;;  %v5686_v19 = vpop.f32.mrf.mxu2  ;;  %v7985_v21 = vld [vmem:[%s12815_s7 + $0x3bc] sm:$0xf0]  ;;  %v6065_v22 = vrot.slane %v6020_v0, 6  ;;  %v7660_v13 = vor.u32 %v9173_v52, %v7657_v60  ;;  %v9421_v28 = vld [vmem:[%s12815_s7 + $0x84c] sm:$0xf] }
 0x3b0   :  { %v5687_v26 = vadd.f32 %v5686_v19, %v3767_v2  ;;  %v6021_v29 = vpack.c.bf16 %v5661_v16, %v5648_v17  ;;  %v9481_v2 = vld [vmem:[%s12815_s7 + $0xa28] sm:$0xf0]  ;;  %v8647_v17 = vld [vmem:[%s12815_s7 + $0x840] sm:$0xf]  ;;  %v9440_v19 = vld [vmem:[%s12815_s7 + $0x8e0] sm:$0xf0] }
 0x3b1   :  { %v5675_v30 = vpop.f32.mrf.mxu1  ;;  %v6119_v27 = vsel %vm6096_vm4, %v6065_v22, %v6066_v23  ;;  %v8812_v15 = vor.u32 %v9481_v2, %v8811_v1  ;;  %v9420_v22 = vld [vmem:[%s12815_s7 + $0x844] sm:$0xf]  ;;  %v8649_v23 = vld [vmem:[%s12815_s7 + $0x8e4] sm:$0xf0]  ;;  %v8157_v52 = vld [vmem:[%s12815_s7 + $0x50c] sm:$0xf0] }
 0x3b2   :  { %5900 = vmatpush.bf16.msra.mxu3 %v8468_v34  ;;  %5913 = vmatpush.bf16.msrb.mxu0 %v8472_v35  ;;  %v9233_v34 = vld [vmem:[%s12815_s7 + $0x268] sm:$0xf0]  ;;  %v6022_v36 = vpack.c.bf16 %v5687_v26, %v5674_v25  ;;  %v6067_v41 = vrot.slane %v6021_v29, 4  ;;  %v6068_v42 = vrot.slane %v6021_v29, 7  ;;  %v6120_v62 = vsel %vm6100_vm5, %v6116_v45, %v6119_v27  ;;  %v8655_v25 = vld [vmem:[%s12815_s7 + $0x848] sm:$0xf] }
 0x3b3   :  { %5926 = vmatpush.bf16.msrb.mxu1 %v8476_v38  ;;  %5939 = vmatpush.bf16.msrb.mxu2 %v8480_v39  ;;  %v9213_v35 = vld [vmem:[%s12815_s7 + $0x1cc] sm:$0xf]  ;;  %v7988_v38 = vor.u32 %v9255_v20, %v7985_v21  ;;  %v7813_v39 = vld [vmem:[%s12815_s7 + $0x26c] sm:$0xf0]  ;;  %v7812_v50 = vor.u32 %v9233_v34, %v7811_v33  ;;  %v8820_v20 = vor.u32 %v9482_v7, %v8819_v6  ;;  %v9399_v33 = vld [vmem:[%s12815_s7 + $0x798] sm:$0xf0] }
 0x3b4   :  { %v6069_v46 = vrot.slane %v6022_v36, 2  ;;  %v6070_v47 = vrot.slane %v6022_v36, 5  ;;  %v7816_v51 = vor.u32 %v9213_v35, %v7813_v39  ;;  %v5649_v58 = vpop.f32.mrf.mxu3  ;;  %v8824_v21 = vor.u32 %v9462_v10, %v8821_v11  ;;  %v9441_v26 = vld [vmem:[%s12815_s7 + $0x8e8] sm:$0xf0]  ;;  %v8657_v29 = vld [vmem:[%s12815_s7 + $0x8ec] sm:$0xf0] }
 0x3b5   :  { %v8648_v30 = vor.u32 %v9440_v19, %v8647_v17  ;;  %v8656_v34 = vor.u32 %v9441_v26, %v8655_v25  ;;  %v8660_v35 = vor.u32 %v9421_v28, %v8657_v29  ;;  %v9379_v36 = vld [vmem:[%s12815_s7 + $0x6fc] sm:$0xf]  ;;  %v9400_v39 = vld [vmem:[%s12815_s7 + $0x7a0] sm:$0xf0]  ;;  %v8496_v27 = vor.u32 %v9380_v24, %v8493_v40  ;;  %v8163_v60 = vld [vmem:[%s12815_s7 + $0x470] sm:$0xf] }
 0x3b6   :  { %5901 = vmatpush.bf16.msra.mxu3 %v8304_v48  ;;  %5914 = vmatpush.bf16.msrb.mxu0 %v8308_v49  ;;  %v9192_v48 = vld [vmem:[%s12815_s7 + $0x120] sm:$0xf0]  ;;  %v6123_v49 = vsel %vm6102_vm6, %v6067_v41, %v6068_v42  ;;  %v7999_v10 = vld [vmem:[%s12815_s7 + $0x328] sm:$0xf]  ;;  %v9215_v26 = vld [vmem:[%s12815_s7 + $0x1dc] sm:$0xf] }
 0x3b7   :  { %5927 = vmatpush.bf16.msrb.mxu1 %v8312_v59  ;;  %5940 = vmatpush.bf16.msrb.mxu2 %v8316_v54  ;;  %v7655_v59 = vld [vmem:[%s12815_s7 + $0x88] sm:$0xf]  ;;  %v6126_v54 = vsel %vm6106_vm7, %v6069_v46, %v6070_v47  ;;  %v5688_v0 = vpop.f32.mrf.mxu2  ;;  %v9338_v46 = vld [vmem:[%s12815_s7 + $0x5b4] sm:$0xf]  ;;  %v8321_v47 = vld [vmem:[%s12815_s7 + $0x654] sm:$0xf0] }
 0x3b8   :  { %v6127_v63 = vsel %vm6110_vm8, %v6123_v49, %v6126_v54  ;;  %v7656_v12 = vor.u32 %v9193_v61, %v7655_v59  ;;  %v9339_v49 = vld [vmem:[%s12815_s7 + $0x5bc] sm:$0xf]  ;;  %v8324_v59 = vor.u32 %v9338_v46, %v8321_v47  ;;  %v8155_v54 = vld [vmem:[%s12815_s7 + $0x468] sm:$0xf]  ;;  %v9297_v61 = vld [vmem:[%s12815_s7 + $0x46c] sm:$0xf] }
 0x3b9   :  { %v8165_v0 = vld [vmem:[%s12815_s7 + $0x514] sm:$0xf0]  ;;  %v8160_v2 = vor.u32 %v9297_v61, %v8157_v52  ;;  %v7829_v28 = vld [vmem:[%s12815_s7 + $0x27c] sm:$0xf0]  ;;  %v9174_v24 = vld [vmem:[%s12815_s7 + $0x94] sm:$0xf] }
 0x3ba   :  { %5902 = vmatpush.bf16.msra.mxu3 %v8140_v3  ;;  %5915 = vmatpush.bf16.msrb.mxu0 %v8144_v4  ;;  %v9461_v3 = vld [vmem:[%s12815_s7 + $0x98c] sm:$0xf]  ;;  %v6128_v4 = vsel %vm6112_vm9, %v6120_v62, %v6127_v63  ;;  %v9318_v62 = vld [vmem:[%s12815_s7 + $0x510] sm:$0xf0]  ;;  %v7835_v29 = vld [vmem:[%s12815_s7 + $0x1e0] sm:$0xf] }
 0x3bb   :  { %5928 = vmatpush.bf16.msrb.mxu1 %v8148_v8  ;;  %5941 = vmatpush.bf16.msrb.mxu2 %v8152_v9  ;;  %6184 = vst [vmem:[#allocation2 + $0x8] sm:$0xff] %v6128_v4  ;;  %v7648_v8 = vor.u32 %v9192_v48, %v7647_v14  ;;  %v7652_v9 = vor.u32 %v9172_v18, %v7649_v53  ;;  %v8327_v14 = vld [vmem:[%s12815_s7 + $0x5b8] sm:$0xf]  ;;  %v9359_v48 = vld [vmem:[%s12815_s7 + $0x658] sm:$0xf0] }
 0x3bc   :  { %v8816_v16 = vor.u32 %v9461_v3, %v8813_v5  ;;  %v8320_v53 = vor.u32 %v9358_v44, %v8319_v43  ;;  %v9298_v63 = vld [vmem:[%s12815_s7 + $0x474] sm:$0xf]  ;;  %v7991_v3 = vld [vmem:[%s12815_s7 + $0x320] sm:$0xf]  ;;  %v9276_v4 = vld [vmem:[%s12815_s7 + $0x3c0] sm:$0xf0]  ;;  %v8164_v5 = vor.u32 %v9318_v62, %v8163_v60 }
 0x3bd   :  { %v8168_v6 = vor.u32 %v9298_v63, %v8165_v0  ;;  %v7992_v19 = vor.u32 %v9276_v4, %v7991_v3  ;;  %v7665_v40 = vld [vmem:[%s12815_s7 + $0x134] sm:$0xf0]  ;;  %v9195_v43 = vld [vmem:[%s12815_s7 + $0x138] sm:$0xf0]  ;;  %v8335_v0 = vld [vmem:[%s12815_s7 + $0x5c0] sm:$0xf] }
 0x3be   :  { %5903 = vmatpush.bf16.msra.mxu3 %v7976_v31  ;;  %5916 = vmatpush.bf16.msrb.mxu0 %v7980_v32  ;;  %v8652_v31 = vor.u32 %v9420_v22, %v8649_v23  ;;  %v8483_v32 = vld [vmem:[%s12815_s7 + $0x6f8] sm:$0xf]  ;;  %v9235_v22 = vld [vmem:[%s12815_s7 + $0x278] sm:$0xf0] }
 0x3bf   :  { %5929 = vmatpush.bf16.msrb.mxu1 %v7984_v37  ;;  %5942 = vmatpush.bf16.msrb.mxu2 %v7988_v38  ;;  %v8485_v37 = vld [vmem:[%s12815_s7 + $0x79c] sm:$0xf0]  ;;  %v8484_v41 = vor.u32 %v9399_v33, %v8483_v32  ;;  %v7837_v32 = vld [vmem:[%s12815_s7 + $0x284] sm:$0xf0]  ;;  %v9175_v44 = vld [vmem:[%s12815_s7 + $0x9c] sm:$0xf] }
 0x3c0   :  { %v8491_v38 = vld [vmem:[%s12815_s7 + $0x700] sm:$0xf]  ;;  %v8488_v42 = vor.u32 %v9379_v36, %v8485_v37  ;;  %v9194_v36 = vld [vmem:[%s12815_s7 + $0x130] sm:$0xf0]  ;;  %v9483_v46 = vld [vmem:[%s12815_s7 + $0xa38] sm:$0xf0] }
 0x3c1   :  { %v8492_v45 = vor.u32 %v9400_v39, %v8491_v38 }
 0x3c2   :  { %5904 = vmatpush.bf16.msra.mxu3 %v7812_v50  ;;  %5917 = vmatpush.bf16.msrb.mxu0 %v7816_v51  ;;  %v8329_v50 = vld [vmem:[%s12815_s7 + $0x65c] sm:$0xf0] }
 0x3c3   :  { %5930 = vmatpush.bf16.msrb.mxu1 %v7820_v55  ;;  %5943 = vmatpush.bf16.msrb.mxu2 %v7824_v57  ;;  %v9317_v55 = vld [vmem:[%s12815_s7 + $0x508] sm:$0xf0]  ;;  %v8328_v57 = vor.u32 %v9359_v48, %v8327_v14  ;;  %v8332_v58 = vor.u32 %v9339_v49, %v8329_v50  ;;  %v7668_v14 = vor.u32 %v9174_v24, %v7665_v40 }
 0x3c4   :  { %v8156_v1 = vor.u32 %v9317_v55, %v8155_v54  ;;  %v3742_v55 = vld [vmem:[%s12816_s8 + $0x10] sm:$0xff] }
 0x3c5   :  { %v3768_v61 = vperm.slane %v3742_v55, 0  ;;  %v3771_v52 = vperm.slane %v3742_v55, 3  ;;  %v3769_v60 = vperm.slane %v3742_v55, 1  ;;  %v3770_v63 = vperm.slane %v3742_v55, 2 }
 0x3c6   :  { %5905 = vmatpush.bf16.msra.mxu3 %v7648_v8  ;;  %5918 = vmatpush.bf16.msrb.mxu0 %v7652_v9  ;;  %v12610_v51 = vpop.f32.mrf.mxu0  ;;  %v9256_v8 = vld [vmem:[%s12815_s7 + $0x324] sm:$0xf]  ;;  %v7993_v9 = vld [vmem:[%s12815_s7 + $0x3c4] sm:$0xf0] }
 0x3c7   :  { %5931 = vmatpush.bf16.msrb.mxu1 %v7656_v12  ;;  %5944 = vmatpush.bf16.msrb.mxu2 %v7660_v13  ;;  %v9277_v12 = vld [vmem:[%s12815_s7 + $0x3c8] sm:$0xf0] }
 0x3c8   :  { %v9257_v13 = vld [vmem:[%s12815_s7 + $0x32c] sm:$0xf]  ;;  %v8000_v23 = vor.u32 %v9277_v12, %v7999_v10  ;;  %v8171_v10 = vld [vmem:[%s12815_s7 + $0x478] sm:$0xf]  ;;  %v9319_v12 = vld [vmem:[%s12815_s7 + $0x518] sm:$0xf0] }
 0x3c9   :  { %5906 = vmatmul.bf16.vlgmr.msra.gmra.mxu3 %v11064_v56  ;;  %5919 = vmatmul.bf16.vlgmr.msrb.gmra.mxu0 %v11064_v56  ;;  %v12612_v18 = vpop.f32.mrf.mxu1 }
 0x3ca   :  { %5950 = vmatpush.bf16.msrb.mxu3 %v8812_v15  ;;  %5963 = vmatpush.bf16.msra.mxu0 %v8816_v16  ;;  %v8001_v15 = vld [vmem:[%s12815_s7 + $0x3cc] sm:$0xf0] }
 0x3cb   :  { %5976 = vmatpush.bf16.msra.mxu1 %v8820_v20  ;;  %5989 = vmatpush.bf16.msra.mxu2 %v8824_v21  ;;  %v7996_v20 = vor.u32 %v9256_v8, %v7993_v9  ;;  %v7827_v21 = vld [vmem:[%s12815_s7 + $0x1d8] sm:$0xf]  ;;  %v8004_v25 = vor.u32 %v9257_v13, %v8001_v15  ;;  %v5726_v9 = vadd.f32 %v12612_v18, %v3770_v63  ;;  %v3772_v15 = vperm.slane %v3742_v55, 4  ;;  %v8007_v18 = vld [vmem:[%s12815_s7 + $0x330] sm:$0xf] }
 0x3cc   :  { %5932 = vmatmul.bf16.vlgmr.msrb.gmra.mxu1 %v11064_v56  ;;  %5945 = vmatmul.bf16.vlgmr.msrb.gmra.mxu2 %v11064_v56  ;;  %v12644_v7 = vpop.f32.mrf.mxu3  ;;  %v7828_v33 = vor.u32 %v9235_v22, %v7827_v21 }
 0x3ce   :  { %5951 = vmatpush.bf16.msrb.mxu3 %v8648_v30  ;;  %5964 = vmatpush.bf16.msra.mxu0 %v8652_v31  ;;  %v5714_v16 = vpop.f32.mrf.mxu0  ;;  %v9236_v30 = vld [vmem:[%s12815_s7 + $0x280] sm:$0xf0] }
 0x3cf   :  { %5977 = vmatpush.bf16.msra.mxu1 %v8656_v34  ;;  %5990 = vmatpush.bf16.msra.mxu2 %v8660_v35  ;;  %v12655_v11 = vpop.f32.mrf.mxu2  ;;  %v9216_v31 = vld [vmem:[%s12815_s7 + $0x1e4] sm:$0xf]  ;;  %v7832_v34 = vor.u32 %v9215_v26, %v7829_v28  ;;  %v7663_v35 = vld [vmem:[%s12815_s7 + $0x90] sm:$0xf]  ;;  %v7836_v37 = vor.u32 %v9236_v30, %v7835_v29  ;;  %v3774_v16 = vperm.slane %v3742_v55, 6 }
 0x3d0   :  { %v7840_v38 = vor.u32 %v9216_v31, %v7837_v32  ;;  %v7664_v47 = vor.u32 %v9194_v36, %v7663_v35  ;;  %v5739_v3 = vadd.f32 %v12655_v11, %v3771_v52  ;;  %v7843_v36 = vld [vmem:[%s12815_s7 + $0x1e8] sm:$0xf] }
 0x3d1   :  { %v5727_v17 = vpop.f32.mrf.mxu1 }
 0x3d2   :  { %5952 = vmatpush.bf16.msrb.mxu3 %v8484_v41  ;;  %5965 = vmatpush.bf16.msra.mxu0 %v8488_v42  ;;  %v7671_v41 = vld [vmem:[%s12815_s7 + $0x98] sm:$0xf]  ;;  %v6024_v11 = vpack.c.bf16 %v5739_v3, %v5726_v9  ;;  %v3775_v17 = vperm.slane %v3742_v55, 7 }
 0x3d3   :  { %5978 = vmatpush.bf16.msra.mxu1 %v8492_v45  ;;  %5991 = vmatpush.bf16.msra.mxu2 %v8496_v27  ;;  %v7673_v45 = vld [vmem:[%s12815_s7 + $0x13c] sm:$0xf0]  ;;  %v8827_v27 = vld [vmem:[%s12815_s7 + $0x998] sm:$0xf]  ;;  %v7672_v48 = vor.u32 %v9195_v43, %v7671_v41 }
 0x3d4   :  { %v5701_v39 = vpop.f32.mrf.mxu3  ;;  %v7676_v49 = vor.u32 %v9175_v44, %v7673_v45  ;;  %v8828_v50 = vor.u32 %v9483_v46, %v8827_v27  ;;  %v6072_v26 = vrot.slane %v6024_v11, 6  ;;  %v6073_v28 = vrot.slane %v6024_v11, 1  ;;  %v7679_v46 = vld [vmem:[%s12815_s7 + $0xa0] sm:$0xf] }
 0x3d6   :  { %5953 = vmatpush.bf16.msrb.mxu3 %v8320_v53  ;;  %5966 = vmatpush.bf16.msra.mxu0 %v8324_v59  ;;  %v8663_v53 = vld [vmem:[%s12815_s7 + $0x850] sm:$0xf]  ;;  %v9442_v59 = vld [vmem:[%s12815_s7 + $0x8f0] sm:$0xf0]  ;;  %v6134_v40 = vsel %vm6096_vm4, %v6072_v26, %v6073_v28 }
 0x3d7   :  { %5979 = vmatpush.bf16.msra.mxu1 %v8328_v57  ;;  %5992 = vmatpush.bf16.msra.mxu2 %v8332_v58  ;;  %v5740_v42 = vpop.f32.mrf.mxu2  ;;  %v8664_v54 = vor.u32 %v9442_v59, %v8663_v53  ;;  %v8499_v57 = vld [vmem:[%s12815_s7 + $0x708] sm:$0xf]  ;;  %v9401_v58 = vld [vmem:[%s12815_s7 + $0x7a8] sm:$0xf0] }
 0x3d8   :  { %v8500_v62 = vor.u32 %v9401_v58, %v8499_v57 }
 0x3da   :  { %5954 = vmatpush.bf16.msrb.mxu3 %v8156_v1  ;;  %5967 = vmatpush.bf16.msra.mxu0 %v8160_v2  ;;  %v9360_v1 = vld [vmem:[%s12815_s7 + $0x660] sm:$0xf0]  ;;  %v5700_v2 = vadd.f32 %v12644_v7, %v3768_v61  ;;  %v3773_v7 = vperm.slane %v3742_v55, 5 }
 0x3db   :  { %5980 = vmatpush.bf16.msra.mxu1 %v8164_v5  ;;  %5993 = vmatpush.bf16.msra.mxu2 %v8168_v6  ;;  %v5713_v5 = vadd.f32 %v12610_v51, %v3769_v60  ;;  %v8336_v8 = vor.u32 %v9360_v1, %v8335_v0  ;;  %v8172_v51 = vor.u32 %v9319_v12, %v8171_v10 }
 0x3dd   :  { %v6023_v13 = vpack.c.bf16 %v5713_v5, %v5700_v2 }
 0x3de   :  { %5955 = vmatpush.bf16.msrb.mxu3 %v7992_v19  ;;  %5968 = vmatpush.bf16.msra.mxu0 %v7996_v20  ;;  %v9278_v20 = vld [vmem:[%s12815_s7 + $0x3d0] sm:$0xf0] }
 0x3df   :  { %5981 = vmatpush.bf16.msra.mxu1 %v8000_v23  ;;  %5994 = vmatpush.bf16.msra.mxu2 %v8004_v25  ;;  %v6071_v21 = vrot.slane %v6023_v13, 3 }
 0x3e1   :  { %v6131_v24 = vsel %vm2771_vm0, %v6023_v13, %v6071_v21 }
 0x3e2   :  { %5956 = vmatpush.bf16.msrb.mxu3 %v7828_v33  ;;  %5969 = vmatpush.bf16.msra.mxu0 %v7832_v34  ;;  %v8008_v34 = vor.u32 %v9278_v20, %v8007_v18 }
 0x3e3   :  { %5982 = vmatpush.bf16.msra.mxu1 %v7836_v37  ;;  %5995 = vmatpush.bf16.msra.mxu2 %v7840_v38  ;;  %v9237_v37 = vld [vmem:[%s12815_s7 + $0x288] sm:$0xf0] }
 0x3e4   :  { %v7844_v44 = vor.u32 %v9237_v37, %v7843_v36 }
 0x3e6   :  { %5957 = vmatpush.bf16.msrb.mxu3 %v7664_v47  ;;  %5970 = vmatpush.bf16.msra.mxu0 %v7668_v14  ;;  %v5764_v4 = vpop.f32.mrf.mxu0  ;;  %v9196_v47 = vld [vmem:[%s12815_s7 + $0x140] sm:$0xf0]  ;;  %v6135_v14 = vsel %vm6100_vm5, %v6131_v24, %v6134_v40 }
 0x3e7   :  { %5983 = vmatpush.bf16.msra.mxu1 %v7672_v48  ;;  %5996 = vmatpush.bf16.msra.mxu2 %v7676_v49  ;;  %v5765_v22 = vadd.f32 %v5764_v4, %v3773_v7  ;;  %v7680_v53 = vor.u32 %v9196_v47, %v7679_v46 }
 0x3e9   :  { %5958 = vmatmul.bf16.vlgmr.msrb.gmra.mxu3 %v11064_v56  ;;  %5971 = vmatmul.bf16.vlgmr.msra.gmra.mxu0 %v11064_v56  ;;  %v5777_v6 = vpop.f32.mrf.mxu1 }
 0x3ea   :  { %6002 = vmatpush.bf16.msra.mxu3 %v8828_v50  ;;  %5984 = vmatmul.bf16.vlgmr.msra.gmra.mxu1 %v11064_v56  ;;  %v5778_v29 = vadd.f32 %v5777_v6, %v3774_v16 }
 0x3eb   :  { %5997 = vmatmul.bf16.vlgmr.msra.gmra.mxu2 %v11064_v56 }
 0x3ec   :  { %v5751_v19 = vpop.f32.mrf.mxu3 }
 0x3ed   :  { %v5752_v23 = vadd.f32 %v5751_v19, %v3772_v15 }
 0x3ee   :  { %6003 = vmatpush.bf16.msra.mxu3 %v8664_v54  ;;  %v5766_v31 = vpop.f32.mrf.mxu0 }
 0x3ef   :  { %v5790_v25 = vpop.f32.mrf.mxu2  ;;  %v6025_v32 = vpack.c.bf16 %v5765_v22, %v5752_v23 }
 0x3f0   :  { %v5791_v30 = vadd.f32 %v5790_v25, %v3775_v17 }
 0x3f1   :  { %v5779_v33 = vpop.f32.mrf.mxu1  ;;  %v6074_v38 = vrot.slane %v6025_v32, 4  ;;  %v6075_v39 = vrot.slane %v6025_v32, 7 }
 0x3f2   :  { %6004 = vmatpush.bf16.msra.mxu3 %v8500_v62  ;;  %v6026_v35 = vpack.c.bf16 %v5791_v30, %v5778_v29  ;;  %v3743_v62 = vld [vmem:[%s12816_s8 + $0x18] sm:$0xff] }
 0x3f3   :  { %v6138_v43 = vsel %vm6102_vm6, %v6074_v38, %v6075_v39  ;;  %v3776_v63 = vperm.slane %v3743_v62, 0  ;;  %v3779_v0 = vperm.slane %v3743_v62, 3  ;;  %v3777_v1 = vperm.slane %v3743_v62, 1 }
 0x3f4   :  { %v6076_v41 = vrot.slane %v6026_v35, 2  ;;  %v6077_v42 = vrot.slane %v6026_v35, 5  ;;  %v5753_v27 = vpop.f32.mrf.mxu3  ;;  %v3778_v2 = vperm.slane %v3743_v62, 2  ;;  %v3781_v10 = vperm.slane %v3743_v62, 5 }
 0x3f5   :  { %v3780_v12 = vperm.slane %v3743_v62, 4  ;;  %v3782_v7 = vperm.slane %v3743_v62, 6  ;;  %v3783_v15 = vperm.slane %v3743_v62, 7 }
 0x3f6   :  { %6005 = vmatpush.bf16.msra.mxu3 %v8336_v8  ;;  %v6141_v45 = vsel %vm6106_vm7, %v6076_v41, %v6077_v42 }
 0x3f7   :  { %v6142_v48 = vsel %vm6110_vm8, %v6138_v43, %v6141_v45  ;;  %v5792_v49 = vpop.f32.mrf.mxu2 }
 0x3f8   :  { %v6143_v50 = vsel %vm6112_vm9, %v6135_v14, %v6142_v48  ;;  %v3744_v14 = vld [vmem:[%s12816_s8 + $0x20] sm:$0xff] }
 0x3f9   :  { %6185 = vst [vmem:[#allocation2 + $0x10] sm:$0xff] %v6143_v50  ;;  %v3784_v48 = vperm.slane %v3744_v14, 0  ;;  %v3787_v49 = vperm.slane %v3744_v14, 3  ;;  %v3785_v50 = vperm.slane %v3744_v14, 1  ;;  %v3788_v62 = vperm.slane %v3744_v14, 4 }
 0x3fa   :  { %6006 = vmatpush.bf16.msra.mxu3 %v8172_v51 }
 0x3fe   :  { %6007 = vmatpush.bf16.msra.mxu3 %v8008_v34 }
 0x402   :  { %6008 = vmatpush.bf16.msra.mxu3 %v7844_v44 }
 0x406   :  { %6009 = vmatpush.bf16.msra.mxu3 %v7680_v53  ;;  %v5816_v59 = vpop.f32.mrf.mxu0  ;;  %v3786_v53 = vperm.slane %v3744_v14, 2 }
 0x409   :  { %6010 = vmatmul.bf16.vlgmr.msra.gmra.mxu3 %v11064_v56  ;;  %v5829_v54 = vpop.f32.mrf.mxu1  ;;  %v5817_v56 = vadd.f32 %v5816_v59, %v3777_v1  ;;  %v3791_v1 = vperm.slane %v3744_v14, 7 }
 0x40a   :  { %v5830_v8 = vadd.f32 %v5829_v54, %v3778_v2 }
 0x40c   :  { %v5803_v55 = vpop.f32.mrf.mxu3 }
 0x40d   :  { %v5804_v3 = vadd.f32 %v5803_v55, %v3776_v63 }
 0x40e   :  { %v5818_v58 = vpop.f32.mrf.mxu0 }
 0x40f   :  { %v5842_v57 = vpop.f32.mrf.mxu2  ;;  %v6027_v9 = vpack.c.bf16 %v5817_v56, %v5804_v3 }
 0x410   :  { %v5843_v4 = vadd.f32 %v5842_v57, %v3779_v0  ;;  %v3790_v0 = vperm.slane %v3744_v14, 6 }
 0x411   :  { %v5831_v61 = vpop.f32.mrf.mxu1  ;;  %v6078_v16 = vrot.slane %v6027_v9, 3 }
 0x412   :  { %v6028_v13 = vpack.c.bf16 %v5843_v4, %v5830_v8 }
 0x413   :  { %v6146_v31 = vsel %vm2771_vm0, %v6027_v9, %v6078_v16 }
 0x414   :  { %v5805_v52 = vpop.f32.mrf.mxu3  ;;  %v6079_v18 = vrot.slane %v6028_v13, 6  ;;  %v6080_v20 = vrot.slane %v6028_v13, 1 }
 0x416   :  { %v6149_v32 = vsel %vm6096_vm4, %v6079_v18, %v6080_v20 }
 0x417   :  { %v5844_v60 = vpop.f32.mrf.mxu2  ;;  %v6150_v38 = vsel %vm6100_vm5, %v6146_v31, %v6149_v32 }
 0x418   :  { %v3789_v60 = vperm.slane %v3744_v14, 5 }
 0x426   :  { %v5868_v5 = vpop.f32.mrf.mxu0 }
 0x427   :  { %v5869_v17 = vadd.f32 %v5868_v5, %v3781_v10 }
 0x429   :  { %v5881_v6 = vpop.f32.mrf.mxu1 }
 0x42a   :  { %v5882_v21 = vadd.f32 %v5881_v6, %v3782_v7 }
 0x42c   :  { %v5855_v11 = vpop.f32.mrf.mxu3 }
 0x42d   :  { %v5856_v51 = vadd.f32 %v5855_v11, %v3780_v12 }
 0x42e   :  { %v5870_v23 = vpop.f32.mrf.mxu0 }
 0x42f   :  { %v5894_v19 = vpop.f32.mrf.mxu2  ;;  %v6029_v25 = vpack.c.bf16 %v5869_v17, %v5856_v51 }
 0x430   :  { %v5895_v22 = vadd.f32 %v5894_v19, %v3783_v15 }
 0x431   :  { %v5883_v26 = vpop.f32.mrf.mxu1  ;;  %v6081_v29 = vrot.slane %v6029_v25, 4  ;;  %v6082_v30 = vrot.slane %v6029_v25, 7 }
 0x432   :  { %v6030_v28 = vpack.c.bf16 %v5895_v22, %v5882_v21 }
 0x433   :  { %v6153_v35 = vsel %vm6102_vm6, %v6081_v29, %v6082_v30  ;;  %v9488_v29 = vld [vmem:[%s12816_s8 + $0x28] ss:$0 sm:$0xff] }
 0x434   :  { %v6083_v33 = vrot.slane %v6030_v28, 2  ;;  %v6084_v34 = vrot.slane %v6030_v28, 5  ;;  %v5857_v37 = vpop.f32.mrf.mxu3 }
 0x436   :  { %v6156_v36 = vsel %vm6106_vm7, %v6083_v33, %v6084_v34 }
 0x437   :  { %v6157_v39 = vsel %vm6110_vm8, %v6153_v35, %v6156_v36  ;;  %v5896_v24 = vpop.f32.mrf.mxu2 }
 0x438   :  { %v6158_v40 = vsel %vm6112_vm9, %v6150_v38, %v6157_v39 }
 0x439   :  { %6186 = vst [vmem:[#allocation2 + $0x18] sm:$0xff] %v6158_v40 }
 0x446   :  { %v5920_v41 = vpop.f32.mrf.mxu0 }
 0x447   :  { %v5921_v57 = vadd.f32 %v5920_v41, %v3785_v50 }
 0x449   :  { %v5933_v42 = vpop.f32.mrf.mxu1 }
 0x44a   :  { %v5934_v61 = vadd.f32 %v5933_v42, %v3786_v53 }
 0x44c   :  { %v5907_v43 = vpop.f32.mrf.mxu3 }
 0x44d   :  { %v5908_v59 = vadd.f32 %v5907_v43, %v3784_v48 }
 0x44e   :  { %v5922_v45 = vpop.f32.mrf.mxu0 }
 0x44f   :  { %v5946_v44 = vpop.f32.mrf.mxu2  ;;  %v6031_v52 = vpack.c.bf16 %v5921_v57, %v5908_v59 }
 0x450   :  { %v5947_v54 = vadd.f32 %v5946_v44, %v3787_v49 }
 0x451   :  { %v5935_v27 = vpop.f32.mrf.mxu1  ;;  %v6085_v3 = vrot.slane %v6031_v52, 3 }
 0x452   :  { %v6032_v63 = vpack.c.bf16 %v5947_v54, %v5934_v61 }
 0x453   :  { %v6161_v17 = vsel %vm2771_vm0, %v6031_v52, %v6085_v3 }
 0x454   :  { %v5909_v46 = vpop.f32.mrf.mxu3  ;;  %v6086_v6 = vrot.slane %v6032_v63, 6  ;;  %v6087_v8 = vrot.slane %v6032_v63, 1 }
 0x456   :  { %v6164_v51 = vsel %vm6096_vm4, %v6086_v6, %v6087_v8 }
 0x457   :  { %v5948_v47 = vpop.f32.mrf.mxu2  ;;  %v6165_v23 = vsel %vm6100_vm5, %v6161_v17, %v6164_v51 }
 0x466   :  { %v5972_v55 = vpop.f32.mrf.mxu0 }
 0x467   :  { %v5985_v58 = vpop.f32.mrf.mxu1  ;;  %v5973_v4 = vadd.f32 %v5972_v55, %v3789_v60 }
 0x468   :  { %v5986_v9 = vadd.f32 %v5985_v58, %v3790_v0 }
 0x46c   :  { %v5959_v2 = vpop.f32.mrf.mxu3 }
 0x46d   :  { %v5960_v5 = vadd.f32 %v5959_v2, %v3788_v62 }
 0x46e   :  { %v5998_v56 = vpop.f32.mrf.mxu2  ;;  %v5974_v12 = vpop.f32.mrf.mxu0 }
 0x46f   :  { %v5999_v10 = vadd.f32 %v5998_v56, %v3791_v1  ;;  %v6033_v13 = vpack.c.bf16 %v5973_v4, %v5960_v5  ;;  %v5987_v7 = vpop.f32.mrf.mxu1 }
 0x471   :  { %v6034_v15 = vpack.c.bf16 %v5999_v10, %v5986_v9  ;;  %v6088_v11 = vrot.slane %v6033_v13, 4  ;;  %v6089_v16 = vrot.slane %v6033_v13, 7 }
 0x473   :  { %v6090_v19 = vrot.slane %v6034_v15, 2  ;;  %v6091_v18 = vrot.slane %v6034_v15, 5  ;;  %v6168_v20 = vsel %vm6102_vm6, %v6088_v11, %v6089_v16 }
 0x474   :  { %v5961_v22 = vpop.f32.mrf.mxu3 }
 0x475   :  { %v6171_v21 = vsel %vm6106_vm7, %v6090_v19, %v6091_v18 }
 0x476   :  { %v6172_v25 = vsel %vm6110_vm8, %v6168_v20, %v6171_v21  ;;  %v6000_v26 = vpop.f32.mrf.mxu2 }
 0x477   :  { %v6173_v28 = vsel %vm6112_vm9, %v6165_v23, %v6172_v25 }
 0x478   :  { %6187 = vst [vmem:[#allocation2 + $0x20] sm:$0xff] %v6173_v28 }
 0x48c   :  { %v6011_v30 = vpop.f32.mrf.mxu3 }
 0x48d   :  { %v6012_v31 = vadd.f32 %v9488_v29, %v6011_v30 }
 0x48f   :  { %v6035_v32 = vpack.c.bf16 %v6012_v31, %v6012_v31 }
 0x491   :  { %v6092_v33 = vrot.slane %v6035_v32, 3 }
 0x493   :  { %v6176_v34 = vsel %vm2771_vm0, %v6035_v32, %v6092_v33 }
 0x494   :  { %6189 = vst.msk [vmem:[#allocation2 + $0x28] sm:$0x1] %vm6188_vm10, %v6176_v34  ;;  %v6013_v35 = vpop.f32.mrf.mxu3 }
 0x495   :  { %6200 = dma.vmem_to_hbm [thread:$0]  %s6196_s16, 656, %s6198_s18, [#allocation3]  }
 0x496   :  { %9515 = dma.done.wait [#allocation3], 656  }
 0x497   :  { %9516 = vsyncadd [#allocation3], 4294966640 }
 0x498   :  { %6205 = vsyncpa [#allocation3], 1 }

</bundles_post_ra>
